<compile_context>
chip_gen: v7x
topology: tpu7x:2x2x1
jax: 0.10.0
libtpu: 0.0.40
codegen_flags: <defaults>
</compile_context>

<pallas_src>
import functools

import jax
import jax.numpy as jnp
from jax.experimental import pallas as pl
from jax.experimental.pallas import tpu as pltpu

C_POOL = 2  # ZPool(dim=1) produces [max_over_C, mean_over_C] -> 2 channels


def _pool_gate_kernel(w_ref, x_ref, o_ref, pad_ref, *, C, H, W, OC, K, PAD, LEFTW):
    # w_ref  : SMEM, flat (OC*C_POOL*K*K,) f32 conv weights (OIHW order, flattened)
    # x_ref  : VMEM, (C, H, W, Bt) input tile (batch on the lane axis)
    # o_ref  : VMEM, (OC, HO_blk, WO, Bt) output tile (one block of output rows)
    # pad_ref: VMEM scratch, (C_POOL, H + 2*PAD, WPAD, Bt) zero-padded pooled maps
    Bt = x_ref.shape[-1]
    HO_blk = o_ref.shape[1]
    WO = o_ref.shape[2]
    HPAD = pad_ref.shape[1]
    WPAD = pad_ref.shape[2]
    pdt = pad_ref.dtype
    COL0 = LEFTW - PAD  # scratch column of the conv window's first tap for out col 0

    # Output rows handled by this grid step: [row_off, row_off + HO_blk).
    row_off = pl.program_id(1) * HO_blk

    # --- ZPool over the channel axis: [max, mean] (mean accumulated in f32) --------
    xv = x_ref[...]
    mx = jnp.max(xv, axis=0).astype(pdt)                                   # (H, W, Bt)
    mean = (jnp.sum(xv.astype(jnp.float32), axis=0)
            * jnp.float32(1.0 / C)).astype(pdt)                            # (H, W, Bt)

    # --- fill the zero-padded pooled maps in VMEM scratch --------------------------
    # Only the halo strips are zeroed; the interior is fully overwritten each step,
    # so this stays correct when grid axes are sharded across TensorCores.
    # LEFTW = 8 keeps all of these stores sublane-aligned.
    z_rows = jnp.zeros((PAD, WPAD, Bt), pdt)
    z_left = jnp.zeros((H, LEFTW, Bt), pdt)
    z_right = jnp.zeros((H, WPAD - LEFTW - W, Bt), pdt)
    for ci in range(C_POOL):
        pad_ref[ci, 0:PAD, :, :] = z_rows                        # top halo rows
        pad_ref[ci, PAD + H:HPAD, :, :] = z_rows                 # bottom halo rows
        pad_ref[ci, PAD:PAD + H, 0:LEFTW, :] = z_left            # left halo columns
        pad_ref[ci, PAD:PAD + H, LEFTW + W:WPAD, :] = z_right    # right halo columns
    pad_ref[0, PAD:PAD + H, LEFTW:LEFTW + W, :] = mx
    pad_ref[1, PAD:PAD + H, LEFTW:LEFTW + W, :] = mean

    # --- 7x7 conv (no bias) + ReLU + Sigmoid, one output row at a time -------------
    # acc is a small (WO, Bt) register-resident slab for all 2*K*K taps of the row;
    # each padded row is loaded once per (ci, kh) and the kw windows are value slices.
    for oc in range(OC):

        @pl.loop(0, HO_blk)
        def _(lho):
            ho = row_off + lho
            acc = jnp.zeros((WO, Bt), jnp.float32)
            for ci in range(C_POOL):
                for kh in range(K):
                    row = pad_ref[ci, ho + kh, :, :]              # (WPAD, Bt), 1 load
                    for kw in range(K):
                        wv = w_ref[((oc * C_POOL + ci) * K + kh) * K + kw]
                        acc = acc + row[COL0 + kw:COL0 + kw + WO, :] * wv
            y = jax.nn.sigmoid(jnp.maximum(acc, jnp.float32(0.0)))
            o_ref[oc, lho, :, :] = y.astype(o_ref.dtype)


def pool_gate(x, w, *, kernel=7, block_n=512):
    """x: (N, C, H, W), w: (OC, 2, K, K) -> (N, OC, H+2, W+2) (same dtype as x)."""
    N, C, H, W = x.shape
    OC = w.shape[0]
    K = kernel
    PAD = K // 2 + 1                      # padding = kernel // 2 + 1, as in the module
    HO = H + 2 * PAD - K + 1
    WO = W + 2 * PAD - K + 1

    LEFTW = 8                             # sublane-aligned left pad in the scratch
    HPAD = H + 2 * PAD
    # last scratch column read is (LEFTW - PAD) + (WO - 1) + (K - 1); round up to 8
    WPAD = (((LEFTW - PAD) + WO + K - 1 + 7) // 8) * 8

    # Lane-dense layout: batch last.  (For tiny N lane occupancy is N/128; this path
    # is tuned for N >= 128 — a spatial-on-lanes variant would suit inference N=1-8.)
    xt = jnp.transpose(x, (1, 2, 3, 0))   # (C, H, W, N)
    if N <= block_n:
        Bt, Npad = N, N                   # single batch tile
    else:
        Bt = block_n
        Npad = pl.cdiv(N, Bt) * Bt
        xt = jnp.pad(xt, ((0, 0), (0, 0), (0, 0), (0, Npad - N)))
    n_batch = Npad // Bt

    # When the whole batch fits one lane tile, split output rows into two parallel
    # blocks so a v7x megacore still gets >= 2 independent grid steps.
    if n_batch == 1 and HO % 2 == 0:
        n_rows, HO_blk = 2, HO // 2
    else:
        n_rows, HO_blk = 1, HO

    # bf16 inputs keep pooled maps bf16-resident (v6e/v7x); f32 stays f32 (v5e-safe).
    pool_dtype = jnp.bfloat16 if x.dtype == jnp.bfloat16 else jnp.float32

    w_flat = w.reshape(-1).astype(jnp.float32)

    kern = functools.partial(_pool_gate_kernel,
                             C=C, H=H, W=W, OC=OC, K=K, PAD=PAD, LEFTW=LEFTW)

    # Explicit VMEM budget (v7x: 64 MiB physical, 32 MiB default scoped).
    esize = x.dtype.itemsize
    pool_esize = 2 if pool_dtype == jnp.bfloat16 else 4
    x_bytes = C * H * W * Bt * esize
    o_bytes = OC * HO_blk * WO * Bt * esize
    scr_bytes = C_POOL * HPAD * WPAD * Bt * pool_esize
    needed = 2 * (x_bytes + o_bytes) + scr_bytes + (2 << 20)   # double-buffered I/O
    vmem_limit = int(min(max(needed, 16 << 20), 32 << 20))

    out_t = pl.pallas_call(
        kern,
        out_shape=jax.ShapeDtypeStruct((OC, HO, WO, Npad), x.dtype),
        grid=(n_batch, n_rows),
        in_specs=[
            pl.BlockSpec(memory_space=pltpu.MemorySpace.SMEM),        # conv weights
            pl.BlockSpec((C, H, W, Bt), lambda n, r: (0, 0, 0, n)),   # lane-dense batch
        ],
        out_specs=pl.BlockSpec((OC, HO_blk, WO, Bt), lambda n, r: (0, r, 0, n)),
        scratch_shapes=[pltpu.VMEM((C_POOL, HPAD, WPAD, Bt), pool_dtype)],
        compiler_params=pltpu.CompilerParams(
            dimension_semantics=("parallel", "parallel"),
            vmem_limit_bytes=vmem_limit),
    )(w_flat, xt)

    out = jnp.transpose(out_t, (3, 0, 1, 2))  # (Npad, OC, HO, WO)
    return out[:N]


def pool_gate_ref(x, w, *, kernel=7):
    """Pure-JAX reference reproducing the PyTorch forward."""
    PAD = kernel // 2 + 1
    mx = jnp.max(x, axis=1, keepdims=True)
    mn = jnp.mean(x, axis=1, keepdims=True)
    y = jnp.concatenate([mx, mn], axis=1)
    y = jax.lax.conv_general_dilated(
        y, w, window_strides=(1, 1),
        padding=[(PAD, PAD), (PAD, PAD)],
        dimension_numbers=("NCHW", "OIHW", "NCHW"),
    )
    return jax.nn.sigmoid(jnp.maximum(y, 0.0))


if __name__ == "__main__":
    key = jax.random.PRNGKey(0)
    kx, kw_key, kx2 = jax.random.split(key, 3)

    N, C, H, W = 2, 4, 16, 16          # input (NCHW)
    OC, K = 1, 7                        # out_channels, conv kernel size

    x = jax.random.normal(kx, (N, C, H, W), dtype=jnp.float32)
    # Deterministic synthetic conv weight, shape (out_channels, pool_channels=2, K, K).
    w = 0.05 * jax.random.normal(kw_key, (OC, C_POOL, K, K), dtype=jnp.float32)

    # Small-batch path: single batch tile, output rows split into 2 parallel blocks.
    out = jax.block_until_ready(pool_gate(x, w, kernel=K))
    ref = pool_gate_ref(x, w, kernel=K)
    assert out.shape == (N, OC, H + 2, W + 2), out.shape
    assert jnp.allclose(out, ref, atol=1e-5, rtol=1e-5), float(jnp.max(jnp.abs(out - ref)))

    # Multi-batch-tile path: 3 x 128-lane tiles (padded batch), no row split.
    N2 = 300
    x2 = jax.random.normal(kx2, (N2, C, H, W), dtype=jnp.float32)
    out2 = jax.block_until_ready(pool_gate(x2, w, kernel=K, block_n=128))
    ref2 = pool_gate_ref(x2, w, kernel=K)
    assert out2.shape == (N2, OC, H + 2, W + 2), out2.shape
    assert jnp.allclose(out2, ref2, atol=1e-5, rtol=1e-5), float(jnp.max(jnp.abs(out2 - ref2)))

    print("KERNEL_OK")
</pallas_src>

<mosaic_0001>
module attributes {stable_mosaic.version = 11 : i64} {
  func.func @_pool_gate_kernel(%arg0: i32, %arg1: i32, %arg2: memref<98xf32, #tpu.memory_space<smem>>, %arg3: memref<4x16x16x2xf32, #tpu.memory_space<vmem>>, %arg4: memref<1x9x18x2xf32, #tpu.memory_space<vmem>>, %arg5: memref<2x24x32x2xf32, #tpu.memory_space<vmem>>) attributes {dimension_semantics = [#tpu.dimension_semantics<parallel>, #tpu.dimension_semantics<parallel>], iteration_bounds = array<i64: 1, 2>, scalar_prefetch = 0 : i64, scratch_operands = 1 : i64, tpu.core_type = #tpu.core_type<tc>, window_params = [{transform_indices = @transform_0, window_bounds = array<i64: 98>}, {transform_indices = @transform_1, window_bounds = array<i64: 4, 16, 16, 2>}, {transform_indices = @transform_2, window_bounds = array<i64: 1, 9, 18, 2>}]} {
    %c9_i32 = arith.constant 9 : i32
    %0 = arith.muli %arg1, %c9_i32 : i32
    %c0 = arith.constant 0 : index
    %c0_0 = arith.constant 0 : index
    %c0_1 = arith.constant 0 : index
    %c0_2 = arith.constant 0 : index
    %1 = vector.load %arg3[%c0, %c0_0, %c0_1, %c0_2] : memref<4x16x16x2xf32, #tpu.memory_space<vmem>>, vector<4x16x16x2xf32>
    %cst = arith.constant dense<0xFF800000> : vector<16x16x2xf32>
    %2 = vector.multi_reduction <maximumf>, %1, %cst [0] : vector<4x16x16x2xf32> to vector<16x16x2xf32>
    %cst_3 = arith.constant dense<0.000000e+00> : vector<16x16x2xf32>
    %3 = vector.multi_reduction <add>, %1, %cst_3 [0] : vector<4x16x16x2xf32> to vector<16x16x2xf32>
    %cst_4 = arith.constant 2.500000e-01 : f32
    %4 = vector.broadcast %cst_4 : f32 to vector<16x16x2xf32>
    %5 = arith.mulf %3, %4 : vector<16x16x2xf32>
    %cst_5 = arith.constant 0.000000e+00 : f32
    %6 = vector.broadcast %cst_5 : f32 to vector<4x32x2xf32>
    %cst_6 = arith.constant 0.000000e+00 : f32
    %7 = vector.broadcast %cst_6 : f32 to vector<16x8x2xf32>
    %cst_7 = arith.constant 0.000000e+00 : f32
    %8 = vector.broadcast %cst_7 : f32 to vector<16x8x2xf32>
    %c0_8 = arith.constant 0 : index
    %c0_9 = arith.constant 0 : index
    %c0_10 = arith.constant 0 : index
    %c0_11 = arith.constant 0 : index
    %9 = vector.load %arg5[%c0_8, %c0_9, %c0_10, %c0_11] : memref<2x24x32x2xf32, #tpu.memory_space<vmem>>, vector<1x4x32x2xf32>
    %10 = vector.shape_cast %9 : vector<1x4x32x2xf32> to vector<4x32x2xf32>
    %11 = vector.shape_cast %6 : vector<4x32x2xf32> to vector<1x4x32x2xf32>
    tpu.vector_store %arg5[%c0_8, %c0_9, %c0_10, %c0_11], %11 {strides = array<i32>} : memref<2x24x32x2xf32, #tpu.memory_space<vmem>>, vector<1x4x32x2xf32>,
    %c0_12 = arith.constant 0 : index
    %c20 = arith.constant 20 : index
    %c0_13 = arith.constant 0 : index
    %c0_14 = arith.constant 0 : index
    %12 = vector.load %arg5[%c0_12, %c20, %c0_13, %c0_14] : memref<2x24x32x2xf32, #tpu.memory_space<vmem>>, vector<1x4x32x2xf32>
    %13 = vector.shape_cast %12 : vector<1x4x32x2xf32> to vector<4x32x2xf32>
    %14 = vector.shape_cast %6 : vector<4x32x2xf32> to vector<1x4x32x2xf32>
    tpu.vector_store %arg5[%c0_12, %c20, %c0_13, %c0_14], %14 {strides = array<i32>} : memref<2x24x32x2xf32, #tpu.memory_space<vmem>>, vector<1x4x32x2xf32>,
    %c0_15 = arith.constant 0 : index
    %c4 = arith.constant 4 : index
    %c0_16 = arith.constant 0 : index
    %c0_17 = arith.constant 0 : index
    %15 = vector.load %arg5[%c0_15, %c4, %c0_16, %c0_17] : memref<2x24x32x2xf32, #tpu.memory_space<vmem>>, vector<1x16x8x2xf32>
    %16 = vector.shape_cast %15 : vector<1x16x8x2xf32> to vector<16x8x2xf32>
    %17 = vector.shape_cast %7 : vector<16x8x2xf32> to vector<1x16x8x2xf32>
    tpu.vector_store %arg5[%c0_15, %c4, %c0_16, %c0_17], %17 {strides = array<i32>} : memref<2x24x32x2xf32, #tpu.memory_space<vmem>>, vector<1x16x8x2xf32>,
    %c0_18 = arith.constant 0 : index
    %c4_19 = arith.constant 4 : index
    %c24 = arith.constant 24 : index
    %c0_20 = arith.constant 0 : index
    %18 = vector.load %arg5[%c0_18, %c4_19, %c24, %c0_20] : memref<2x24x32x2xf32, #tpu.memory_space<vmem>>, vector<1x16x8x2xf32>
    %19 = vector.shape_cast %18 : vector<1x16x8x2xf32> to vector<16x8x2xf32>
    %20 = vector.shape_cast %8 : vector<16x8x2xf32> to vector<1x16x8x2xf32>
    tpu.vector_store %arg5[%c0_18, %c4_19, %c24, %c0_20], %20 {strides = array<i32>} : memref<2x24x32x2xf32, #tpu.memory_space<vmem>>, vector<1x16x8x2xf32>,
    %c1 = arith.constant 1 : index
    %c0_21 = arith.constant 0 : index
    %c0_22 = arith.constant 0 : index
    %c0_23 = arith.constant 0 : index
    %21 = vector.load %arg5[%c1, %c0_21, %c0_22, %c0_23] : memref<2x24x32x2xf32, #tpu.memory_space<vmem>>, vector<1x4x32x2xf32>
    %22 = vector.shape_cast %21 : vector<1x4x32x2xf32> to vector<4x32x2xf32>
    %23 = vector.shape_cast %6 : vector<4x32x2xf32> to vector<1x4x32x2xf32>
    tpu.vector_store %arg5[%c1, %c0_21, %c0_22, %c0_23], %23 {strides = array<i32>} : memref<2x24x32x2xf32, #tpu.memory_space<vmem>>, vector<1x4x32x2xf32>,
    %c1_24 = arith.constant 1 : index
    %c20_25 = arith.constant 20 : index
    %c0_26 = arith.constant 0 : index
    %c0_27 = arith.constant 0 : index
    %24 = vector.load %arg5[%c1_24, %c20_25, %c0_26, %c0_27] : memref<2x24x32x2xf32, #tpu.memory_space<vmem>>, vector<1x4x32x2xf32>
    %25 = vector.shape_cast %24 : vector<1x4x32x2xf32> to vector<4x32x2xf32>
    %26 = vector.shape_cast %6 : vector<4x32x2xf32> to vector<1x4x32x2xf32>
    tpu.vector_store %arg5[%c1_24, %c20_25, %c0_26, %c0_27], %26 {strides = array<i32>} : memref<2x24x32x2xf32, #tpu.memory_space<vmem>>, vector<1x4x32x2xf32>,
    %c1_28 = arith.constant 1 : index
    %c4_29 = arith.constant 4 : index
    %c0_30 = arith.constant 0 : index
    %c0_31 = arith.constant 0 : index
    %27 = vector.load %arg5[%c1_28, %c4_29, %c0_30, %c0_31] : memref<2x24x32x2xf32, #tpu.memory_space<vmem>>, vector<1x16x8x2xf32>
    %28 = vector.shape_cast %27 : vector<1x16x8x2xf32> to vector<16x8x2xf32>
    %29 = vector.shape_cast %7 : vector<16x8x2xf32> to vector<1x16x8x2xf32>
    tpu.vector_store %arg5[%c1_28, %c4_29, %c0_30, %c0_31], %29 {strides = array<i32>} : memref<2x24x32x2xf32, #tpu.memory_space<vmem>>, vector<1x16x8x2xf32>,
    %c1_32 = arith.constant 1 : index
    %c4_33 = arith.constant 4 : index
    %c24_34 = arith.constant 24 : index
    %c0_35 = arith.constant 0 : index
    %30 = vector.load %arg5[%c1_32, %c4_33, %c24_34, %c0_35] : memref<2x24x32x2xf32, #tpu.memory_space<vmem>>, vector<1x16x8x2xf32>
    %31 = vector.shape_cast %30 : vector<1x16x8x2xf32> to vector<16x8x2xf32>
    %32 = vector.shape_cast %8 : vector<16x8x2xf32> to vector<1x16x8x2xf32>
    tpu.vector_store %arg5[%c1_32, %c4_33, %c24_34, %c0_35], %32 {strides = array<i32>} : memref<2x24x32x2xf32, #tpu.memory_space<vmem>>, vector<1x16x8x2xf32>,
    %c0_36 = arith.constant 0 : index
    %c4_37 = arith.constant 4 : index
    %c8 = arith.constant 8 : index
    %c0_38 = arith.constant 0 : index
    %33 = vector.load %arg5[%c0_36, %c4_37, %c8, %c0_38] : memref<2x24x32x2xf32, #tpu.memory_space<vmem>>, vector<1x16x16x2xf32>
    %34 = vector.shape_cast %33 : vector<1x16x16x2xf32> to vector<16x16x2xf32>
    %35 = vector.shape_cast %2 : vector<16x16x2xf32> to vector<1x16x16x2xf32>
    tpu.vector_store %arg5[%c0_36, %c4_37, %c8, %c0_38], %35 {strides = array<i32>} : memref<2x24x32x2xf32, #tpu.memory_space<vmem>>, vector<1x16x16x2xf32>,
    %c1_39 = arith.constant 1 : index
    %c4_40 = arith.constant 4 : index
    %c8_41 = arith.constant 8 : index
    %c0_42 = arith.constant 0 : index
    %36 = vector.load %arg5[%c1_39, %c4_40, %c8_41, %c0_42] : memref<2x24x32x2xf32, #tpu.memory_space<vmem>>, vector<1x16x16x2xf32>
    %37 = vector.shape_cast %36 : vector<1x16x16x2xf32> to vector<16x16x2xf32>
    %38 = vector.shape_cast %5 : vector<16x16x2xf32> to vector<1x16x16x2xf32>
    tpu.vector_store %arg5[%c1_39, %c4_40, %c8_41, %c0_42], %38 {strides = array<i32>} : memref<2x24x32x2xf32, #tpu.memory_space<vmem>>, vector<1x16x16x2xf32>,
    %c0_i32 = arith.constant 0 : i32
    %c9_i32_43 = arith.constant 9 : i32
    %39 = arith.addi %c0_i32, %c9_i32_43 : i32
    %c1_i32 = arith.constant 1 : i32
    scf.for %arg6 = %c0_i32 to %39 step %c1_i32  : i32 {
      %c1_i32_45 = arith.constant 1 : i32
      %40 = arith.muli %arg6, %c1_i32_45 : i32
      %c0_i32_46 = arith.constant 0 : i32
      %41 = arith.addi %c0_i32_46, %40 : i32
      %42 = arith.addi %0, %41 : i32
      %cst_47 = arith.constant 0.000000e+00 : f32
      %43 = vector.broadcast %cst_47 : f32 to vector<18x2xf32>
      %c0_i32_48 = arith.constant 0 : i32
      %44 = arith.addi %42, %c0_i32_48 : i32
      %c0_49 = arith.constant 0 : index
      %45 = arith.index_cast %44 : i32 to index
      %c0_50 = arith.constant 0 : index
      %c0_51 = arith.constant 0 : index
      %46 = vector.load %arg5[%c0_49, %45, %c0_50, %c0_51] : memref<2x24x32x2xf32, #tpu.memory_space<vmem>>, vector<1x1x32x2xf32>
      %47 = vector.shape_cast %46 : vector<1x1x32x2xf32> to vector<32x2xf32>
      %c0_52 = arith.constant 0 : index
      %48 = memref.load %arg2[%c0_52] : memref<98xf32, #tpu.memory_space<smem>>
      %49 = vector.extract_strided_slice %47 {offsets = [4, 0], sizes = [18, 2], strides = [1, 1]} : vector<32x2xf32> to vector<18x2xf32>
      %50 = vector.broadcast %48 : f32 to vector<18x2xf32>
      %51 = arith.mulf %49, %50 : vector<18x2xf32>
      %52 = arith.addf %43, %51 : vector<18x2xf32>
      %c1_53 = arith.constant 1 : index
      %53 = memref.load %arg2[%c1_53] : memref<98xf32, #tpu.memory_space<smem>>
      %54 = vector.extract_strided_slice %47 {offsets = [5, 0], sizes = [18, 2], strides = [1, 1]} : vector<32x2xf32> to vector<18x2xf32>
      %55 = vector.broadcast %53 : f32 to vector<18x2xf32>
      %56 = arith.mulf %54, %55 : vector<18x2xf32>
      %57 = arith.addf %52, %56 : vector<18x2xf32>
      %c2 = arith.constant 2 : index
      %58 = memref.load %arg2[%c2] : memref<98xf32, #tpu.memory_space<smem>>
      %59 = vector.extract_strided_slice %47 {offsets = [6, 0], sizes = [18, 2], strides = [1, 1]} : vector<32x2xf32> to vector<18x2xf32>
      %60 = vector.broadcast %58 : f32 to vector<18x2xf32>
      %61 = arith.mulf %59, %60 : vector<18x2xf32>
      %62 = arith.addf %57, %61 : vector<18x2xf32>
      %c3 = arith.constant 3 : index
      %63 = memref.load %arg2[%c3] : memref<98xf32, #tpu.memory_space<smem>>
      %64 = vector.extract_strided_slice %47 {offsets = [7, 0], sizes = [18, 2], strides = [1, 1]} : vector<32x2xf32> to vector<18x2xf32>
      %65 = vector.broadcast %63 : f32 to vector<18x2xf32>
      %66 = arith.mulf %64, %65 : vector<18x2xf32>
      %67 = arith.addf %62, %66 : vector<18x2xf32>
      %c4_54 = arith.constant 4 : index
      %68 = memref.load %arg2[%c4_54] : memref<98xf32, #tpu.memory_space<smem>>
      %69 = vector.extract_strided_slice %47 {offsets = [8, 0], sizes = [18, 2], strides = [1, 1]} : vector<32x2xf32> to vector<18x2xf32>
      %70 = vector.broadcast %68 : f32 to vector<18x2xf32>
      %71 = arith.mulf %69, %70 : vector<18x2xf32>
      %72 = arith.addf %67, %71 : vector<18x2xf32>
      %c5 = arith.constant 5 : index
      %73 = memref.load %arg2[%c5] : memref<98xf32, #tpu.memory_space<smem>>
      %74 = vector.extract_strided_slice %47 {offsets = [9, 0], sizes = [18, 2], strides = [1, 1]} : vector<32x2xf32> to vector<18x2xf32>
      %75 = vector.broadcast %73 : f32 to vector<18x2xf32>
      %76 = arith.mulf %74, %75 : vector<18x2xf32>
      %77 = arith.addf %72, %76 : vector<18x2xf32>
      %c6 = arith.constant 6 : index
      %78 = memref.load %arg2[%c6] : memref<98xf32, #tpu.memory_space<smem>>
      %79 = vector.extract_strided_slice %47 {offsets = [10, 0], sizes = [18, 2], strides = [1, 1]} : vector<32x2xf32> to vector<18x2xf32>
      %80 = vector.broadcast %78 : f32 to vector<18x2xf32>
      %81 = arith.mulf %79, %80 : vector<18x2xf32>
      %82 = arith.addf %77, %81 : vector<18x2xf32>
      %c1_i32_55 = arith.constant 1 : i32
      %83 = arith.addi %42, %c1_i32_55 : i32
      %c0_56 = arith.constant 0 : index
      %84 = arith.index_cast %83 : i32 to index
      %c0_57 = arith.constant 0 : index
      %c0_58 = arith.constant 0 : index
      %85 = vector.load %arg5[%c0_56, %84, %c0_57, %c0_58] : memref<2x24x32x2xf32, #tpu.memory_space<vmem>>, vector<1x1x32x2xf32>
      %86 = vector.shape_cast %85 : vector<1x1x32x2xf32> to vector<32x2xf32>
      %c7 = arith.constant 7 : index
      %87 = memref.load %arg2[%c7] : memref<98xf32, #tpu.memory_space<smem>>
      %88 = vector.extract_strided_slice %86 {offsets = [4, 0], sizes = [18, 2], strides = [1, 1]} : vector<32x2xf32> to vector<18x2xf32>
      %89 = vector.broadcast %87 : f32 to vector<18x2xf32>
      %90 = arith.mulf %88, %89 : vector<18x2xf32>
      %91 = arith.addf %82, %90 : vector<18x2xf32>
      %c8_59 = arith.constant 8 : index
      %92 = memref.load %arg2[%c8_59] : memref<98xf32, #tpu.memory_space<smem>>
      %93 = vector.extract_strided_slice %86 {offsets = [5, 0], sizes = [18, 2], strides = [1, 1]} : vector<32x2xf32> to vector<18x2xf32>
      %94 = vector.broadcast %92 : f32 to vector<18x2xf32>
      %95 = arith.mulf %93, %94 : vector<18x2xf32>
      %96 = arith.addf %91, %95 : vector<18x2xf32>
      %c9 = arith.constant 9 : index
      %97 = memref.load %arg2[%c9] : memref<98xf32, #tpu.memory_space<smem>>
      %98 = vector.extract_strided_slice %86 {offsets = [6, 0], sizes = [18, 2], strides = [1, 1]} : vector<32x2xf32> to vector<18x2xf32>
      %99 = vector.broadcast %97 : f32 to vector<18x2xf32>
      %100 = arith.mulf %98, %99 : vector<18x2xf32>
      %101 = arith.addf %96, %100 : vector<18x2xf32>
      %c10 = arith.constant 10 : index
      %102 = memref.load %arg2[%c10] : memref<98xf32, #tpu.memory_space<smem>>
      %103 = vector.extract_strided_slice %86 {offsets = [7, 0], sizes = [18, 2], strides = [1, 1]} : vector<32x2xf32> to vector<18x2xf32>
      %104 = vector.broadcast %102 : f32 to vector<18x2xf32>
      %105 = arith.mulf %103, %104 : vector<18x2xf32>
      %106 = arith.addf %101, %105 : vector<18x2xf32>
      %c11 = arith.constant 11 : index
      %107 = memref.load %arg2[%c11] : memref<98xf32, #tpu.memory_space<smem>>
      %108 = vector.extract_strided_slice %86 {offsets = [8, 0], sizes = [18, 2], strides = [1, 1]} : vector<32x2xf32> to vector<18x2xf32>
      %109 = vector.broadcast %107 : f32 to vector<18x2xf32>
      %110 = arith.mulf %108, %109 : vector<18x2xf32>
      %111 = arith.addf %106, %110 : vector<18x2xf32>
      %c12 = arith.constant 12 : index
      %112 = memref.load %arg2[%c12] : memref<98xf32, #tpu.memory_space<smem>>
      %113 = vector.extract_strided_slice %86 {offsets = [9, 0], sizes = [18, 2], strides = [1, 1]} : vector<32x2xf32> to vector<18x2xf32>
      %114 = vector.broadcast %112 : f32 to vector<18x2xf32>
      %115 = arith.mulf %113, %114 : vector<18x2xf32>
      %116 = arith.addf %111, %115 : vector<18x2xf32>
      %c13 = arith.constant 13 : index
      %117 = memref.load %arg2[%c13] : memref<98xf32, #tpu.memory_space<smem>>
      %118 = vector.extract_strided_slice %86 {offsets = [10, 0], sizes = [18, 2], strides = [1, 1]} : vector<32x2xf32> to vector<18x2xf32>
      %119 = vector.broadcast %117 : f32 to vector<18x2xf32>
      %120 = arith.mulf %118, %119 : vector<18x2xf32>
      %121 = arith.addf %116, %120 : vector<18x2xf32>
      %c2_i32 = arith.constant 2 : i32
      %122 = arith.addi %42, %c2_i32 : i32
      %c0_60 = arith.constant 0 : index
      %123 = arith.index_cast %122 : i32 to index
      %c0_61 = arith.constant 0 : index
      %c0_62 = arith.constant 0 : index
      %124 = vector.load %arg5[%c0_60, %123, %c0_61, %c0_62] : memref<2x24x32x2xf32, #tpu.memory_space<vmem>>, vector<1x1x32x2xf32>
      %125 = vector.shape_cast %124 : vector<1x1x32x2xf32> to vector<32x2xf32>
      %c14 = arith.constant 14 : index
      %126 = memref.load %arg2[%c14] : memref<98xf32, #tpu.memory_space<smem>>
      %127 = vector.extract_strided_slice %125 {offsets = [4, 0], sizes = [18, 2], strides = [1, 1]} : vector<32x2xf32> to vector<18x2xf32>
      %128 = vector.broadcast %126 : f32 to vector<18x2xf32>
      %129 = arith.mulf %127, %128 : vector<18x2xf32>
      %130 = arith.addf %121, %129 : vector<18x2xf32>
      %c15 = arith.constant 15 : index
      %131 = memref.load %arg2[%c15] : memref<98xf32, #tpu.memory_space<smem>>
      %132 = vector.extract_strided_slice %125 {offsets = [5, 0], sizes = [18, 2], strides = [1, 1]} : vector<32x2xf32> to vector<18x2xf32>
      %133 = vector.broadcast %131 : f32 to vector<18x2xf32>
      %134 = arith.mulf %132, %133 : vector<18x2xf32>
      %135 = arith.addf %130, %134 : vector<18x2xf32>
      %c16 = arith.constant 16 : index
      %136 = memref.load %arg2[%c16] : memref<98xf32, #tpu.memory_space<smem>>
      %137 = vector.extract_strided_slice %125 {offsets = [6, 0], sizes = [18, 2], strides = [1, 1]} : vector<32x2xf32> to vector<18x2xf32>
      %138 = vector.broadcast %136 : f32 to vector<18x2xf32>
      %139 = arith.mulf %137, %138 : vector<18x2xf32>
      %140 = arith.addf %135, %139 : vector<18x2xf32>
      %c17 = arith.constant 17 : index
      %141 = memref.load %arg2[%c17] : memref<98xf32, #tpu.memory_space<smem>>
      %142 = vector.extract_strided_slice %125 {offsets = [7, 0], sizes = [18, 2], strides = [1, 1]} : vector<32x2xf32> to vector<18x2xf32>
      %143 = vector.broadcast %141 : f32 to vector<18x2xf32>
      %144 = arith.mulf %142, %143 : vector<18x2xf32>
      %145 = arith.addf %140, %144 : vector<18x2xf32>
      %c18 = arith.constant 18 : index
      %146 = memref.load %arg2[%c18] : memref<98xf32, #tpu.memory_space<smem>>
      %147 = vector.extract_strided_slice %125 {offsets = [8, 0], sizes = [18, 2], strides = [1, 1]} : vector<32x2xf32> to vector<18x2xf32>
      %148 = vector.broadcast %146 : f32 to vector<18x2xf32>
      %149 = arith.mulf %147, %148 : vector<18x2xf32>
      %150 = arith.addf %145, %149 : vector<18x2xf32>
      %c19 = arith.constant 19 : index
      %151 = memref.load %arg2[%c19] : memref<98xf32, #tpu.memory_space<smem>>
      %152 = vector.extract_strided_slice %125 {offsets = [9, 0], sizes = [18, 2], strides = [1, 1]} : vector<32x2xf32> to vector<18x2xf32>
      %153 = vector.broadcast %151 : f32 to vector<18x2xf32>
      %154 = arith.mulf %152, %153 : vector<18x2xf32>
      %155 = arith.addf %150, %154 : vector<18x2xf32>
      %c20_63 = arith.constant 20 : index
      %156 = memref.load %arg2[%c20_63] : memref<98xf32, #tpu.memory_space<smem>>
      %157 = vector.extract_strided_slice %125 {offsets = [10, 0], sizes = [18, 2], strides = [1, 1]} : vector<32x2xf32> to vector<18x2xf32>
      %158 = vector.broadcast %156 : f32 to vector<18x2xf32>
      %159 = arith.mulf %157, %158 : vector<18x2xf32>
      %160 = arith.addf %155, %159 : vector<18x2xf32>
      %c3_i32 = arith.constant 3 : i32
      %161 = arith.addi %42, %c3_i32 : i32
      %c0_64 = arith.constant 0 : index
      %162 = arith.index_cast %161 : i32 to index
      %c0_65 = arith.constant 0 : index
      %c0_66 = arith.constant 0 : index
      %163 = vector.load %arg5[%c0_64, %162, %c0_65, %c0_66] : memref<2x24x32x2xf32, #tpu.memory_space<vmem>>, vector<1x1x32x2xf32>
      %164 = vector.shape_cast %163 : vector<1x1x32x2xf32> to vector<32x2xf32>
      %c21 = arith.constant 21 : index
      %165 = memref.load %arg2[%c21] : memref<98xf32, #tpu.memory_space<smem>>
      %166 = vector.extract_strided_slice %164 {offsets = [4, 0], sizes = [18, 2], strides = [1, 1]} : vector<32x2xf32> to vector<18x2xf32>
      %167 = vector.broadcast %165 : f32 to vector<18x2xf32>
      %168 = arith.mulf %166, %167 : vector<18x2xf32>
      %169 = arith.addf %160, %168 : vector<18x2xf32>
      %c22 = arith.constant 22 : index
      %170 = memref.load %arg2[%c22] : memref<98xf32, #tpu.memory_space<smem>>
      %171 = vector.extract_strided_slice %164 {offsets = [5, 0], sizes = [18, 2], strides = [1, 1]} : vector<32x2xf32> to vector<18x2xf32>
      %172 = vector.broadcast %170 : f32 to vector<18x2xf32>
      %173 = arith.mulf %171, %172 : vector<18x2xf32>
      %174 = arith.addf %169, %173 : vector<18x2xf32>
      %c23 = arith.constant 23 : index
      %175 = memref.load %arg2[%c23] : memref<98xf32, #tpu.memory_space<smem>>
      %176 = vector.extract_strided_slice %164 {offsets = [6, 0], sizes = [18, 2], strides = [1, 1]} : vector<32x2xf32> to vector<18x2xf32>
      %177 = vector.broadcast %175 : f32 to vector<18x2xf32>
      %178 = arith.mulf %176, %177 : vector<18x2xf32>
      %179 = arith.addf %174, %178 : vector<18x2xf32>
      %c24_67 = arith.constant 24 : index
      %180 = memref.load %arg2[%c24_67] : memref<98xf32, #tpu.memory_space<smem>>
      %181 = vector.extract_strided_slice %164 {offsets = [7, 0], sizes = [18, 2], strides = [1, 1]} : vector<32x2xf32> to vector<18x2xf32>
      %182 = vector.broadcast %180 : f32 to vector<18x2xf32>
      %183 = arith.mulf %181, %182 : vector<18x2xf32>
      %184 = arith.addf %179, %183 : vector<18x2xf32>
      %c25 = arith.constant 25 : index
      %185 = memref.load %arg2[%c25] : memref<98xf32, #tpu.memory_space<smem>>
      %186 = vector.extract_strided_slice %164 {offsets = [8, 0], sizes = [18, 2], strides = [1, 1]} : vector<32x2xf32> to vector<18x2xf32>
      %187 = vector.broadcast %185 : f32 to vector<18x2xf32>
      %188 = arith.mulf %186, %187 : vector<18x2xf32>
      %189 = arith.addf %184, %188 : vector<18x2xf32>
      %c26 = arith.constant 26 : index
      %190 = memref.load %arg2[%c26] : memref<98xf32, #tpu.memory_space<smem>>
      %191 = vector.extract_strided_slice %164 {offsets = [9, 0], sizes = [18, 2], strides = [1, 1]} : vector<32x2xf32> to vector<18x2xf32>
      %192 = vector.broadcast %190 : f32 to vector<18x2xf32>
      %193 = arith.mulf %191, %192 : vector<18x2xf32>
      %194 = arith.addf %189, %193 : vector<18x2xf32>
      %c27 = arith.constant 27 : index
      %195 = memref.load %arg2[%c27] : memref<98xf32, #tpu.memory_space<smem>>
      %196 = vector.extract_strided_slice %164 {offsets = [10, 0], sizes = [18, 2], strides = [1, 1]} : vector<32x2xf32> to vector<18x2xf32>
      %197 = vector.broadcast %195 : f32 to vector<18x2xf32>
      %198 = arith.mulf %196, %197 : vector<18x2xf32>
      %199 = arith.addf %194, %198 : vector<18x2xf32>
      %c4_i32 = arith.constant 4 : i32
      %200 = arith.addi %42, %c4_i32 : i32
      %c0_68 = arith.constant 0 : index
      %201 = arith.index_cast %200 : i32 to index
      %c0_69 = arith.constant 0 : index
      %c0_70 = arith.constant 0 : index
      %202 = vector.load %arg5[%c0_68, %201, %c0_69, %c0_70] : memref<2x24x32x2xf32, #tpu.memory_space<vmem>>, vector<1x1x32x2xf32>
      %203 = vector.shape_cast %202 : vector<1x1x32x2xf32> to vector<32x2xf32>
      %c28 = arith.constant 28 : index
      %204 = memref.load %arg2[%c28] : memref<98xf32, #tpu.memory_space<smem>>
      %205 = vector.extract_strided_slice %203 {offsets = [4, 0], sizes = [18, 2], strides = [1, 1]} : vector<32x2xf32> to vector<18x2xf32>
      %206 = vector.broadcast %204 : f32 to vector<18x2xf32>
      %207 = arith.mulf %205, %206 : vector<18x2xf32>
      %208 = arith.addf %199, %207 : vector<18x2xf32>
      %c29 = arith.constant 29 : index
      %209 = memref.load %arg2[%c29] : memref<98xf32, #tpu.memory_space<smem>>
      %210 = vector.extract_strided_slice %203 {offsets = [5, 0], sizes = [18, 2], strides = [1, 1]} : vector<32x2xf32> to vector<18x2xf32>
      %211 = vector.broadcast %209 : f32 to vector<18x2xf32>
      %212 = arith.mulf %210, %211 : vector<18x2xf32>
      %213 = arith.addf %208, %212 : vector<18x2xf32>
      %c30 = arith.constant 30 : index
      %214 = memref.load %arg2[%c30] : memref<98xf32, #tpu.memory_space<smem>>
      %215 = vector.extract_strided_slice %203 {offsets = [6, 0], sizes = [18, 2], strides = [1, 1]} : vector<32x2xf32> to vector<18x2xf32>
      %216 = vector.broadcast %214 : f32 to vector<18x2xf32>
      %217 = arith.mulf %215, %216 : vector<18x2xf32>
      %218 = arith.addf %213, %217 : vector<18x2xf32>
      %c31 = arith.constant 31 : index
      %219 = memref.load %arg2[%c31] : memref<98xf32, #tpu.memory_space<smem>>
      %220 = vector.extract_strided_slice %203 {offsets = [7, 0], sizes = [18, 2], strides = [1, 1]} : vector<32x2xf32> to vector<18x2xf32>
      %221 = vector.broadcast %219 : f32 to vector<18x2xf32>
      %222 = arith.mulf %220, %221 : vector<18x2xf32>
      %223 = arith.addf %218, %222 : vector<18x2xf32>
      %c32 = arith.constant 32 : index
      %224 = memref.load %arg2[%c32] : memref<98xf32, #tpu.memory_space<smem>>
      %225 = vector.extract_strided_slice %203 {offsets = [8, 0], sizes = [18, 2], strides = [1, 1]} : vector<32x2xf32> to vector<18x2xf32>
      %226 = vector.broadcast %224 : f32 to vector<18x2xf32>
      %227 = arith.mulf %225, %226 : vector<18x2xf32>
      %228 = arith.addf %223, %227 : vector<18x2xf32>
      %c33 = arith.constant 33 : index
      %229 = memref.load %arg2[%c33] : memref<98xf32, #tpu.memory_space<smem>>
      %230 = vector.extract_strided_slice %203 {offsets = [9, 0], sizes = [18, 2], strides = [1, 1]} : vector<32x2xf32> to vector<18x2xf32>
      %231 = vector.broadcast %229 : f32 to vector<18x2xf32>
      %232 = arith.mulf %230, %231 : vector<18x2xf32>
      %233 = arith.addf %228, %232 : vector<18x2xf32>
      %c34 = arith.constant 34 : index
      %234 = memref.load %arg2[%c34] : memref<98xf32, #tpu.memory_space<smem>>
      %235 = vector.extract_strided_slice %203 {offsets = [10, 0], sizes = [18, 2], strides = [1, 1]} : vector<32x2xf32> to vector<18x2xf32>
      %236 = vector.broadcast %234 : f32 to vector<18x2xf32>
      %237 = arith.mulf %235, %236 : vector<18x2xf32>
      %238 = arith.addf %233, %237 : vector<18x2xf32>
      %c5_i32 = arith.constant 5 : i32
      %239 = arith.addi %42, %c5_i32 : i32
      %c0_71 = arith.constant 0 : index
      %240 = arith.index_cast %239 : i32 to index
      %c0_72 = arith.constant 0 : index
      %c0_73 = arith.constant 0 : index
      %241 = vector.load %arg5[%c0_71, %240, %c0_72, %c0_73] : memref<2x24x32x2xf32, #tpu.memory_space<vmem>>, vector<1x1x32x2xf32>
      %242 = vector.shape_cast %241 : vector<1x1x32x2xf32> to vector<32x2xf32>
      %c35 = arith.constant 35 : index
      %243 = memref.load %arg2[%c35] : memref<98xf32, #tpu.memory_space<smem>>
      %244 = vector.extract_strided_slice %242 {offsets = [4, 0], sizes = [18, 2], strides = [1, 1]} : vector<32x2xf32> to vector<18x2xf32>
      %245 = vector.broadcast %243 : f32 to vector<18x2xf32>
      %246 = arith.mulf %244, %245 : vector<18x2xf32>
      %247 = arith.addf %238, %246 : vector<18x2xf32>
      %c36 = arith.constant 36 : index
      %248 = memref.load %arg2[%c36] : memref<98xf32, #tpu.memory_space<smem>>
      %249 = vector.extract_strided_slice %242 {offsets = [5, 0], sizes = [18, 2], strides = [1, 1]} : vector<32x2xf32> to vector<18x2xf32>
      %250 = vector.broadcast %248 : f32 to vector<18x2xf32>
      %251 = arith.mulf %249, %250 : vector<18x2xf32>
      %252 = arith.addf %247, %251 : vector<18x2xf32>
      %c37 = arith.constant 37 : index
      %253 = memref.load %arg2[%c37] : memref<98xf32, #tpu.memory_space<smem>>
      %254 = vector.extract_strided_slice %242 {offsets = [6, 0], sizes = [18, 2], strides = [1, 1]} : vector<32x2xf32> to vector<18x2xf32>
      %255 = vector.broadcast %253 : f32 to vector<18x2xf32>
      %256 = arith.mulf %254, %255 : vector<18x2xf32>
      %257 = arith.addf %252, %256 : vector<18x2xf32>
      %c38 = arith.constant 38 : index
      %258 = memref.load %arg2[%c38] : memref<98xf32, #tpu.memory_space<smem>>
      %259 = vector.extract_strided_slice %242 {offsets = [7, 0], sizes = [18, 2], strides = [1, 1]} : vector<32x2xf32> to vector<18x2xf32>
      %260 = vector.broadcast %258 : f32 to vector<18x2xf32>
      %261 = arith.mulf %259, %260 : vector<18x2xf32>
      %262 = arith.addf %257, %261 : vector<18x2xf32>
      %c39 = arith.constant 39 : index
      %263 = memref.load %arg2[%c39] : memref<98xf32, #tpu.memory_space<smem>>
      %264 = vector.extract_strided_slice %242 {offsets = [8, 0], sizes = [18, 2], strides = [1, 1]} : vector<32x2xf32> to vector<18x2xf32>
      %265 = vector.broadcast %263 : f32 to vector<18x2xf32>
      %266 = arith.mulf %264, %265 : vector<18x2xf32>
      %267 = arith.addf %262, %266 : vector<18x2xf32>
      %c40 = arith.constant 40 : index
      %268 = memref.load %arg2[%c40] : memref<98xf32, #tpu.memory_space<smem>>
      %269 = vector.extract_strided_slice %242 {offsets = [9, 0], sizes = [18, 2], strides = [1, 1]} : vector<32x2xf32> to vector<18x2xf32>
      %270 = vector.broadcast %268 : f32 to vector<18x2xf32>
      %271 = arith.mulf %269, %270 : vector<18x2xf32>
      %272 = arith.addf %267, %271 : vector<18x2xf32>
      %c41 = arith.constant 41 : index
      %273 = memref.load %arg2[%c41] : memref<98xf32, #tpu.memory_space<smem>>
      %274 = vector.extract_strided_slice %242 {offsets = [10, 0], sizes = [18, 2], strides = [1, 1]} : vector<32x2xf32> to vector<18x2xf32>
      %275 = vector.broadcast %273 : f32 to vector<18x2xf32>
      %276 = arith.mulf %274, %275 : vector<18x2xf32>
      %277 = arith.addf %272, %276 : vector<18x2xf32>
      %c6_i32 = arith.constant 6 : i32
      %278 = arith.addi %42, %c6_i32 : i32
      %c0_74 = arith.constant 0 : index
      %279 = arith.index_cast %278 : i32 to index
      %c0_75 = arith.constant 0 : index
      %c0_76 = arith.constant 0 : index
      %280 = vector.load %arg5[%c0_74, %279, %c0_75, %c0_76] : memref<2x24x32x2xf32, #tpu.memory_space<vmem>>, vector<1x1x32x2xf32>
      %281 = vector.shape_cast %280 : vector<1x1x32x2xf32> to vector<32x2xf32>
      %c42 = arith.constant 42 : index
      %282 = memref.load %arg2[%c42] : memref<98xf32, #tpu.memory_space<smem>>
      %283 = vector.extract_strided_slice %281 {offsets = [4, 0], sizes = [18, 2], strides = [1, 1]} : vector<32x2xf32> to vector<18x2xf32>
      %284 = vector.broadcast %282 : f32 to vector<18x2xf32>
      %285 = arith.mulf %283, %284 : vector<18x2xf32>
      %286 = arith.addf %277, %285 : vector<18x2xf32>
      %c43 = arith.constant 43 : index
      %287 = memref.load %arg2[%c43] : memref<98xf32, #tpu.memory_space<smem>>
      %288 = vector.extract_strided_slice %281 {offsets = [5, 0], sizes = [18, 2], strides = [1, 1]} : vector<32x2xf32> to vector<18x2xf32>
      %289 = vector.broadcast %287 : f32 to vector<18x2xf32>
      %290 = arith.mulf %288, %289 : vector<18x2xf32>
      %291 = arith.addf %286, %290 : vector<18x2xf32>
      %c44 = arith.constant 44 : index
      %292 = memref.load %arg2[%c44] : memref<98xf32, #tpu.memory_space<smem>>
      %293 = vector.extract_strided_slice %281 {offsets = [6, 0], sizes = [18, 2], strides = [1, 1]} : vector<32x2xf32> to vector<18x2xf32>
      %294 = vector.broadcast %292 : f32 to vector<18x2xf32>
      %295 = arith.mulf %293, %294 : vector<18x2xf32>
      %296 = arith.addf %291, %295 : vector<18x2xf32>
      %c45 = arith.constant 45 : index
      %297 = memref.load %arg2[%c45] : memref<98xf32, #tpu.memory_space<smem>>
      %298 = vector.extract_strided_slice %281 {offsets = [7, 0], sizes = [18, 2], strides = [1, 1]} : vector<32x2xf32> to vector<18x2xf32>
      %299 = vector.broadcast %297 : f32 to vector<18x2xf32>
      %300 = arith.mulf %298, %299 : vector<18x2xf32>
      %301 = arith.addf %296, %300 : vector<18x2xf32>
      %c46 = arith.constant 46 : index
      %302 = memref.load %arg2[%c46] : memref<98xf32, #tpu.memory_space<smem>>
      %303 = vector.extract_strided_slice %281 {offsets = [8, 0], sizes = [18, 2], strides = [1, 1]} : vector<32x2xf32> to vector<18x2xf32>
      %304 = vector.broadcast %302 : f32 to vector<18x2xf32>
      %305 = arith.mulf %303, %304 : vector<18x2xf32>
      %306 = arith.addf %301, %305 : vector<18x2xf32>
      %c47 = arith.constant 47 : index
      %307 = memref.load %arg2[%c47] : memref<98xf32, #tpu.memory_space<smem>>
      %308 = vector.extract_strided_slice %281 {offsets = [9, 0], sizes = [18, 2], strides = [1, 1]} : vector<32x2xf32> to vector<18x2xf32>
      %309 = vector.broadcast %307 : f32 to vector<18x2xf32>
      %310 = arith.mulf %308, %309 : vector<18x2xf32>
      %311 = arith.addf %306, %310 : vector<18x2xf32>
      %c48 = arith.constant 48 : index
      %312 = memref.load %arg2[%c48] : memref<98xf32, #tpu.memory_space<smem>>
      %313 = vector.extract_strided_slice %281 {offsets = [10, 0], sizes = [18, 2], strides = [1, 1]} : vector<32x2xf32> to vector<18x2xf32>
      %314 = vector.broadcast %312 : f32 to vector<18x2xf32>
      %315 = arith.mulf %313, %314 : vector<18x2xf32>
      %316 = arith.addf %311, %315 : vector<18x2xf32>
      %c0_i32_77 = arith.constant 0 : i32
      %317 = arith.addi %42, %c0_i32_77 : i32
      %c1_78 = arith.constant 1 : index
      %318 = arith.index_cast %317 : i32 to index
      %c0_79 = arith.constant 0 : index
      %c0_80 = arith.constant 0 : index
      %319 = vector.load %arg5[%c1_78, %318, %c0_79, %c0_80] : memref<2x24x32x2xf32, #tpu.memory_space<vmem>>, vector<1x1x32x2xf32>
      %320 = vector.shape_cast %319 : vector<1x1x32x2xf32> to vector<32x2xf32>
      %c49 = arith.constant 49 : index
      %321 = memref.load %arg2[%c49] : memref<98xf32, #tpu.memory_space<smem>>
      %322 = vector.extract_strided_slice %320 {offsets = [4, 0], sizes = [18, 2], strides = [1, 1]} : vector<32x2xf32> to vector<18x2xf32>
      %323 = vector.broadcast %321 : f32 to vector<18x2xf32>
      %324 = arith.mulf %322, %323 : vector<18x2xf32>
      %325 = arith.addf %316, %324 : vector<18x2xf32>
      %c50 = arith.constant 50 : index
      %326 = memref.load %arg2[%c50] : memref<98xf32, #tpu.memory_space<smem>>
      %327 = vector.extract_strided_slice %320 {offsets = [5, 0], sizes = [18, 2], strides = [1, 1]} : vector<32x2xf32> to vector<18x2xf32>
      %328 = vector.broadcast %326 : f32 to vector<18x2xf32>
      %329 = arith.mulf %327, %328 : vector<18x2xf32>
      %330 = arith.addf %325, %329 : vector<18x2xf32>
      %c51 = arith.constant 51 : index
      %331 = memref.load %arg2[%c51] : memref<98xf32, #tpu.memory_space<smem>>
      %332 = vector.extract_strided_slice %320 {offsets = [6, 0], sizes = [18, 2], strides = [1, 1]} : vector<32x2xf32> to vector<18x2xf32>
      %333 = vector.broadcast %331 : f32 to vector<18x2xf32>
      %334 = arith.mulf %332, %333 : vector<18x2xf32>
      %335 = arith.addf %330, %334 : vector<18x2xf32>
      %c52 = arith.constant 52 : index
      %336 = memref.load %arg2[%c52] : memref<98xf32, #tpu.memory_space<smem>>
      %337 = vector.extract_strided_slice %320 {offsets = [7, 0], sizes = [18, 2], strides = [1, 1]} : vector<32x2xf32> to vector<18x2xf32>
      %338 = vector.broadcast %336 : f32 to vector<18x2xf32>
      %339 = arith.mulf %337, %338 : vector<18x2xf32>
      %340 = arith.addf %335, %339 : vector<18x2xf32>
      %c53 = arith.constant 53 : index
      %341 = memref.load %arg2[%c53] : memref<98xf32, #tpu.memory_space<smem>>
      %342 = vector.extract_strided_slice %320 {offsets = [8, 0], sizes = [18, 2], strides = [1, 1]} : vector<32x2xf32> to vector<18x2xf32>
      %343 = vector.broadcast %341 : f32 to vector<18x2xf32>
      %344 = arith.mulf %342, %343 : vector<18x2xf32>
      %345 = arith.addf %340, %344 : vector<18x2xf32>
      %c54 = arith.constant 54 : index
      %346 = memref.load %arg2[%c54] : memref<98xf32, #tpu.memory_space<smem>>
      %347 = vector.extract_strided_slice %320 {offsets = [9, 0], sizes = [18, 2], strides = [1, 1]} : vector<32x2xf32> to vector<18x2xf32>
      %348 = vector.broadcast %346 : f32 to vector<18x2xf32>
      %349 = arith.mulf %347, %348 : vector<18x2xf32>
      %350 = arith.addf %345, %349 : vector<18x2xf32>
      %c55 = arith.constant 55 : index
      %351 = memref.load %arg2[%c55] : memref<98xf32, #tpu.memory_space<smem>>
      %352 = vector.extract_strided_slice %320 {offsets = [10, 0], sizes = [18, 2], strides = [1, 1]} : vector<32x2xf32> to vector<18x2xf32>
      %353 = vector.broadcast %351 : f32 to vector<18x2xf32>
      %354 = arith.mulf %352, %353 : vector<18x2xf32>
      %355 = arith.addf %350, %354 : vector<18x2xf32>
      %c1_i32_81 = arith.constant 1 : i32
      %356 = arith.addi %42, %c1_i32_81 : i32
      %c1_82 = arith.constant 1 : index
      %357 = arith.index_cast %356 : i32 to index
      %c0_83 = arith.constant 0 : index
      %c0_84 = arith.constant 0 : index
      %358 = vector.load %arg5[%c1_82, %357, %c0_83, %c0_84] : memref<2x24x32x2xf32, #tpu.memory_space<vmem>>, vector<1x1x32x2xf32>
      %359 = vector.shape_cast %358 : vector<1x1x32x2xf32> to vector<32x2xf32>
      %c56 = arith.constant 56 : index
      %360 = memref.load %arg2[%c56] : memref<98xf32, #tpu.memory_space<smem>>
      %361 = vector.extract_strided_slice %359 {offsets = [4, 0], sizes = [18, 2], strides = [1, 1]} : vector<32x2xf32> to vector<18x2xf32>
      %362 = vector.broadcast %360 : f32 to vector<18x2xf32>
      %363 = arith.mulf %361, %362 : vector<18x2xf32>
      %364 = arith.addf %355, %363 : vector<18x2xf32>
      %c57 = arith.constant 57 : index
      %365 = memref.load %arg2[%c57] : memref<98xf32, #tpu.memory_space<smem>>
      %366 = vector.extract_strided_slice %359 {offsets = [5, 0], sizes = [18, 2], strides = [1, 1]} : vector<32x2xf32> to vector<18x2xf32>
      %367 = vector.broadcast %365 : f32 to vector<18x2xf32>
      %368 = arith.mulf %366, %367 : vector<18x2xf32>
      %369 = arith.addf %364, %368 : vector<18x2xf32>
      %c58 = arith.constant 58 : index
      %370 = memref.load %arg2[%c58] : memref<98xf32, #tpu.memory_space<smem>>
      %371 = vector.extract_strided_slice %359 {offsets = [6, 0], sizes = [18, 2], strides = [1, 1]} : vector<32x2xf32> to vector<18x2xf32>
      %372 = vector.broadcast %370 : f32 to vector<18x2xf32>
      %373 = arith.mulf %371, %372 : vector<18x2xf32>
      %374 = arith.addf %369, %373 : vector<18x2xf32>
      %c59 = arith.constant 59 : index
      %375 = memref.load %arg2[%c59] : memref<98xf32, #tpu.memory_space<smem>>
      %376 = vector.extract_strided_slice %359 {offsets = [7, 0], sizes = [18, 2], strides = [1, 1]} : vector<32x2xf32> to vector<18x2xf32>
      %377 = vector.broadcast %375 : f32 to vector<18x2xf32>
      %378 = arith.mulf %376, %377 : vector<18x2xf32>
      %379 = arith.addf %374, %378 : vector<18x2xf32>
      %c60 = arith.constant 60 : index
      %380 = memref.load %arg2[%c60] : memref<98xf32, #tpu.memory_space<smem>>
      %381 = vector.extract_strided_slice %359 {offsets = [8, 0], sizes = [18, 2], strides = [1, 1]} : vector<32x2xf32> to vector<18x2xf32>
      %382 = vector.broadcast %380 : f32 to vector<18x2xf32>
      %383 = arith.mulf %381, %382 : vector<18x2xf32>
      %384 = arith.addf %379, %383 : vector<18x2xf32>
      %c61 = arith.constant 61 : index
      %385 = memref.load %arg2[%c61] : memref<98xf32, #tpu.memory_space<smem>>
      %386 = vector.extract_strided_slice %359 {offsets = [9, 0], sizes = [18, 2], strides = [1, 1]} : vector<32x2xf32> to vector<18x2xf32>
      %387 = vector.broadcast %385 : f32 to vector<18x2xf32>
      %388 = arith.mulf %386, %387 : vector<18x2xf32>
      %389 = arith.addf %384, %388 : vector<18x2xf32>
      %c62 = arith.constant 62 : index
      %390 = memref.load %arg2[%c62] : memref<98xf32, #tpu.memory_space<smem>>
      %391 = vector.extract_strided_slice %359 {offsets = [10, 0], sizes = [18, 2], strides = [1, 1]} : vector<32x2xf32> to vector<18x2xf32>
      %392 = vector.broadcast %390 : f32 to vector<18x2xf32>
      %393 = arith.mulf %391, %392 : vector<18x2xf32>
      %394 = arith.addf %389, %393 : vector<18x2xf32>
      %c2_i32_85 = arith.constant 2 : i32
      %395 = arith.addi %42, %c2_i32_85 : i32
      %c1_86 = arith.constant 1 : index
      %396 = arith.index_cast %395 : i32 to index
      %c0_87 = arith.constant 0 : index
      %c0_88 = arith.constant 0 : index
      %397 = vector.load %arg5[%c1_86, %396, %c0_87, %c0_88] : memref<2x24x32x2xf32, #tpu.memory_space<vmem>>, vector<1x1x32x2xf32>
      %398 = vector.shape_cast %397 : vector<1x1x32x2xf32> to vector<32x2xf32>
      %c63 = arith.constant 63 : index
      %399 = memref.load %arg2[%c63] : memref<98xf32, #tpu.memory_space<smem>>
      %400 = vector.extract_strided_slice %398 {offsets = [4, 0], sizes = [18, 2], strides = [1, 1]} : vector<32x2xf32> to vector<18x2xf32>
      %401 = vector.broadcast %399 : f32 to vector<18x2xf32>
      %402 = arith.mulf %400, %401 : vector<18x2xf32>
      %403 = arith.addf %394, %402 : vector<18x2xf32>
      %c64 = arith.constant 64 : index
      %404 = memref.load %arg2[%c64] : memref<98xf32, #tpu.memory_space<smem>>
      %405 = vector.extract_strided_slice %398 {offsets = [5, 0], sizes = [18, 2], strides = [1, 1]} : vector<32x2xf32> to vector<18x2xf32>
      %406 = vector.broadcast %404 : f32 to vector<18x2xf32>
      %407 = arith.mulf %405, %406 : vector<18x2xf32>
      %408 = arith.addf %403, %407 : vector<18x2xf32>
      %c65 = arith.constant 65 : index
      %409 = memref.load %arg2[%c65] : memref<98xf32, #tpu.memory_space<smem>>
      %410 = vector.extract_strided_slice %398 {offsets = [6, 0], sizes = [18, 2], strides = [1, 1]} : vector<32x2xf32> to vector<18x2xf32>
      %411 = vector.broadcast %409 : f32 to vector<18x2xf32>
      %412 = arith.mulf %410, %411 : vector<18x2xf32>
      %413 = arith.addf %408, %412 : vector<18x2xf32>
      %c66 = arith.constant 66 : index
      %414 = memref.load %arg2[%c66] : memref<98xf32, #tpu.memory_space<smem>>
      %415 = vector.extract_strided_slice %398 {offsets = [7, 0], sizes = [18, 2], strides = [1, 1]} : vector<32x2xf32> to vector<18x2xf32>
      %416 = vector.broadcast %414 : f32 to vector<18x2xf32>
      %417 = arith.mulf %415, %416 : vector<18x2xf32>
      %418 = arith.addf %413, %417 : vector<18x2xf32>
      %c67 = arith.constant 67 : index
      %419 = memref.load %arg2[%c67] : memref<98xf32, #tpu.memory_space<smem>>
      %420 = vector.extract_strided_slice %398 {offsets = [8, 0], sizes = [18, 2], strides = [1, 1]} : vector<32x2xf32> to vector<18x2xf32>
      %421 = vector.broadcast %419 : f32 to vector<18x2xf32>
      %422 = arith.mulf %420, %421 : vector<18x2xf32>
      %423 = arith.addf %418, %422 : vector<18x2xf32>
      %c68 = arith.constant 68 : index
      %424 = memref.load %arg2[%c68] : memref<98xf32, #tpu.memory_space<smem>>
      %425 = vector.extract_strided_slice %398 {offsets = [9, 0], sizes = [18, 2], strides = [1, 1]} : vector<32x2xf32> to vector<18x2xf32>
      %426 = vector.broadcast %424 : f32 to vector<18x2xf32>
      %427 = arith.mulf %425, %426 : vector<18x2xf32>
      %428 = arith.addf %423, %427 : vector<18x2xf32>
      %c69 = arith.constant 69 : index
      %429 = memref.load %arg2[%c69] : memref<98xf32, #tpu.memory_space<smem>>
      %430 = vector.extract_strided_slice %398 {offsets = [10, 0], sizes = [18, 2], strides = [1, 1]} : vector<32x2xf32> to vector<18x2xf32>
      %431 = vector.broadcast %429 : f32 to vector<18x2xf32>
      %432 = arith.mulf %430, %431 : vector<18x2xf32>
      %433 = arith.addf %428, %432 : vector<18x2xf32>
      %c3_i32_89 = arith.constant 3 : i32
      %434 = arith.addi %42, %c3_i32_89 : i32
      %c1_90 = arith.constant 1 : index
      %435 = arith.index_cast %434 : i32 to index
      %c0_91 = arith.constant 0 : index
      %c0_92 = arith.constant 0 : index
      %436 = vector.load %arg5[%c1_90, %435, %c0_91, %c0_92] : memref<2x24x32x2xf32, #tpu.memory_space<vmem>>, vector<1x1x32x2xf32>
      %437 = vector.shape_cast %436 : vector<1x1x32x2xf32> to vector<32x2xf32>
      %c70 = arith.constant 70 : index
      %438 = memref.load %arg2[%c70] : memref<98xf32, #tpu.memory_space<smem>>
      %439 = vector.extract_strided_slice %437 {offsets = [4, 0], sizes = [18, 2], strides = [1, 1]} : vector<32x2xf32> to vector<18x2xf32>
      %440 = vector.broadcast %438 : f32 to vector<18x2xf32>
      %441 = arith.mulf %439, %440 : vector<18x2xf32>
      %442 = arith.addf %433, %441 : vector<18x2xf32>
      %c71 = arith.constant 71 : index
      %443 = memref.load %arg2[%c71] : memref<98xf32, #tpu.memory_space<smem>>
      %444 = vector.extract_strided_slice %437 {offsets = [5, 0], sizes = [18, 2], strides = [1, 1]} : vector<32x2xf32> to vector<18x2xf32>
      %445 = vector.broadcast %443 : f32 to vector<18x2xf32>
      %446 = arith.mulf %444, %445 : vector<18x2xf32>
      %447 = arith.addf %442, %446 : vector<18x2xf32>
      %c72 = arith.constant 72 : index
      %448 = memref.load %arg2[%c72] : memref<98xf32, #tpu.memory_space<smem>>
      %449 = vector.extract_strided_slice %437 {offsets = [6, 0], sizes = [18, 2], strides = [1, 1]} : vector<32x2xf32> to vector<18x2xf32>
      %450 = vector.broadcast %448 : f32 to vector<18x2xf32>
      %451 = arith.mulf %449, %450 : vector<18x2xf32>
      %452 = arith.addf %447, %451 : vector<18x2xf32>
      %c73 = arith.constant 73 : index
      %453 = memref.load %arg2[%c73] : memref<98xf32, #tpu.memory_space<smem>>
      %454 = vector.extract_strided_slice %437 {offsets = [7, 0], sizes = [18, 2], strides = [1, 1]} : vector<32x2xf32> to vector<18x2xf32>
      %455 = vector.broadcast %453 : f32 to vector<18x2xf32>
      %456 = arith.mulf %454, %455 : vector<18x2xf32>
      %457 = arith.addf %452, %456 : vector<18x2xf32>
      %c74 = arith.constant 74 : index
      %458 = memref.load %arg2[%c74] : memref<98xf32, #tpu.memory_space<smem>>
      %459 = vector.extract_strided_slice %437 {offsets = [8, 0], sizes = [18, 2], strides = [1, 1]} : vector<32x2xf32> to vector<18x2xf32>
      %460 = vector.broadcast %458 : f32 to vector<18x2xf32>
      %461 = arith.mulf %459, %460 : vector<18x2xf32>
      %462 = arith.addf %457, %461 : vector<18x2xf32>
      %c75 = arith.constant 75 : index
      %463 = memref.load %arg2[%c75] : memref<98xf32, #tpu.memory_space<smem>>
      %464 = vector.extract_strided_slice %437 {offsets = [9, 0], sizes = [18, 2], strides = [1, 1]} : vector<32x2xf32> to vector<18x2xf32>
      %465 = vector.broadcast %463 : f32 to vector<18x2xf32>
      %466 = arith.mulf %464, %465 : vector<18x2xf32>
      %467 = arith.addf %462, %466 : vector<18x2xf32>
      %c76 = arith.constant 76 : index
      %468 = memref.load %arg2[%c76] : memref<98xf32, #tpu.memory_space<smem>>
      %469 = vector.extract_strided_slice %437 {offsets = [10, 0], sizes = [18, 2], strides = [1, 1]} : vector<32x2xf32> to vector<18x2xf32>
      %470 = vector.broadcast %468 : f32 to vector<18x2xf32>
      %471 = arith.mulf %469, %470 : vector<18x2xf32>
      %472 = arith.addf %467, %471 : vector<18x2xf32>
      %c4_i32_93 = arith.constant 4 : i32
      %473 = arith.addi %42, %c4_i32_93 : i32
      %c1_94 = arith.constant 1 : index
      %474 = arith.index_cast %473 : i32 to index
      %c0_95 = arith.constant 0 : index
      %c0_96 = arith.constant 0 : index
      %475 = vector.load %arg5[%c1_94, %474, %c0_95, %c0_96] : memref<2x24x32x2xf32, #tpu.memory_space<vmem>>, vector<1x1x32x2xf32>
      %476 = vector.shape_cast %475 : vector<1x1x32x2xf32> to vector<32x2xf32>
      %c77 = arith.constant 77 : index
      %477 = memref.load %arg2[%c77] : memref<98xf32, #tpu.memory_space<smem>>
      %478 = vector.extract_strided_slice %476 {offsets = [4, 0], sizes = [18, 2], strides = [1, 1]} : vector<32x2xf32> to vector<18x2xf32>
      %479 = vector.broadcast %477 : f32 to vector<18x2xf32>
      %480 = arith.mulf %478, %479 : vector<18x2xf32>
      %481 = arith.addf %472, %480 : vector<18x2xf32>
      %c78 = arith.constant 78 : index
      %482 = memref.load %arg2[%c78] : memref<98xf32, #tpu.memory_space<smem>>
      %483 = vector.extract_strided_slice %476 {offsets = [5, 0], sizes = [18, 2], strides = [1, 1]} : vector<32x2xf32> to vector<18x2xf32>
      %484 = vector.broadcast %482 : f32 to vector<18x2xf32>
      %485 = arith.mulf %483, %484 : vector<18x2xf32>
      %486 = arith.addf %481, %485 : vector<18x2xf32>
      %c79 = arith.constant 79 : index
      %487 = memref.load %arg2[%c79] : memref<98xf32, #tpu.memory_space<smem>>
      %488 = vector.extract_strided_slice %476 {offsets = [6, 0], sizes = [18, 2], strides = [1, 1]} : vector<32x2xf32> to vector<18x2xf32>
      %489 = vector.broadcast %487 : f32 to vector<18x2xf32>
      %490 = arith.mulf %488, %489 : vector<18x2xf32>
      %491 = arith.addf %486, %490 : vector<18x2xf32>
      %c80 = arith.constant 80 : index
      %492 = memref.load %arg2[%c80] : memref<98xf32, #tpu.memory_space<smem>>
      %493 = vector.extract_strided_slice %476 {offsets = [7, 0], sizes = [18, 2], strides = [1, 1]} : vector<32x2xf32> to vector<18x2xf32>
      %494 = vector.broadcast %492 : f32 to vector<18x2xf32>
      %495 = arith.mulf %493, %494 : vector<18x2xf32>
      %496 = arith.addf %491, %495 : vector<18x2xf32>
      %c81 = arith.constant 81 : index
      %497 = memref.load %arg2[%c81] : memref<98xf32, #tpu.memory_space<smem>>
      %498 = vector.extract_strided_slice %476 {offsets = [8, 0], sizes = [18, 2], strides = [1, 1]} : vector<32x2xf32> to vector<18x2xf32>
      %499 = vector.broadcast %497 : f32 to vector<18x2xf32>
      %500 = arith.mulf %498, %499 : vector<18x2xf32>
      %501 = arith.addf %496, %500 : vector<18x2xf32>
      %c82 = arith.constant 82 : index
      %502 = memref.load %arg2[%c82] : memref<98xf32, #tpu.memory_space<smem>>
      %503 = vector.extract_strided_slice %476 {offsets = [9, 0], sizes = [18, 2], strides = [1, 1]} : vector<32x2xf32> to vector<18x2xf32>
      %504 = vector.broadcast %502 : f32 to vector<18x2xf32>
      %505 = arith.mulf %503, %504 : vector<18x2xf32>
      %506 = arith.addf %501, %505 : vector<18x2xf32>
      %c83 = arith.constant 83 : index
      %507 = memref.load %arg2[%c83] : memref<98xf32, #tpu.memory_space<smem>>
      %508 = vector.extract_strided_slice %476 {offsets = [10, 0], sizes = [18, 2], strides = [1, 1]} : vector<32x2xf32> to vector<18x2xf32>
      %509 = vector.broadcast %507 : f32 to vector<18x2xf32>
      %510 = arith.mulf %508, %509 : vector<18x2xf32>
      %511 = arith.addf %506, %510 : vector<18x2xf32>
      %c5_i32_97 = arith.constant 5 : i32
      %512 = arith.addi %42, %c5_i32_97 : i32
      %c1_98 = arith.constant 1 : index
      %513 = arith.index_cast %512 : i32 to index
      %c0_99 = arith.constant 0 : index
      %c0_100 = arith.constant 0 : index
      %514 = vector.load %arg5[%c1_98, %513, %c0_99, %c0_100] : memref<2x24x32x2xf32, #tpu.memory_space<vmem>>, vector<1x1x32x2xf32>
      %515 = vector.shape_cast %514 : vector<1x1x32x2xf32> to vector<32x2xf32>
      %c84 = arith.constant 84 : index
      %516 = memref.load %arg2[%c84] : memref<98xf32, #tpu.memory_space<smem>>
      %517 = vector.extract_strided_slice %515 {offsets = [4, 0], sizes = [18, 2], strides = [1, 1]} : vector<32x2xf32> to vector<18x2xf32>
      %518 = vector.broadcast %516 : f32 to vector<18x2xf32>
      %519 = arith.mulf %517, %518 : vector<18x2xf32>
      %520 = arith.addf %511, %519 : vector<18x2xf32>
      %c85 = arith.constant 85 : index
      %521 = memref.load %arg2[%c85] : memref<98xf32, #tpu.memory_space<smem>>
      %522 = vector.extract_strided_slice %515 {offsets = [5, 0], sizes = [18, 2], strides = [1, 1]} : vector<32x2xf32> to vector<18x2xf32>
      %523 = vector.broadcast %521 : f32 to vector<18x2xf32>
      %524 = arith.mulf %522, %523 : vector<18x2xf32>
      %525 = arith.addf %520, %524 : vector<18x2xf32>
      %c86 = arith.constant 86 : index
      %526 = memref.load %arg2[%c86] : memref<98xf32, #tpu.memory_space<smem>>
      %527 = vector.extract_strided_slice %515 {offsets = [6, 0], sizes = [18, 2], strides = [1, 1]} : vector<32x2xf32> to vector<18x2xf32>
      %528 = vector.broadcast %526 : f32 to vector<18x2xf32>
      %529 = arith.mulf %527, %528 : vector<18x2xf32>
      %530 = arith.addf %525, %529 : vector<18x2xf32>
      %c87 = arith.constant 87 : index
      %531 = memref.load %arg2[%c87] : memref<98xf32, #tpu.memory_space<smem>>
      %532 = vector.extract_strided_slice %515 {offsets = [7, 0], sizes = [18, 2], strides = [1, 1]} : vector<32x2xf32> to vector<18x2xf32>
      %533 = vector.broadcast %531 : f32 to vector<18x2xf32>
      %534 = arith.mulf %532, %533 : vector<18x2xf32>
      %535 = arith.addf %530, %534 : vector<18x2xf32>
      %c88 = arith.constant 88 : index
      %536 = memref.load %arg2[%c88] : memref<98xf32, #tpu.memory_space<smem>>
      %537 = vector.extract_strided_slice %515 {offsets = [8, 0], sizes = [18, 2], strides = [1, 1]} : vector<32x2xf32> to vector<18x2xf32>
      %538 = vector.broadcast %536 : f32 to vector<18x2xf32>
      %539 = arith.mulf %537, %538 : vector<18x2xf32>
      %540 = arith.addf %535, %539 : vector<18x2xf32>
      %c89 = arith.constant 89 : index
      %541 = memref.load %arg2[%c89] : memref<98xf32, #tpu.memory_space<smem>>
      %542 = vector.extract_strided_slice %515 {offsets = [9, 0], sizes = [18, 2], strides = [1, 1]} : vector<32x2xf32> to vector<18x2xf32>
      %543 = vector.broadcast %541 : f32 to vector<18x2xf32>
      %544 = arith.mulf %542, %543 : vector<18x2xf32>
      %545 = arith.addf %540, %544 : vector<18x2xf32>
      %c90 = arith.constant 90 : index
      %546 = memref.load %arg2[%c90] : memref<98xf32, #tpu.memory_space<smem>>
      %547 = vector.extract_strided_slice %515 {offsets = [10, 0], sizes = [18, 2], strides = [1, 1]} : vector<32x2xf32> to vector<18x2xf32>
      %548 = vector.broadcast %546 : f32 to vector<18x2xf32>
      %549 = arith.mulf %547, %548 : vector<18x2xf32>
      %550 = arith.addf %545, %549 : vector<18x2xf32>
      %c6_i32_101 = arith.constant 6 : i32
      %551 = arith.addi %42, %c6_i32_101 : i32
      %c1_102 = arith.constant 1 : index
      %552 = arith.index_cast %551 : i32 to index
      %c0_103 = arith.constant 0 : index
      %c0_104 = arith.constant 0 : index
      %553 = vector.load %arg5[%c1_102, %552, %c0_103, %c0_104] : memref<2x24x32x2xf32, #tpu.memory_space<vmem>>, vector<1x1x32x2xf32>
      %554 = vector.shape_cast %553 : vector<1x1x32x2xf32> to vector<32x2xf32>
      %c91 = arith.constant 91 : index
      %555 = memref.load %arg2[%c91] : memref<98xf32, #tpu.memory_space<smem>>
      %556 = vector.extract_strided_slice %554 {offsets = [4, 0], sizes = [18, 2], strides = [1, 1]} : vector<32x2xf32> to vector<18x2xf32>
      %557 = vector.broadcast %555 : f32 to vector<18x2xf32>
      %558 = arith.mulf %556, %557 : vector<18x2xf32>
      %559 = arith.addf %550, %558 : vector<18x2xf32>
      %c92 = arith.constant 92 : index
      %560 = memref.load %arg2[%c92] : memref<98xf32, #tpu.memory_space<smem>>
      %561 = vector.extract_strided_slice %554 {offsets = [5, 0], sizes = [18, 2], strides = [1, 1]} : vector<32x2xf32> to vector<18x2xf32>
      %562 = vector.broadcast %560 : f32 to vector<18x2xf32>
      %563 = arith.mulf %561, %562 : vector<18x2xf32>
      %564 = arith.addf %559, %563 : vector<18x2xf32>
      %c93 = arith.constant 93 : index
      %565 = memref.load %arg2[%c93] : memref<98xf32, #tpu.memory_space<smem>>
      %566 = vector.extract_strided_slice %554 {offsets = [6, 0], sizes = [18, 2], strides = [1, 1]} : vector<32x2xf32> to vector<18x2xf32>
      %567 = vector.broadcast %565 : f32 to vector<18x2xf32>
      %568 = arith.mulf %566, %567 : vector<18x2xf32>
      %569 = arith.addf %564, %568 : vector<18x2xf32>
      %c94 = arith.constant 94 : index
      %570 = memref.load %arg2[%c94] : memref<98xf32, #tpu.memory_space<smem>>
      %571 = vector.extract_strided_slice %554 {offsets = [7, 0], sizes = [18, 2], strides = [1, 1]} : vector<32x2xf32> to vector<18x2xf32>
      %572 = vector.broadcast %570 : f32 to vector<18x2xf32>
      %573 = arith.mulf %571, %572 : vector<18x2xf32>
      %574 = arith.addf %569, %573 : vector<18x2xf32>
      %c95 = arith.constant 95 : index
      %575 = memref.load %arg2[%c95] : memref<98xf32, #tpu.memory_space<smem>>
      %576 = vector.extract_strided_slice %554 {offsets = [8, 0], sizes = [18, 2], strides = [1, 1]} : vector<32x2xf32> to vector<18x2xf32>
      %577 = vector.broadcast %575 : f32 to vector<18x2xf32>
      %578 = arith.mulf %576, %577 : vector<18x2xf32>
      %579 = arith.addf %574, %578 : vector<18x2xf32>
      %c96 = arith.constant 96 : index
      %580 = memref.load %arg2[%c96] : memref<98xf32, #tpu.memory_space<smem>>
      %581 = vector.extract_strided_slice %554 {offsets = [9, 0], sizes = [18, 2], strides = [1, 1]} : vector<32x2xf32> to vector<18x2xf32>
      %582 = vector.broadcast %580 : f32 to vector<18x2xf32>
      %583 = arith.mulf %581, %582 : vector<18x2xf32>
      %584 = arith.addf %579, %583 : vector<18x2xf32>
      %c97 = arith.constant 97 : index
      %585 = memref.load %arg2[%c97] : memref<98xf32, #tpu.memory_space<smem>>
      %586 = vector.extract_strided_slice %554 {offsets = [10, 0], sizes = [18, 2], strides = [1, 1]} : vector<32x2xf32> to vector<18x2xf32>
      %587 = vector.broadcast %585 : f32 to vector<18x2xf32>
      %588 = arith.mulf %586, %587 : vector<18x2xf32>
      %589 = arith.addf %584, %588 : vector<18x2xf32>
      %cst_105 = arith.constant 0.000000e+00 : f32
      %590 = vector.broadcast %cst_105 : f32 to vector<18x2xf32>
      %591 = arith.maximumf %589, %590 : vector<18x2xf32>
      %592 = arith.negf %591 : vector<18x2xf32>
      %593 = math.exp %592 : vector<18x2xf32>
      %cst_106 = arith.constant 1.000000e+00 : f32
      %594 = vector.broadcast %cst_106 : f32 to vector<18x2xf32>
      %595 = arith.addf %594, %593 : vector<18x2xf32>
      %596 = arith.divf %594, %595 : vector<18x2xf32>
      %c0_107 = arith.constant 0 : index
      %597 = arith.index_cast %41 : i32 to index
      %c0_108 = arith.constant 0 : index
      %c0_109 = arith.constant 0 : index
      %598 = vector.load %arg4[%c0_107, %597, %c0_108, %c0_109] : memref<1x9x18x2xf32, #tpu.memory_space<vmem>>, vector<1x1x18x2xf32>
      %599 = vector.shape_cast %598 : vector<1x1x18x2xf32> to vector<18x2xf32>
      %600 = vector.shape_cast %596 : vector<18x2xf32> to vector<1x1x18x2xf32>
      tpu.vector_store %arg4[%c0_107, %597, %c0_108, %c0_109], %600 {strides = array<i32>} : memref<1x9x18x2xf32, #tpu.memory_space<vmem>>, vector<1x1x18x2xf32>,
    }
    %c9_i32_44 = arith.constant 9 : i32
    return
  }
  func.func @transform_0(%arg0: i32, %arg1: i32) -> i32 {
    %c0_i32 = arith.constant 0 : i32
    %c0_i32_0 = arith.constant 0 : i32
    return %c0_i32 : i32
  }
  func.func @transform_1(%arg0: i32, %arg1: i32) -> (i32, i32, i32, i32) {
    %c0_i32 = arith.constant 0 : i32
    %c0_i32_0 = arith.constant 0 : i32
    %c0_i32_1 = arith.constant 0 : i32
    %c0_i32_2 = arith.constant 0 : i32
    return %c0_i32, %c0_i32_0, %c0_i32_1, %arg0 : i32, i32, i32, i32
  }
  func.func @transform_2(%arg0: i32, %arg1: i32) -> (i32, i32, i32, i32) {
    %c0_i32 = arith.constant 0 : i32
    %c0_i32_0 = arith.constant 0 : i32
    %c0_i32_1 = arith.constant 0 : i32
    return %c0_i32, %arg1, %c0_i32_0, %arg0 : i32, i32, i32, i32
  }
}

</mosaic_0001>

<bundles_post_ra>
// kernel: tpu_custom_call.1
= control target key start
LH: loop header
LB: loop body
LE: loop exit
PB: predicated region body
PF: predicated region fallthrough
CT: control target
= control target key end

     0   :  { %7 = vsyncpa [#allocation4], 0  ;;  %s3353_s9 = smov 0   ;;  %s3355_s10 = smov 0   ;;  %s5702_s0 = inlined_call_operand.vmem [shape: f32[98], index: 0, kind: input, shape index: {}]   ;;  %s5703_s1 = inlined_call_operand.vmem [shape: f32[4,16,16,2], index: 1, kind: input, shape index: {}]   ;;  %s5704_s2 = inlined_call_operand.vmem [shape: f32[1,18,18,2], index: 2, kind: output, shape index: {}]  }
   0x1   :  { %s3357_s11 = smov 0  }
   0x2 LB: > { %s3052_s12 = sadd.s32 4294967295, %s3330_s11   ;;  %s22_s13 = sadd.s32 1, %s3326_s10  ;;  %s3330_s11 = sphi %s3357_s11, %s13_s11   ;;  %s3326_s10 = sphi %s3355_s10, %s5954_s10   ;;  %s3322_s9 = sphi %s3353_s9, %s5953_s9  }
   0x3   : > { %p23_p0 = scmp.ge.s32.totalorder %s22_s13, 2  ;;  %p3054_p1 = scmp.ge.s32.totalorder %s3330_s11, 1 }
   0x4   : > { %p105_p2 = scmp.lt.s32.totalorder %s3330_s11, 3  ;;  %p3378_p4 = scmp.eq.s32.totalorder %s3052_s12, 0 }
   0x5   : > { %s5956_s13 = smov (%p23_p0, %s22_s13), 0  ;;  %s118_s18 = sshll.u32 %s5702_s0, 4  ;;  %s119_s18 = int_to_ptr.vmem [resolvable:$true] %s118_s18 }
   0x6   : > { %p3374_p3 = pnand %p3054_p1, %p105_p2  ;;  %s3285_s19 = scalar_lea.vmem %s119_s18, 16 }
   0x7   : > { %p3286_p7 = scmp.ne.s32.totalorder %s119_s18, %s3285_s19  ;;  %p3293_p11 = scmp.lt.s32.totalorder %s119_s18, %s119_s18 }
   0x8   : > { %p3233_p5 = pneg %p3374_p3  ;;  %p3294_p12 = scmp.lt.s32.totalorder %s3285_s19, %s3285_s19 }
   0xa   : > { %p3234_p6 = pnand %p3378_p4, %p3233_p5  ;;  %p3295_p13 = por %p3294_p12, %p3293_p11 }
   0xc   : > { %p3287_p8 = pneg %p3234_p6 }
   0xe   : > { %p3288_p9 = pnand %p3287_p8, %p3286_p7 }
  0x10   : > { %p3289_p10 = pneg %p3288_p9 }
  0x12   : > { %p3296_p0 = pnand %p3295_p13, %p3289_p10 }
  0x14   : > { %3299 = shalt.err (!%p3296_p0)
}
  0x15   : > { %s3336_s20 = smov [#allocation3]   ;;  %138 = sbr.rel (%p3374_p3) target bundleno = 547 (0x223), region = 28 }
  0x16   : > { %3236 = dma.vmem_to_smem (!%p3234_p6), %s119_s18, 16, %s3336_s20, [#allocation4]  }
  0x1c   : > { %3317 = dma.done.wait (%p3378_p4), [#allocation4], 16  }
  0x1d   : > { %3319 = vsyncadd (%p3378_p4), [#allocation4], 4294967280 }
  0x1e   : > { %144 = sfence }
  0x1f   : > { %s3396_s21 = smul.u32 9, %s3322_s9  ;;  %vm307_vm0 = vcmask 15360   ;;  %v3401_v0 = vld [vmem:[%s5703_s1] sm:$0xff]  ;;  %v3337_v3 = vmov 0.0   ;;  %v3678_v7 = vld [vmem:[%s5703_s1 + $0x8] sm:$0xff]  ;;  %v3714_v19 = vld [vmem:[%s5703_s1 + $0x10] sm:$0xff] }
  0x20   : > { %v3406_v1 = vld [vmem:[%s5703_s1 + $0x100] sm:$0xff]  ;;  %788 = vst.msk [vmem:[#allocation2] sm:$0xff] %vm307_vm0, %v3337_v3  ;;  %789 = vst.msk [vmem:[#allocation2 + $0x8] sm:$0xff] %vm307_vm0, %v3337_v3  ;;  %v308_v4 = vsel %vm307_vm0, %v3401_v0, -inf  ;;  %v3683_v8 = vld [vmem:[%s5703_s1 + $0x108] sm:$0xff]  ;;  %v315_v13 = vsel %vm307_vm0, %v3678_v7, -inf }
  0x21   : > { %v3411_v2 = vld [vmem:[%s5703_s1 + $0x200] sm:$0xff]  ;;  %790 = vst.msk [vmem:[#allocation2 + $0x10] sm:$0xff] %vm307_vm0, %v3337_v3  ;;  %791 = vst.msk [vmem:[#allocation2 + $0x18] sm:$0xff] %vm307_vm0, %v3337_v3  ;;  %v309_v5 = vsel %vm307_vm0, %v3406_v1, -inf  ;;  %p169_p1 = scmp.lt.s32.totalorder %s3396_s21, 17  ;;  %v3694_v11 = vld [vmem:[%s5703_s1 + $0x208] sm:$0xff] }
  0x22   : > { %792 = vst.msk [vmem:[#allocation2 + $0x20] sm:$0xff] %vm307_vm0, %v3337_v3  ;;  %793 = vst.msk [vmem:[#allocation2 + $0x28] sm:$0xff] %vm307_vm0, %v3337_v3  ;;  %v311_v6 = vsel %vm307_vm0, %v3411_v2, -inf  ;;  %v3689_v9 = vld [vmem:[%s5703_s1 + $0x300] sm:$0xff]  ;;  %v310_v10 = vmax.f32 %v308_v4, %v309_v5  ;;  %v3699_v12 = vld [vmem:[%s5703_s1 + $0x308] sm:$0xff]  ;;  %v316_v14 = vsel %vm307_vm0, %v3683_v8, -inf }
  0x23   : > { %794 = vst.msk [vmem:[#allocation2 + $0x30] sm:$0xff] %vm307_vm0, %v3337_v3  ;;  %795 = vst.msk [vmem:[#allocation2 + $0x38] sm:$0xff] %vm307_vm0, %v3337_v3  ;;  %v313_v15 = vsel %vm307_vm0, %v3689_v9, -inf  ;;  %v317_v16 = vmax.f32 %v315_v13, %v316_v14  ;;  %v318_v17 = vsel %vm307_vm0, %v3694_v11, -inf  ;;  %v320_v18 = vsel %vm307_vm0, %v3699_v12, -inf  ;;  %v3719_v20 = vld [vmem:[%s5703_s1 + $0x110] sm:$0xff] }
  0x24   : > { %796 = vst.msk [vmem:[#allocation2 + $0x40] sm:$0xff] %vm307_vm0, %v3337_v3  ;;  %797 = vst.msk [vmem:[#allocation2 + $0x48] sm:$0xff] %vm307_vm0, %v3337_v3  ;;  %v3724_v21 = vld [vmem:[%s5703_s1 + $0x210] sm:$0xff]  ;;  %s170_s19 = scalar_select %p169_p1, %s3396_s21, 17  ;;  %v312_v22 = vmax.f32 %v310_v10, %v311_v6  ;;  %v322_v23 = vsel %vm307_vm0, %v3714_v19, -inf  ;;  %v323_v24 = vsel %vm307_vm0, %v3719_v20, -inf }
  0x25   : > { %798 = vst.msk [vmem:[#allocation2 + $0x50] sm:$0xff] %vm307_vm0, %v3337_v3  ;;  %799 = vst.msk [vmem:[#allocation2 + $0x58] sm:$0xff] %vm307_vm0, %v3337_v3  ;;  %v325_v25 = vsel %vm307_vm0, %v3724_v21, -inf  ;;  %v3738_v26 = vld [vmem:[%s5703_s1 + $0x18] sm:$0xff]  ;;  %v319_v27 = vmax.f32 %v317_v16, %v318_v17  ;;  %v3743_v28 = vld [vmem:[%s5703_s1 + $0x310] sm:$0xff]  ;;  %v324_v29 = vmax.f32 %v322_v23, %v323_v24  ;;  %v3759_v33 = vsel %vm307_vm0, %v3401_v0, 0.0 }
  0x26   : > { %800 = vst.msk [vmem:[#allocation2 + $0x60] sm:$0xff] %vm307_vm0, %v3337_v3  ;;  %801 = vst.msk [vmem:[#allocation2 + $0x68] sm:$0xff] %vm307_vm0, %v3337_v3  ;;  %v3748_v30 = vld [vmem:[%s5703_s1 + $0x118] sm:$0xff]  ;;  %v329_v32 = vsel %vm307_vm0, %v3738_v26, -inf  ;;  %s3228_s29 = smul.u32 24, %s170_s19  ;;  %v314_v34 = vmax.f32 %v312_v22, %v313_v15  ;;  %v327_v35 = vsel %vm307_vm0, %v3743_v28, -inf }
  0x27   : > { %802 = vst.msk [vmem:[#allocation2 + $0x70] sm:$0xff] %vm307_vm0, %v3337_v3  ;;  %803 = vst.msk [vmem:[#allocation2 + $0x78] sm:$0xff] %vm307_vm0, %v3337_v3  ;;  %v3753_v31 = vld [vmem:[%s5703_s1 + $0x218] sm:$0xff]  ;;  %v330_v37 = vsel %vm307_vm0, %v3748_v30, -inf  ;;  %v3775_v39 = vld [vmem:[%s5703_s1 + $0x20] sm:$0xff]  ;;  %v321_v40 = vmax.f32 %v319_v27, %v320_v18  ;;  %v326_v41 = vmax.f32 %v324_v29, %v325_v25  ;;  %s4882_s28 = smov 0  }
  0x28   : > { %805 = vst.msk [vmem:[#allocation2 + $0x280] sm:$0xff] %vm307_vm0, %v3337_v3  ;;  %806 = vst.msk [vmem:[#allocation2 + $0x288] sm:$0xff] %vm307_vm0, %v3337_v3  ;;  %v3766_v36 = vld [vmem:[%s5703_s1 + $0x318] sm:$0xff]  ;;  %v332_v38 = vsel %vm307_vm0, %v3753_v31, -inf  ;;  %v331_v42 = vmax.f32 %v329_v32, %v330_v37  ;;  %v3780_v43 = vld [vmem:[%s5703_s1 + $0x120] sm:$0xff]  ;;  %v336_v46 = vsel %vm307_vm0, %v3775_v39, -inf  ;;  %s3797_s17 = scalar_lea.vmem %s5704_s2, %s3228_s29 }
  0x29   : > { %807 = vst.msk [vmem:[#allocation2 + $0x290] sm:$0xff] %vm307_vm0, %v3337_v3  ;;  %808 = vst.msk [vmem:[#allocation2 + $0x298] sm:$0xff] %vm307_vm0, %v3337_v3  ;;  %v3785_v44 = vld [vmem:[%s5703_s1 + $0x220] sm:$0xff]  ;;  %v334_v47 = vsel %vm307_vm0, %v3766_v36, -inf  ;;  %v337_v48 = vsel %vm307_vm0, %v3780_v43, -inf  ;;  %v3811_v51 = vld [vmem:[%s5703_s1 + $0x28] sm:$0xff]  ;;  %v328_v53 = vmax.f32 %v326_v41, %v327_v35 }
  0x2a   : > { %809 = vst.msk [vmem:[#allocation2 + $0x2a0] sm:$0xff] %vm307_vm0, %v3337_v3  ;;  %810 = vst.msk [vmem:[#allocation2 + $0x2a8] sm:$0xff] %vm307_vm0, %v3337_v3  ;;  %v3790_v45 = vld [vmem:[%s5703_s1 + $0x320] sm:$0xff]  ;;  %v339_v49 = vsel %vm307_vm0, %v3785_v44, -inf  ;;  %v3816_v52 = vld [vmem:[%s5703_s1 + $0x128] sm:$0xff]  ;;  %v333_v54 = vmax.f32 %v331_v42, %v332_v38  ;;  %v338_v55 = vmax.f32 %v336_v46, %v337_v48  ;;  %v343_v58 = vsel %vm307_vm0, %v3811_v51, -inf }
  0x2b   : > { %811 = vst.msk [vmem:[#allocation2 + $0x2b0] sm:$0xff] %vm307_vm0, %v3337_v3  ;;  %812 = vst.msk [vmem:[#allocation2 + $0x2b8] sm:$0xff] %vm307_vm0, %v3337_v3  ;;  %v341_v50 = vsel %vm307_vm0, %v3790_v45, -inf  ;;  %v3822_v56 = vld [vmem:[%s5703_s1 + $0x228] sm:$0xff]  ;;  %v3834_v59 = vld [vmem:[%s5703_s1 + $0x30] sm:$0xff]  ;;  %v344_v60 = vsel %vm307_vm0, %v3816_v52, -inf }
  0x2c   : > { %813 = vst.msk [vmem:[#allocation2 + $0x2c0] sm:$0xff] %vm307_vm0, %v3337_v3  ;;  %814 = vst.msk [vmem:[#allocation2 + $0x2c8] sm:$0xff] %vm307_vm0, %v3337_v3  ;;  %v3827_v57 = vld [vmem:[%s5703_s1 + $0x328] sm:$0xff]  ;;  %v346_v61 = vsel %vm307_vm0, %v3822_v56, -inf  ;;  %v3845_v63 = vld [vmem:[%s5703_s1 + $0x130] sm:$0xff]  ;;  %v350_v0 = vsel %vm307_vm0, %v3834_v59, -inf  ;;  %v340_v4 = vmax.f32 %v338_v55, %v339_v49  ;;  %v345_v5 = vmax.f32 %v343_v58, %v344_v60 }
  0x2d   : > { %815 = vst.msk [vmem:[#allocation2 + $0x2d0] sm:$0xff] %vm307_vm0, %v3337_v3  ;;  %816 = vst.msk [vmem:[#allocation2 + $0x2d8] sm:$0xff] %vm307_vm0, %v3337_v3  ;;  %v348_v62 = vsel %vm307_vm0, %v3827_v57, -inf  ;;  %v3853_v6 = vld [vmem:[%s5703_s1 + $0x230] sm:$0xff]  ;;  %v351_v13 = vsel %vm307_vm0, %v3845_v63, -inf  ;;  %v3865_v14 = vld [vmem:[%s5703_s1 + $0x38] sm:$0xff] }
  0x2e   : > { %817 = vst.msk [vmem:[#allocation2 + $0x2e0] sm:$0xff] %vm307_vm0, %v3337_v3  ;;  %818 = vst.msk [vmem:[#allocation2 + $0x2e8] sm:$0xff] %vm307_vm0, %v3337_v3  ;;  %v3858_v10 = vld [vmem:[%s5703_s1 + $0x330] sm:$0xff]  ;;  %v352_v15 = vmax.f32 %v350_v0, %v351_v13  ;;  %v353_v16 = vsel %vm307_vm0, %v3853_v6, -inf  ;;  %v3874_v18 = vld [vmem:[%s5703_s1 + $0x138] sm:$0xff]  ;;  %v357_v23 = vsel %vm307_vm0, %v3865_v14, -inf  ;;  %v342_v24 = vmax.f32 %v340_v4, %v341_v50 }
  0x2f   : > { %819 = vst.msk [vmem:[#allocation2 + $0x2f0] sm:$0xff] %vm307_vm0, %v3337_v3  ;;  %820 = vst.msk [vmem:[#allocation2 + $0x2f8] sm:$0xff] %vm307_vm0, %v3337_v3  ;;  %v355_v17 = vsel %vm307_vm0, %v3858_v10, -inf  ;;  %v3879_v22 = vld [vmem:[%s5703_s1 + $0x238] sm:$0xff]  ;;  %v347_v25 = vmax.f32 %v345_v5, %v346_v61  ;;  %v358_v29 = vsel %vm307_vm0, %v3874_v18, -inf  ;;  %v3908_v41 = vld [vmem:[%s5703_s1 + $0x240] sm:$0xff] }
  0x30   : > { %822 = vst.msk [vmem:[#allocation2 + $0x80] sm:$0xff] %vm307_vm0, %v3337_v3  ;;  %823 = vst.msk [vmem:[#allocation2 + $0xa0] sm:$0xff] %vm307_vm0, %v3337_v3  ;;  %v3887_v27 = vld [vmem:[%s5703_s1 + $0x338] sm:$0xff]  ;;  %v360_v32 = vsel %vm307_vm0, %v3879_v22, -inf  ;;  %v354_v35 = vmax.f32 %v352_v15, %v353_v16  ;;  %v359_v37 = vmax.f32 %v357_v23, %v358_v29  ;;  %v3913_v42 = vld [vmem:[%s5703_s1 + $0x340] sm:$0xff]  ;;  %v367_v49 = vsel %vm307_vm0, %v3908_v41, -inf }
  0x31   : > { %824 = vst.msk [vmem:[#allocation2 + $0xc0] sm:$0xff] %vm307_vm0, %v3337_v3  ;;  %825 = vst.msk [vmem:[#allocation2 + $0xe0] sm:$0xff] %vm307_vm0, %v3337_v3  ;;  %v362_v38 = vsel %vm307_vm0, %v3887_v27, -inf  ;;  %v369_v50 = vsel %vm307_vm0, %v3913_v42, -inf  ;;  %v3937_v61 = vld [vmem:[%s5703_s1 + $0x248] sm:$0xff]  ;;  %v3961_v15 = vld [vmem:[%s5703_s1 + $0x150] sm:$0xff] }
  0x32   : > { %826 = vst.msk [vmem:[#allocation2 + $0x100] sm:$0xff] %vm307_vm0, %v3337_v3  ;;  %827 = vst.msk [vmem:[#allocation2 + $0x120] sm:$0xff] %vm307_vm0, %v3337_v3  ;;  %v356_v55 = vmax.f32 %v354_v35, %v355_v17  ;;  %v361_v58 = vmax.f32 %v359_v37, %v360_v32  ;;  %v374_v5 = vsel %vm307_vm0, %v3937_v61, -inf  ;;  %v3974_v29 = vld [vmem:[%s5703_s1 + $0x350] sm:$0xff]  ;;  %v379_v32 = vsel %vm307_vm0, %v3961_v15, -inf  ;;  %v3981_v35 = vld [vmem:[%s5703_s1 + $0x58] sm:$0xff] }
  0x33   : > { %828 = vst.msk [vmem:[#allocation2 + $0x140] sm:$0xff] %vm307_vm0, %v3337_v3  ;;  %829 = vst.msk [vmem:[#allocation2 + $0x160] sm:$0xff] %vm307_vm0, %v3337_v3 }
  0x34   : > { %830 = vst.msk [vmem:[#allocation2 + $0x180] sm:$0xff] %vm307_vm0, %v3337_v3  ;;  %831 = vst.msk [vmem:[#allocation2 + $0x1a0] sm:$0xff] %vm307_vm0, %v3337_v3  ;;  %v363_v17 = vmax.f32 %v361_v58, %v362_v38 }
  0x35   : > { %832 = vst.msk [vmem:[#allocation2 + $0x1c0] sm:$0xff] %vm307_vm0, %v3337_v3  ;;  %833 = vst.msk [vmem:[#allocation2 + $0x1e0] sm:$0xff] %vm307_vm0, %v3337_v3 }
  0x36   : > { %834 = vst.msk [vmem:[#allocation2 + $0x200] sm:$0xff] %vm307_vm0, %v3337_v3  ;;  %835 = vst.msk [vmem:[#allocation2 + $0x220] sm:$0xff] %vm307_vm0, %v3337_v3 }
  0x37   : > { %836 = vst.msk [vmem:[#allocation2 + $0x240] sm:$0xff] %vm307_vm0, %v3337_v3  ;;  %837 = vst.msk [vmem:[#allocation2 + $0x260] sm:$0xff] %vm307_vm0, %v3337_v3 }
  0x38   : > { %838 = vst.msk [vmem:[#allocation2 + $0x98] sm:$0xff] %vm307_vm0, %v3337_v3  ;;  %839 = vst.msk [vmem:[#allocation2 + $0xb8] sm:$0xff] %vm307_vm0, %v3337_v3 }
  0x39   : > { %840 = vst.msk [vmem:[#allocation2 + $0xd8] sm:$0xff] %vm307_vm0, %v3337_v3  ;;  %841 = vst.msk [vmem:[#allocation2 + $0xf8] sm:$0xff] %vm307_vm0, %v3337_v3 }
  0x3a   : > { %842 = vst.msk [vmem:[#allocation2 + $0x118] sm:$0xff] %vm307_vm0, %v3337_v3  ;;  %843 = vst.msk [vmem:[#allocation2 + $0x138] sm:$0xff] %vm307_vm0, %v3337_v3 }
  0x3b   : > { %844 = vst.msk [vmem:[#allocation2 + $0x158] sm:$0xff] %vm307_vm0, %v3337_v3  ;;  %845 = vst.msk [vmem:[#allocation2 + $0x178] sm:$0xff] %vm307_vm0, %v3337_v3 }
  0x3c   : > { %846 = vst.msk [vmem:[#allocation2 + $0x198] sm:$0xff] %vm307_vm0, %v3337_v3  ;;  %847 = vst.msk [vmem:[#allocation2 + $0x1b8] sm:$0xff] %vm307_vm0, %v3337_v3 }
  0x3d   : > { %848 = vst.msk [vmem:[#allocation2 + $0x1d8] sm:$0xff] %vm307_vm0, %v3337_v3  ;;  %849 = vst.msk [vmem:[#allocation2 + $0x1f8] sm:$0xff] %vm307_vm0, %v3337_v3 }
  0x3e   : > { %850 = vst.msk [vmem:[#allocation2 + $0x218] sm:$0xff] %vm307_vm0, %v3337_v3  ;;  %851 = vst.msk [vmem:[#allocation2 + $0x238] sm:$0xff] %vm307_vm0, %v3337_v3 }
  0x3f   : > { %852 = vst.msk [vmem:[#allocation2 + $0x258] sm:$0xff] %vm307_vm0, %v3337_v3  ;;  %853 = vst.msk [vmem:[#allocation2 + $0x278] sm:$0xff] %vm307_vm0, %v3337_v3 }
  0x40   : > { %855 = vst.msk [vmem:[#allocation2 + $0x300] sm:$0xff] %vm307_vm0, %v3337_v3  ;;  %856 = vst.msk [vmem:[#allocation2 + $0x308] sm:$0xff] %vm307_vm0, %v3337_v3 }
  0x41   : > { %857 = vst.msk [vmem:[#allocation2 + $0x310] sm:$0xff] %vm307_vm0, %v3337_v3  ;;  %858 = vst.msk [vmem:[#allocation2 + $0x318] sm:$0xff] %vm307_vm0, %v3337_v3 }
  0x42   : > { %859 = vst.msk [vmem:[#allocation2 + $0x320] sm:$0xff] %vm307_vm0, %v3337_v3  ;;  %860 = vst.msk [vmem:[#allocation2 + $0x328] sm:$0xff] %vm307_vm0, %v3337_v3 }
  0x43   : > { %861 = vst.msk [vmem:[#allocation2 + $0x330] sm:$0xff] %vm307_vm0, %v3337_v3  ;;  %862 = vst.msk [vmem:[#allocation2 + $0x338] sm:$0xff] %vm307_vm0, %v3337_v3 }
  0x44   : > { %863 = vst.msk [vmem:[#allocation2 + $0x340] sm:$0xff] %vm307_vm0, %v3337_v3  ;;  %864 = vst.msk [vmem:[#allocation2 + $0x348] sm:$0xff] %vm307_vm0, %v3337_v3 }
  0x45   : > { %865 = vst.msk [vmem:[#allocation2 + $0x350] sm:$0xff] %vm307_vm0, %v3337_v3  ;;  %866 = vst.msk [vmem:[#allocation2 + $0x358] sm:$0xff] %vm307_vm0, %v3337_v3 }
  0x46   : > { %867 = vst.msk [vmem:[#allocation2 + $0x360] sm:$0xff] %vm307_vm0, %v3337_v3  ;;  %868 = vst.msk [vmem:[#allocation2 + $0x368] sm:$0xff] %vm307_vm0, %v3337_v3 }
  0x47   : > { %869 = vst.msk [vmem:[#allocation2 + $0x370] sm:$0xff] %vm307_vm0, %v3337_v3  ;;  %870 = vst.msk [vmem:[#allocation2 + $0x378] sm:$0xff] %vm307_vm0, %v3337_v3 }
  0x48   : > { %872 = vst.msk [vmem:[#allocation2 + $0x580] sm:$0xff] %vm307_vm0, %v3337_v3  ;;  %873 = vst.msk [vmem:[#allocation2 + $0x588] sm:$0xff] %vm307_vm0, %v3337_v3 }
  0x49   : > { %874 = vst.msk [vmem:[#allocation2 + $0x590] sm:$0xff] %vm307_vm0, %v3337_v3  ;;  %875 = vst.msk [vmem:[#allocation2 + $0x598] sm:$0xff] %vm307_vm0, %v3337_v3 }
  0x4a   : > { %876 = vst.msk [vmem:[#allocation2 + $0x5a0] sm:$0xff] %vm307_vm0, %v3337_v3  ;;  %877 = vst.msk [vmem:[#allocation2 + $0x5a8] sm:$0xff] %vm307_vm0, %v3337_v3 }
  0x4b   : > { %878 = vst.msk [vmem:[#allocation2 + $0x5b0] sm:$0xff] %vm307_vm0, %v3337_v3  ;;  %879 = vst.msk [vmem:[#allocation2 + $0x5b8] sm:$0xff] %vm307_vm0, %v3337_v3 }
  0x4c   : > { %880 = vst.msk [vmem:[#allocation2 + $0x5c0] sm:$0xff] %vm307_vm0, %v3337_v3  ;;  %881 = vst.msk [vmem:[#allocation2 + $0x5c8] sm:$0xff] %vm307_vm0, %v3337_v3 }
  0x4d   : > { %882 = vst.msk [vmem:[#allocation2 + $0x5d0] sm:$0xff] %vm307_vm0, %v3337_v3  ;;  %883 = vst.msk [vmem:[#allocation2 + $0x5d8] sm:$0xff] %vm307_vm0, %v3337_v3 }
  0x4e   : > { %884 = vst.msk [vmem:[#allocation2 + $0x5e0] sm:$0xff] %vm307_vm0, %v3337_v3  ;;  %885 = vst.msk [vmem:[#allocation2 + $0x5e8] sm:$0xff] %vm307_vm0, %v3337_v3 }
  0x4f   : > { %886 = vst.msk [vmem:[#allocation2 + $0x5f0] sm:$0xff] %vm307_vm0, %v3337_v3  ;;  %887 = vst.msk [vmem:[#allocation2 + $0x5f8] sm:$0xff] %vm307_vm0, %v3337_v3 }
  0x50   : > { %889 = vst.msk [vmem:[#allocation2 + $0x380] sm:$0xff] %vm307_vm0, %v3337_v3  ;;  %890 = vst.msk [vmem:[#allocation2 + $0x3a0] sm:$0xff] %vm307_vm0, %v3337_v3 }
  0x51   : > { %891 = vst.msk [vmem:[#allocation2 + $0x3c0] sm:$0xff] %vm307_vm0, %v3337_v3  ;;  %892 = vst.msk [vmem:[#allocation2 + $0x3e0] sm:$0xff] %vm307_vm0, %v3337_v3 }
  0x52   : > { %893 = vst.msk [vmem:[#allocation2 + $0x400] sm:$0xff] %vm307_vm0, %v3337_v3  ;;  %894 = vst.msk [vmem:[#allocation2 + $0x420] sm:$0xff] %vm307_vm0, %v3337_v3 }
  0x53   : > { %895 = vst.msk [vmem:[#allocation2 + $0x440] sm:$0xff] %vm307_vm0, %v3337_v3  ;;  %896 = vst.msk [vmem:[#allocation2 + $0x460] sm:$0xff] %vm307_vm0, %v3337_v3 }
  0x54   : > { %897 = vst.msk [vmem:[#allocation2 + $0x480] sm:$0xff] %vm307_vm0, %v3337_v3  ;;  %898 = vst.msk [vmem:[#allocation2 + $0x4a0] sm:$0xff] %vm307_vm0, %v3337_v3 }
  0x55   : > { %899 = vst.msk [vmem:[#allocation2 + $0x4c0] sm:$0xff] %vm307_vm0, %v3337_v3  ;;  %900 = vst.msk [vmem:[#allocation2 + $0x4e0] sm:$0xff] %vm307_vm0, %v3337_v3 }
  0x56   : > { %901 = vst.msk [vmem:[#allocation2 + $0x500] sm:$0xff] %vm307_vm0, %v3337_v3  ;;  %902 = vst.msk [vmem:[#allocation2 + $0x520] sm:$0xff] %vm307_vm0, %v3337_v3 }
  0x57   : > { %903 = vst.msk [vmem:[#allocation2 + $0x540] sm:$0xff] %vm307_vm0, %v3337_v3  ;;  %904 = vst.msk [vmem:[#allocation2 + $0x560] sm:$0xff] %vm307_vm0, %v3337_v3 }
  0x58   : > { %905 = vst.msk [vmem:[#allocation2 + $0x398] sm:$0xff] %vm307_vm0, %v3337_v3  ;;  %906 = vst.msk [vmem:[#allocation2 + $0x3b8] sm:$0xff] %vm307_vm0, %v3337_v3 }
  0x59   : > { %907 = vst.msk [vmem:[#allocation2 + $0x3d8] sm:$0xff] %vm307_vm0, %v3337_v3  ;;  %908 = vst.msk [vmem:[#allocation2 + $0x3f8] sm:$0xff] %vm307_vm0, %v3337_v3 }
  0x5a   : > { %909 = vst.msk [vmem:[#allocation2 + $0x418] sm:$0xff] %vm307_vm0, %v3337_v3  ;;  %910 = vst.msk [vmem:[#allocation2 + $0x438] sm:$0xff] %vm307_vm0, %v3337_v3 }
  0x5b   : > { %911 = vst.msk [vmem:[#allocation2 + $0x458] sm:$0xff] %vm307_vm0, %v3337_v3  ;;  %912 = vst.msk [vmem:[#allocation2 + $0x478] sm:$0xff] %vm307_vm0, %v3337_v3 }
  0x5c   : > { %913 = vst.msk [vmem:[#allocation2 + $0x498] sm:$0xff] %vm307_vm0, %v3337_v3  ;;  %914 = vst.msk [vmem:[#allocation2 + $0x4b8] sm:$0xff] %vm307_vm0, %v3337_v3 }
  0x5d   : > { %915 = vst.msk [vmem:[#allocation2 + $0x4d8] sm:$0xff] %vm307_vm0, %v3337_v3  ;;  %916 = vst.msk [vmem:[#allocation2 + $0x4f8] sm:$0xff] %vm307_vm0, %v3337_v3 }
  0x5e   : > { %917 = vst.msk [vmem:[#allocation2 + $0x518] sm:$0xff] %vm307_vm0, %v3337_v3  ;;  %918 = vst.msk [vmem:[#allocation2 + $0x538] sm:$0xff] %vm307_vm0, %v3337_v3 }
  0x5f   : > { %919 = vst.msk [vmem:[#allocation2 + $0x558] sm:$0xff] %vm307_vm0, %v3337_v3  ;;  %920 = vst.msk [vmem:[#allocation2 + $0x578] sm:$0xff] %vm307_vm0, %v3337_v3  ;;  %v335_v3 = vmax.f32 %v333_v54, %v334_v47  ;;  %v349_v47 = vmax.f32 %v347_v25, %v348_v62  ;;  %v3932_v54 = vld [vmem:[%s5703_s1 + $0x148] sm:$0xff]  ;;  %v3969_v25 = vld [vmem:[%s5703_s1 + $0x250] sm:$0xff] }
  0x60   : > { %921 = vst.msk [vmem:[#allocation2 + $0x88] sm:$0xff] %vm307_vm0, %v314_v34  ;;  %922 = vst.msk [vmem:[#allocation2 + $0x90] sm:$0xff] %vm307_vm0, %v321_v40  ;;  %v3896_v34 = vld [vmem:[%s5703_s1 + $0x40] sm:$0xff]  ;;  %v3942_v62 = vld [vmem:[%s5703_s1 + $0x348] sm:$0xff]  ;;  %v372_v4 = vsel %vm307_vm0, %v3932_v54, -inf  ;;  %v381_v38 = vsel %vm307_vm0, %v3969_v25, -inf }
  0x61   : > { %923 = vst.msk [vmem:[#allocation2 + $0xa8] sm:$0xff] %vm307_vm0, %v328_v53  ;;  %924 = vst.msk [vmem:[#allocation2 + $0xb0] sm:$0xff] %vm307_vm0, %v335_v3  ;;  %v3903_v40 = vld [vmem:[%s5703_s1 + $0x140] sm:$0xff]  ;;  %v364_v46 = vsel %vm307_vm0, %v3896_v34, -inf  ;;  %v3927_v53 = vld [vmem:[%s5703_s1 + $0x48] sm:$0xff]  ;;  %v376_v13 = vsel %vm307_vm0, %v3942_v62, -inf }
  0x62   : > { %925 = vst.msk [vmem:[#allocation2 + $0xc8] sm:$0xff] %vm307_vm0, %v342_v24  ;;  %v365_v48 = vsel %vm307_vm0, %v3903_v40, -inf  ;;  %v371_v0 = vsel %vm307_vm0, %v3927_v53, -inf  ;;  %v3949_v3 = vld [vmem:[%s5703_s1 + $0x50] sm:$0xff]  ;;  %926 = vst.msk [vmem:[#allocation2 + $0xd0] sm:$0xff] %vm307_vm0, %v349_v47  ;;  %v3990_v47 = vld [vmem:[%s5703_s1 + $0x158] sm:$0xff] }
  0x63   : > { %v366_v60 = vmax.f32 %v364_v46, %v365_v48  ;;  %v378_v16 = vsel %vm307_vm0, %v3949_v3, -inf  ;;  %927 = vst.msk [vmem:[#allocation2 + $0xe8] sm:$0xff] %vm307_vm0, %v356_v55  ;;  %v373_v24 = vmax.f32 %v371_v0, %v372_v4  ;;  %5789 = vst [vmem:[#allocation6_spill] sm:$0xff] %v3981_v35  ;;  %v383_v46 = vsel %vm307_vm0, %v3974_v29, -inf  ;;  %v3995_v48 = vld [vmem:[%s5703_s1 + $0x258] sm:$0xff] }
  0x64   : > { %v380_v37 = vmax.f32 %v378_v16, %v379_v32  ;;  %5790 = vst [vmem:[#allocation7_spill] sm:$0xff] %v3990_v47  ;;  %5791 = vst [vmem:[#allocation8_spill] sm:$0xff] %v3995_v48  ;;  %v386_v0 = vsel %vm307_vm0, %v3990_v47, -inf  ;;  %v388_v4 = vsel %vm307_vm0, %v3995_v48, -inf  ;;  %v4012_v16 = vld [vmem:[%s5703_s1 + $0x60] sm:$0xff]  ;;  %v4043_v48 = vld [vmem:[%s5703_s1 + $0x68] sm:$0xff] }
  0x65   : > { %v368_v23 = vmax.f32 %v366_v60, %v367_v49  ;;  %v385_v49 = vsel %vm307_vm0, %v3981_v35, -inf  ;;  %928 = vst.msk [vmem:[#allocation2 + $0xf0] sm:$0xff] %vm307_vm0, %v363_v17  ;;  %v375_v58 = vmax.f32 %v373_v24, %v374_v5  ;;  %v4003_v60 = vld [vmem:[%s5703_s1 + $0x358] sm:$0xff]  ;;  %5793 = vst [vmem:[#allocation10_spill] sm:$0xff] %v4012_v16  ;;  %v4019_v5 = vld [vmem:[%s5703_s1 + $0x160] sm:$0xff] }
  0x66   : > { %5792 = vst [vmem:[#allocation9_spill] sm:$0xff] %v4003_v60  ;;  %v382_v32 = vmax.f32 %v380_v37, %v381_v38  ;;  %v387_v17 = vmax.f32 %v385_v49, %v386_v0  ;;  %5794 = vst [vmem:[#allocation11_spill] sm:$0xff] %v4019_v5  ;;  %v4029_v24 = vld [vmem:[%s5703_s1 + $0x360] sm:$0xff]  ;;  %v392_v37 = vsel %vm307_vm0, %v4012_v16, -inf  ;;  %v393_v49 = vsel %vm307_vm0, %v4019_v5, -inf  ;;  %v4048_v16 = vld [vmem:[%s5703_s1 + $0x168] sm:$0xff] }
  0x67   : > { %v370_v55 = vmax.f32 %v368_v23, %v369_v50  ;;  %v390_v50 = vsel %vm307_vm0, %v4003_v60, -inf  ;;  %v4024_v23 = vld [vmem:[%s5703_s1 + $0x260] sm:$0xff]  ;;  %5796 = vst [vmem:[#allocation13_spill] sm:$0xff] %v4029_v24  ;;  %v377_v38 = vmax.f32 %v375_v58, %v376_v13  ;;  %v397_v60 = vsel %vm307_vm0, %v4029_v24, -inf  ;;  %5797 = vst [vmem:[#allocation14_spill] sm:$0xff] %v4043_v48  ;;  %v4058_v24 = vld [vmem:[%s5703_s1 + $0x368] sm:$0xff] }
  0x68   : > { %5795 = vst [vmem:[#allocation12_spill] sm:$0xff] %v4024_v23  ;;  %v395_v0 = vsel %vm307_vm0, %v4024_v23, -inf  ;;  %5798 = vst [vmem:[#allocation15_spill] sm:$0xff] %v4048_v16  ;;  %v384_v13 = vmax.f32 %v382_v32, %v383_v46  ;;  %v394_v58 = vmax.f32 %v392_v37, %v393_v49  ;;  %v4053_v23 = vld [vmem:[%s5703_s1 + $0x268] sm:$0xff]  ;;  %v399_v5 = vsel %vm307_vm0, %v4043_v48, -inf  ;;  %v4065_v47 = vld [vmem:[%s5703_s1 + $0x70] sm:$0xff] }
  0x69   : > { %929 = vst.msk [vmem:[#allocation2 + $0x108] sm:$0xff] %vm307_vm0, %v370_v55  ;;  %v389_v55 = vmax.f32 %v387_v17, %v388_v4  ;;  %5799 = vst [vmem:[#allocation16_spill] sm:$0xff] %v4053_v23  ;;  %v400_v46 = vsel %vm307_vm0, %v4048_v16, -inf  ;;  %v402_v4 = vsel %vm307_vm0, %v4053_v23, -inf  ;;  %v404_v32 = vsel %vm307_vm0, %v4058_v24, -inf  ;;  %v4077_v17 = vld [vmem:[%s5703_s1 + $0x170] sm:$0xff] }
  0x6a   : > { %5800 = vst [vmem:[#allocation17_spill] sm:$0xff] %v4058_v24  ;;  %5801 = vst [vmem:[#allocation18_spill] sm:$0xff] %v4065_v47  ;;  %v406_v37 = vsel %vm307_vm0, %v4065_v47, -inf  ;;  %v396_v49 = vmax.f32 %v394_v58, %v395_v0  ;;  %v401_v48 = vmax.f32 %v399_v5, %v400_v46  ;;  %v4085_v23 = vld [vmem:[%s5703_s1 + $0x270] sm:$0xff]  ;;  %v407_v16 = vsel %vm307_vm0, %v4077_v17, -inf  ;;  %v4111_v58 = vld [vmem:[%s5703_s1 + $0x278] sm:$0xff] }
  0x6b   : > { %930 = vst.msk [vmem:[#allocation2 + $0x110] sm:$0xff] %vm307_vm0, %v377_v38  ;;  %5802 = vst [vmem:[#allocation19_spill] sm:$0xff] %v4077_v17  ;;  %v391_v38 = vmax.f32 %v389_v55, %v390_v50  ;;  %v4090_v24 = vld [vmem:[%s5703_s1 + $0x370] sm:$0xff]  ;;  %v408_v50 = vmax.f32 %v406_v37, %v407_v16  ;;  %v409_v5 = vsel %vm307_vm0, %v4085_v23, -inf  ;;  %v4106_v55 = vld [vmem:[%s5703_s1 + $0x178] sm:$0xff]  ;;  %v416_v17 = vsel %vm307_vm0, %v4111_v58, -inf }
  0x6c   : > { %931 = vst.msk [vmem:[#allocation2 + $0x128] sm:$0xff] %vm307_vm0, %v384_v13  ;;  %5803 = vst [vmem:[#allocation20_spill] sm:$0xff] %v4085_v23  ;;  %v4097_v13 = vld [vmem:[%s5703_s1 + $0x78] sm:$0xff]  ;;  %v411_v0 = vsel %vm307_vm0, %v4090_v24, -inf  ;;  %v398_v16 = vmax.f32 %v396_v49, %v397_v60  ;;  %v403_v37 = vmax.f32 %v401_v48, %v402_v4  ;;  %v414_v23 = vsel %vm307_vm0, %v4106_v55, -inf  ;;  %v4128_v47 = vld [vmem:[%s5703_s1 + $0x80] sm:$0xff] }
  0x6d   : > { %5804 = vst [vmem:[#allocation21_spill] sm:$0xff] %v4090_v24  ;;  %5805 = vst [vmem:[#allocation22_spill] sm:$0xff] %v4097_v13  ;;  %v413_v46 = vsel %vm307_vm0, %v4097_v13, -inf  ;;  %v4119_v24 = vld [vmem:[%s5703_s1 + $0x378] sm:$0xff]  ;;  %v410_v13 = vmax.f32 %v408_v50, %v409_v5  ;;  %v4135_v60 = vld [vmem:[%s5703_s1 + $0x180] sm:$0xff] }
  0x6e   : > { %5806 = vst [vmem:[#allocation23_spill] sm:$0xff] %v4106_v55  ;;  %5807 = vst [vmem:[#allocation24_spill] sm:$0xff] %v4111_v58  ;;  %v418_v48 = vsel %vm307_vm0, %v4119_v24, -inf  ;;  %v4140_v4 = vld [vmem:[%s5703_s1 + $0x280] sm:$0xff]  ;;  %v405_v50 = vmax.f32 %v403_v37, %v404_v32  ;;  %v421_v5 = vsel %vm307_vm0, %v4135_v60, -inf  ;;  %v4159_v58 = vld [vmem:[%s5703_s1 + $0x88] sm:$0xff] }
  0x6f   : > { %932 = vst.msk [vmem:[#allocation2 + $0x130] sm:$0xff] %vm307_vm0, %v391_v38  ;;  %5808 = vst [vmem:[#allocation25_spill] sm:$0xff] %v4119_v24  ;;  %v415_v38 = vmax.f32 %v413_v46, %v414_v23  ;;  %v4145_v49 = vld [vmem:[%s5703_s1 + $0x380] sm:$0xff]  ;;  %v420_v23 = vsel %vm307_vm0, %v4128_v47, -inf  ;;  %v423_v46 = vsel %vm307_vm0, %v4140_v4, -inf  ;;  %v412_v32 = vmax.f32 %v410_v13, %v411_v0  ;;  %v4181_v55 = vld [vmem:[%s5703_s1 + $0x90] sm:$0xff] }
  0x70   : > { %5809 = vst [vmem:[#allocation26_spill] sm:$0xff] %v4128_v47  ;;  %5810 = vst [vmem:[#allocation27_spill] sm:$0xff] %v4135_v60  ;;  %v425_v24 = vsel %vm307_vm0, %v4145_v49, -inf  ;;  %v4164_v47 = vld [vmem:[%s5703_s1 + $0x188] sm:$0xff]  ;;  %v422_v37 = vmax.f32 %v420_v23, %v421_v5  ;;  %v427_v60 = vsel %vm307_vm0, %v4159_v58, -inf  ;;  %v434_v23 = vsel %vm307_vm0, %v4181_v55, -inf }
  0x71   : > { %5811 = vst [vmem:[#allocation28_spill] sm:$0xff] %v4140_v4  ;;  %5812 = vst [vmem:[#allocation29_spill] sm:$0xff] %v4145_v49  ;;  %v4169_v4 = vld [vmem:[%s5703_s1 + $0x288] sm:$0xff] }
  0x72   : > { %933 = vst.msk [vmem:[#allocation2 + $0x148] sm:$0xff] %vm307_vm0, %v398_v16  ;;  %5813 = vst [vmem:[#allocation30_spill] sm:$0xff] %v4159_v58  ;;  %v417_v16 = vmax.f32 %v415_v38, %v416_v17  ;;  %v4174_v49 = vld [vmem:[%s5703_s1 + $0x388] sm:$0xff]  ;;  %v428_v17 = vsel %vm307_vm0, %v4164_v47, -inf  ;;  %v430_v13 = vsel %vm307_vm0, %v4169_v4, -inf  ;;  %v4193_v38 = vld [vmem:[%s5703_s1 + $0x190] sm:$0xff]  ;;  %v424_v5 = vmax.f32 %v422_v37, %v423_v46 }
  0x73   : > { %5814 = vst [vmem:[#allocation31_spill] sm:$0xff] %v4164_v47  ;;  %5815 = vst [vmem:[#allocation32_spill] sm:$0xff] %v4169_v4  ;;  %v432_v0 = vsel %vm307_vm0, %v4174_v49, -inf  ;;  %v429_v58 = vmax.f32 %v427_v60, %v428_v17  ;;  %v4201_v4 = vld [vmem:[%s5703_s1 + $0x290] sm:$0xff]  ;;  %v435_v47 = vsel %vm307_vm0, %v4193_v38, -inf  ;;  %v4227_v37 = vld [vmem:[%s5703_s1 + $0x298] sm:$0xff] }
  0x74   : > { %5816 = vst [vmem:[#allocation33_spill] sm:$0xff] %v4174_v49  ;;  %5817 = vst [vmem:[#allocation34_spill] sm:$0xff] %v4181_v55  ;;  %v4206_v49 = vld [vmem:[%s5703_s1 + $0x390] sm:$0xff]  ;;  %v437_v60 = vsel %vm307_vm0, %v4201_v4, -inf  ;;  %v4244_v55 = vld [vmem:[%s5703_s1 + $0xa0] sm:$0xff] }
  0x75   : > { %934 = vst.msk [vmem:[#allocation2 + $0x150] sm:$0xff] %vm307_vm0, %v405_v50  ;;  %5818 = vst [vmem:[#allocation35_spill] sm:$0xff] %v4193_v38  ;;  %v419_v50 = vmax.f32 %v417_v16, %v418_v48  ;;  %v436_v48 = vmax.f32 %v434_v23, %v435_v47  ;;  %v439_v46 = vsel %vm307_vm0, %v4206_v49, -inf  ;;  %v4222_v16 = vld [vmem:[%s5703_s1 + $0x198] sm:$0xff]  ;;  %v426_v47 = vmax.f32 %v424_v5, %v425_v24  ;;  %v4261_v5 = vld [vmem:[%s5703_s1 + $0x3a0] sm:$0xff] }
  0x76   : > { %935 = vst.msk [vmem:[#allocation2 + $0x168] sm:$0xff] %vm307_vm0, %v412_v32  ;;  %5819 = vst [vmem:[#allocation36_spill] sm:$0xff] %v4201_v4  ;;  %v4213_v32 = vld [vmem:[%s5703_s1 + $0x98] sm:$0xff]  ;;  %v431_v23 = vmax.f32 %v429_v58, %v430_v13  ;;  %v442_v4 = vsel %vm307_vm0, %v4222_v16, -inf  ;;  %v444_v38 = vsel %vm307_vm0, %v4227_v37, -inf  ;;  %v4251_v58 = vld [vmem:[%s5703_s1 + $0x1a0] sm:$0xff] }
  0x77   : > { %5820 = vst [vmem:[#allocation37_spill] sm:$0xff] %v4206_v49  ;;  %5821 = vst [vmem:[#allocation38_spill] sm:$0xff] %v4213_v32  ;;  %v441_v17 = vsel %vm307_vm0, %v4213_v32, -inf  ;;  %v4235_v49 = vld [vmem:[%s5703_s1 + $0x398] sm:$0xff]  ;;  %v438_v32 = vmax.f32 %v436_v48, %v437_v60  ;;  %v4256_v13 = vld [vmem:[%s5703_s1 + $0x2a0] sm:$0xff]  ;;  %v449_v60 = vsel %vm307_vm0, %v4251_v58, -inf }
  0x78   : > { %5822 = vst [vmem:[#allocation39_spill] sm:$0xff] %v4222_v16  ;;  %5823 = vst [vmem:[#allocation40_spill] sm:$0xff] %v4227_v37  ;;  %v446_v24 = vsel %vm307_vm0, %v4235_v49, -inf  ;;  %v433_v48 = vmax.f32 %v431_v23, %v432_v0  ;;  %v4275_v37 = vld [vmem:[%s5703_s1 + $0xa8] sm:$0xff]  ;;  %v4297_v16 = vld [vmem:[%s5703_s1 + $0xb0] sm:$0xff] }
  0x79   : > { %936 = vst.msk [vmem:[#allocation2 + $0x170] sm:$0xff] %vm307_vm0, %v419_v50  ;;  %5824 = vst [vmem:[#allocation41_spill] sm:$0xff] %v4235_v49  ;;  %v443_v50 = vmax.f32 %v441_v17, %v442_v4  ;;  %v448_v4 = vsel %vm307_vm0, %v4244_v55, -inf  ;;  %v451_v17 = vsel %vm307_vm0, %v4256_v13, -inf  ;;  %v453_v49 = vsel %vm307_vm0, %v4261_v5, -inf }
  0x7a   : > { %5825 = vst [vmem:[#allocation42_spill] sm:$0xff] %v4244_v55  ;;  %5826 = vst [vmem:[#allocation43_spill] sm:$0xff] %v4251_v58  ;;  %v4280_v55 = vld [vmem:[%s5703_s1 + $0x1a8] sm:$0xff]  ;;  %v440_v0 = vmax.f32 %v438_v32, %v439_v46  ;;  %v450_v23 = vmax.f32 %v448_v4, %v449_v60  ;;  %v455_v58 = vsel %vm307_vm0, %v4275_v37, -inf  ;;  %v462_v4 = vsel %vm307_vm0, %v4297_v16, -inf }
  0x7b   : > { %5827 = vst [vmem:[#allocation44_spill] sm:$0xff] %v4256_v13  ;;  %5828 = vst [vmem:[#allocation45_spill] sm:$0xff] %v4261_v5  ;;  %v4285_v13 = vld [vmem:[%s5703_s1 + $0x2a8] sm:$0xff] }
  0x7c   : > { %937 = vst.msk [vmem:[#allocation2 + $0x188] sm:$0xff] %vm307_vm0, %v426_v47  ;;  %5829 = vst [vmem:[#allocation46_spill] sm:$0xff] %v4275_v37  ;;  %v445_v47 = vmax.f32 %v443_v50, %v444_v38  ;;  %v4290_v5 = vld [vmem:[%s5703_s1 + $0x3a8] sm:$0xff]  ;;  %v456_v38 = vsel %vm307_vm0, %v4280_v55, -inf  ;;  %v458_v32 = vsel %vm307_vm0, %v4285_v13, -inf  ;;  %v4309_v50 = vld [vmem:[%s5703_s1 + $0x1b0] sm:$0xff]  ;;  %v452_v60 = vmax.f32 %v450_v23, %v451_v17 }
  0x7d   : > { %5830 = vst [vmem:[#allocation47_spill] sm:$0xff] %v4280_v55  ;;  %5831 = vst [vmem:[#allocation48_spill] sm:$0xff] %v4285_v13  ;;  %v460_v46 = vsel %vm307_vm0, %v4290_v5, -inf  ;;  %v457_v37 = vmax.f32 %v455_v58, %v456_v38  ;;  %v4317_v13 = vld [vmem:[%s5703_s1 + $0x2b0] sm:$0xff]  ;;  %v463_v55 = vsel %vm307_vm0, %v4309_v50, -inf  ;;  %v4343_v23 = vld [vmem:[%s5703_s1 + $0x2b8] sm:$0xff] }
  0x7e   : > { %5832 = vst [vmem:[#allocation49_spill] sm:$0xff] %v4290_v5  ;;  %5833 = vst [vmem:[#allocation50_spill] sm:$0xff] %v4297_v16  ;;  %v4322_v5 = vld [vmem:[%s5703_s1 + $0x3b0] sm:$0xff]  ;;  %v465_v58 = vsel %vm307_vm0, %v4317_v13, -inf  ;;  %v4360_v16 = vld [vmem:[%s5703_s1 + $0xc0] sm:$0xff] }
  0x7f   : > { %938 = vst.msk [vmem:[#allocation2 + $0x190] sm:$0xff] %vm307_vm0, %v433_v48  ;;  %5834 = vst [vmem:[#allocation51_spill] sm:$0xff] %v4309_v50  ;;  %v447_v48 = vmax.f32 %v445_v47, %v446_v24  ;;  %v464_v24 = vmax.f32 %v462_v4, %v463_v55  ;;  %v467_v17 = vsel %vm307_vm0, %v4322_v5, -inf  ;;  %v4338_v47 = vld [vmem:[%s5703_s1 + $0x1b8] sm:$0xff]  ;;  %v454_v55 = vmax.f32 %v452_v60, %v453_v49  ;;  %v4377_v60 = vld [vmem:[%s5703_s1 + $0x3c0] sm:$0xff] }
  0x80   : > { %939 = vst.msk [vmem:[#allocation2 + $0x1a8] sm:$0xff] %vm307_vm0, %v440_v0  ;;  %5835 = vst [vmem:[#allocation52_spill] sm:$0xff] %v4317_v13  ;;  %v4329_v0 = vld [vmem:[%s5703_s1 + $0xb8] sm:$0xff]  ;;  %v459_v4 = vmax.f32 %v457_v37, %v458_v32  ;;  %v470_v13 = vsel %vm307_vm0, %v4338_v47, -inf  ;;  %v472_v50 = vsel %vm307_vm0, %v4343_v23, -inf  ;;  %v4367_v37 = vld [vmem:[%s5703_s1 + $0x1c0] sm:$0xff] }
  0x81   : > { %5836 = vst [vmem:[#allocation53_spill] sm:$0xff] %v4322_v5  ;;  %5837 = vst [vmem:[#allocation54_spill] sm:$0xff] %v4329_v0  ;;  %v469_v38 = vsel %vm307_vm0, %v4329_v0, -inf  ;;  %v4351_v5 = vld [vmem:[%s5703_s1 + $0x3b8] sm:$0xff]  ;;  %v466_v0 = vmax.f32 %v464_v24, %v465_v58  ;;  %v4372_v32 = vld [vmem:[%s5703_s1 + $0x2c0] sm:$0xff]  ;;  %v477_v58 = vsel %vm307_vm0, %v4367_v37, -inf }
  0x82   : > { %5838 = vst [vmem:[#allocation55_spill] sm:$0xff] %v4338_v47  ;;  %5839 = vst [vmem:[#allocation56_spill] sm:$0xff] %v4343_v23  ;;  %v474_v49 = vsel %vm307_vm0, %v4351_v5, -inf  ;;  %v461_v24 = vmax.f32 %v459_v4, %v460_v46  ;;  %v4391_v23 = vld [vmem:[%s5703_s1 + $0xc8] sm:$0xff]  ;;  %v4413_v47 = vld [vmem:[%s5703_s1 + $0xd0] sm:$0xff] }
  0x83   : > { %940 = vst.msk [vmem:[#allocation2 + $0x1b0] sm:$0xff] %vm307_vm0, %v447_v48  ;;  %5840 = vst [vmem:[#allocation57_spill] sm:$0xff] %v4351_v5  ;;  %v471_v48 = vmax.f32 %v469_v38, %v470_v13  ;;  %v476_v13 = vsel %vm307_vm0, %v4360_v16, -inf  ;;  %v479_v38 = vsel %vm307_vm0, %v4372_v32, -inf  ;;  %v481_v5 = vsel %vm307_vm0, %v4377_v60, -inf }
  0x84   : > { %5841 = vst [vmem:[#allocation58_spill] sm:$0xff] %v4360_v16  ;;  %5842 = vst [vmem:[#allocation59_spill] sm:$0xff] %v4367_v37  ;;  %v4396_v16 = vld [vmem:[%s5703_s1 + $0x1c8] sm:$0xff]  ;;  %v468_v46 = vmax.f32 %v466_v0, %v467_v17  ;;  %v478_v4 = vmax.f32 %v476_v13, %v477_v58  ;;  %v483_v37 = vsel %vm307_vm0, %v4391_v23, -inf  ;;  %v490_v13 = vsel %vm307_vm0, %v4413_v47, -inf }
  0x85   : > { %5843 = vst [vmem:[#allocation60_spill] sm:$0xff] %v4372_v32  ;;  %5844 = vst [vmem:[#allocation61_spill] sm:$0xff] %v4377_v60  ;;  %v4401_v32 = vld [vmem:[%s5703_s1 + $0x2c8] sm:$0xff] }
  0x86   : > { %941 = vst.msk [vmem:[#allocation2 + $0x1c8] sm:$0xff] %vm307_vm0, %v454_v55  ;;  %5845 = vst [vmem:[#allocation62_spill] sm:$0xff] %v4391_v23  ;;  %v473_v55 = vmax.f32 %v471_v48, %v472_v50  ;;  %v4406_v60 = vld [vmem:[%s5703_s1 + $0x3c8] sm:$0xff]  ;;  %v484_v50 = vsel %vm307_vm0, %v4396_v16, -inf  ;;  %v486_v0 = vsel %vm307_vm0, %v4401_v32, -inf  ;;  %v4425_v48 = vld [vmem:[%s5703_s1 + $0x1d0] sm:$0xff]  ;;  %v480_v58 = vmax.f32 %v478_v4, %v479_v38 }
  0x87   : > { %5846 = vst [vmem:[#allocation63_spill] sm:$0xff] %v4396_v16  ;;  %5847 = vst [vmem:[#allocation64_spill] sm:$0xff] %v4401_v32  ;;  %v488_v17 = vsel %vm307_vm0, %v4406_v60, -inf  ;;  %v485_v23 = vmax.f32 %v483_v37, %v484_v50  ;;  %v4433_v32 = vld [vmem:[%s5703_s1 + $0x2d0] sm:$0xff]  ;;  %v491_v16 = vsel %vm307_vm0, %v4425_v48, -inf  ;;  %v4459_v4 = vld [vmem:[%s5703_s1 + $0x2d8] sm:$0xff] }
  0x88   : > { %5848 = vst [vmem:[#allocation65_spill] sm:$0xff] %v4406_v60  ;;  %5849 = vst [vmem:[#allocation66_spill] sm:$0xff] %v4413_v47  ;;  %v4438_v60 = vld [vmem:[%s5703_s1 + $0x3d0] sm:$0xff]  ;;  %v493_v37 = vsel %vm307_vm0, %v4433_v32, -inf  ;;  %v4476_v47 = vld [vmem:[%s5703_s1 + $0xe0] sm:$0xff] }
  0x89   : > { %942 = vst.msk [vmem:[#allocation2 + $0x1d0] sm:$0xff] %vm307_vm0, %v461_v24  ;;  %5850 = vst [vmem:[#allocation67_spill] sm:$0xff] %v4425_v48  ;;  %v475_v24 = vmax.f32 %v473_v55, %v474_v49  ;;  %v492_v49 = vmax.f32 %v490_v13, %v491_v16  ;;  %v495_v38 = vsel %vm307_vm0, %v4438_v60, -inf  ;;  %v4454_v55 = vld [vmem:[%s5703_s1 + $0x1d8] sm:$0xff]  ;;  %v482_v16 = vmax.f32 %v480_v58, %v481_v5  ;;  %v4493_v58 = vld [vmem:[%s5703_s1 + $0x3e0] sm:$0xff] }
  0x8a   : > { %943 = vst.msk [vmem:[#allocation2 + $0x1e8] sm:$0xff] %vm307_vm0, %v468_v46  ;;  %5851 = vst [vmem:[#allocation68_spill] sm:$0xff] %v4433_v32  ;;  %v4445_v46 = vld [vmem:[%s5703_s1 + $0xd8] sm:$0xff]  ;;  %v487_v13 = vmax.f32 %v485_v23, %v486_v0  ;;  %v498_v32 = vsel %vm307_vm0, %v4454_v55, -inf  ;;  %v500_v48 = vsel %vm307_vm0, %v4459_v4, -inf  ;;  %v4483_v23 = vld [vmem:[%s5703_s1 + $0x1e0] sm:$0xff] }
  0x8b   : > { %5852 = vst [vmem:[#allocation69_spill] sm:$0xff] %v4438_v60  ;;  %5853 = vst [vmem:[#allocation70_spill] sm:$0xff] %v4445_v46  ;;  %v497_v50 = vsel %vm307_vm0, %v4445_v46, -inf  ;;  %v4467_v60 = vld [vmem:[%s5703_s1 + $0x3d8] sm:$0xff]  ;;  %v494_v46 = vmax.f32 %v492_v49, %v493_v37  ;;  %v4488_v0 = vld [vmem:[%s5703_s1 + $0x2e0] sm:$0xff]  ;;  %v505_v37 = vsel %vm307_vm0, %v4483_v23, -inf }
  0x8c   : > { %5854 = vst [vmem:[#allocation71_spill] sm:$0xff] %v4454_v55  ;;  %5855 = vst [vmem:[#allocation72_spill] sm:$0xff] %v4459_v4  ;;  %v502_v5 = vsel %vm307_vm0, %v4467_v60, -inf  ;;  %v489_v49 = vmax.f32 %v487_v13, %v488_v17  ;;  %v4507_v4 = vld [vmem:[%s5703_s1 + $0xe8] sm:$0xff]  ;;  %v4529_v55 = vld [vmem:[%s5703_s1 + $0xf0] sm:$0xff] }
  0x8d   : > { %944 = vst.msk [vmem:[#allocation2 + $0x1f0] sm:$0xff] %vm307_vm0, %v475_v24  ;;  %5856 = vst [vmem:[#allocation73_spill] sm:$0xff] %v4467_v60  ;;  %v499_v24 = vmax.f32 %v497_v50, %v498_v32  ;;  %v504_v32 = vsel %vm307_vm0, %v4476_v47, -inf  ;;  %v507_v50 = vsel %vm307_vm0, %v4488_v0, -inf  ;;  %v509_v60 = vsel %vm307_vm0, %v4493_v58, -inf }
  0x8e   : > { %5857 = vst [vmem:[#allocation74_spill] sm:$0xff] %v4476_v47  ;;  %5858 = vst [vmem:[#allocation75_spill] sm:$0xff] %v4483_v23  ;;  %v4512_v47 = vld [vmem:[%s5703_s1 + $0x1e8] sm:$0xff]  ;;  %v496_v17 = vmax.f32 %v494_v46, %v495_v38  ;;  %v506_v13 = vmax.f32 %v504_v32, %v505_v37  ;;  %v511_v23 = vsel %vm307_vm0, %v4507_v4, -inf  ;;  %v518_v32 = vsel %vm307_vm0, %v4529_v55, -inf }
  0x8f   : > { %5859 = vst [vmem:[#allocation76_spill] sm:$0xff] %v4488_v0  ;;  %5860 = vst [vmem:[#allocation77_spill] sm:$0xff] %v4493_v58  ;;  %v4517_v0 = vld [vmem:[%s5703_s1 + $0x2e8] sm:$0xff] }
  0x90   : > { %945 = vst.msk [vmem:[#allocation2 + $0x208] sm:$0xff] %vm307_vm0, %v482_v16  ;;  %5861 = vst [vmem:[#allocation78_spill] sm:$0xff] %v4507_v4  ;;  %v501_v16 = vmax.f32 %v499_v24, %v500_v48  ;;  %v4522_v58 = vld [vmem:[%s5703_s1 + $0x3e8] sm:$0xff]  ;;  %v512_v48 = vsel %vm307_vm0, %v4512_v47, -inf  ;;  %v514_v46 = vsel %vm307_vm0, %v4517_v0, -inf  ;;  %v4541_v24 = vld [vmem:[%s5703_s1 + $0x1f0] sm:$0xff]  ;;  %v508_v37 = vmax.f32 %v506_v13, %v507_v50 }
  0x91   : > { %5862 = vst [vmem:[#allocation79_spill] sm:$0xff] %v4512_v47  ;;  %5863 = vst [vmem:[#allocation80_spill] sm:$0xff] %v4517_v0  ;;  %v516_v38 = vsel %vm307_vm0, %v4522_v58, -inf  ;;  %v513_v4 = vmax.f32 %v511_v23, %v512_v48  ;;  %v4549_v0 = vld [vmem:[%s5703_s1 + $0x2f0] sm:$0xff]  ;;  %v519_v47 = vsel %vm307_vm0, %v4541_v24, -inf  ;;  %v4575_v13 = vld [vmem:[%s5703_s1 + $0x2f8] sm:$0xff] }
  0x92   : > { %5864 = vst [vmem:[#allocation81_spill] sm:$0xff] %v4522_v58  ;;  %5865 = vst [vmem:[#allocation82_spill] sm:$0xff] %v4529_v55  ;;  %v4554_v58 = vld [vmem:[%s5703_s1 + $0x3f0] sm:$0xff]  ;;  %v521_v23 = vsel %vm307_vm0, %v4549_v0, -inf }
  0x93   : > { %946 = vst.msk [vmem:[#allocation2 + $0x210] sm:$0xff] %vm307_vm0, %v489_v49  ;;  %5866 = vst [vmem:[#allocation83_spill] sm:$0xff] %v4541_v24  ;;  %v503_v49 = vmax.f32 %v501_v16, %v502_v5  ;;  %v520_v5 = vmax.f32 %v518_v32, %v519_v47  ;;  %v523_v50 = vsel %vm307_vm0, %v4554_v58, -inf  ;;  %v4570_v16 = vld [vmem:[%s5703_s1 + $0x1f8] sm:$0xff]  ;;  %v510_v47 = vmax.f32 %v508_v37, %v509_v60 }
  0x94   : > { %947 = vst.msk [vmem:[#allocation2 + $0x228] sm:$0xff] %vm307_vm0, %v496_v17  ;;  %5867 = vst [vmem:[#allocation84_spill] sm:$0xff] %v4549_v0  ;;  %v4561_v17 = vld [vmem:[%s5703_s1 + $0xf8] sm:$0xff]  ;;  %v515_v32 = vmax.f32 %v513_v4, %v514_v46  ;;  %v526_v0 = vsel %vm307_vm0, %v4570_v16, -inf  ;;  %v528_v24 = vsel %vm307_vm0, %v4575_v13, -inf  ;;  %v533_v60 = vsel %vm307_vm0, %v3406_v1, 0.0 }
  0x95   : > { %5868 = vst [vmem:[#allocation85_spill] sm:$0xff] %v4554_v58  ;;  %5869 = vst [vmem:[#allocation86_spill] sm:$0xff] %v4561_v17  ;;  %v525_v48 = vsel %vm307_vm0, %v4561_v17, -inf  ;;  %v4583_v58 = vld [vmem:[%s5703_s1 + $0x3f8] sm:$0xff]  ;;  %v522_v55 = vmax.f32 %v520_v5, %v521_v23  ;;  %v534_v46 = vadd.f32 %v533_v60, %v3759_v33  ;;  %v537_v37 = vsel %vm307_vm0, %v3689_v9, 0.0 }
  0x96   : > { %5870 = vst [vmem:[#allocation87_spill] sm:$0xff] %v4575_v13  ;;  %948 = vst.msk [vmem:[#allocation2 + $0x230] sm:$0xff] %vm307_vm0, %v503_v49  ;;  %v527_v35 = vmax.f32 %v525_v48, %v526_v0  ;;  %v530_v17 = vsel %vm307_vm0, %v4583_v58, -inf  ;;  %v517_v4 = vmax.f32 %v515_v32, %v516_v38  ;;  %v535_v49 = vsel %vm307_vm0, %v3411_v2, 0.0 }
  0x97   : > { %949 = vst.msk [vmem:[#allocation2 + $0x248] sm:$0xff] %vm307_vm0, %v510_v47  ;;  %v524_v13 = vmax.f32 %v522_v55, %v523_v50  ;;  %v539_v0 = vsel %vm307_vm0, %v3678_v7, 0.0  ;;  %v540_v23 = vsel %vm307_vm0, %v3683_v8, 0.0  ;;  %v536_v1 = vadd.f32 %v535_v49, %v534_v46 }
  0x98   : > { %v529_v5 = vmax.f32 %v527_v35, %v528_v24  ;;  %950 = vst.msk [vmem:[#allocation2 + $0x250] sm:$0xff] %vm307_vm0, %v517_v4  ;;  %v541_v38 = vadd.f32 %v540_v23, %v539_v0  ;;  %v542_v33 = vsel %vm307_vm0, %v3694_v11, 0.0  ;;  %v544_v2 = vsel %vm307_vm0, %v3699_v12, 0.0 }
  0x99   : > { %951 = vst.msk [vmem:[#allocation2 + $0x268] sm:$0xff] %vm307_vm0, %v524_v13  ;;  %v546_v35 = vsel %vm307_vm0, %v3714_v19, 0.0  ;;  %v547_v7 = vsel %vm307_vm0, %v3719_v20, 0.0  ;;  %v549_v8 = vsel %vm307_vm0, %v3724_v21, 0.0  ;;  %v538_v55 = vadd.f32 %v537_v37, %v536_v1 }
  0x9a   : > { %v531_v9 = vmax.f32 %v529_v5, %v530_v17  ;;  %v543_v24 = vadd.f32 %v542_v33, %v541_v38  ;;  %v548_v50 = vadd.f32 %v547_v7, %v546_v35  ;;  %v551_v11 = vsel %vm307_vm0, %v3743_v28, 0.0 }
  0x9b   : > { %v553_v12 = vsel %vm307_vm0, %v3738_v26, 0.0  ;;  %v554_v19 = vsel %vm307_vm0, %v3748_v30, 0.0  ;;  %v556_v20 = vsel %vm307_vm0, %v3753_v31, 0.0  ;;  %v756_v17 = vmul.f32 0.25, %v538_v55 }
  0x9c   : > { %952 = vst.msk [vmem:[#allocation2 + $0x270] sm:$0xff] %vm307_vm0, %v531_v9  ;;  %v545_v13 = vadd.f32 %v544_v2, %v543_v24  ;;  %v550_v21 = vadd.f32 %v549_v8, %v548_v50  ;;  %v555_v48 = vadd.f32 %v554_v19, %v553_v12  ;;  %v558_v47 = vsel %vm307_vm0, %v3766_v36, 0.0 }
  0x9d   : > { %v560_v32 = vsel %vm307_vm0, %v3775_v39, 0.0  ;;  %v561_v28 = vsel %vm307_vm0, %v3780_v43, 0.0  ;;  %v563_v26 = vsel %vm307_vm0, %v3785_v44, 0.0  ;;  %953 = vst.msk [vmem:[#allocation2 + $0x388] sm:$0xff] %vm307_vm0, %v756_v17  ;;  %v565_v46 = vsel %vm307_vm0, %v3790_v45, 0.0 }
  0x9e   : > { %v757_v30 = vmul.f32 0.25, %v545_v13  ;;  %v552_v31 = vadd.f32 %v551_v11, %v550_v21  ;;  %v557_v60 = vadd.f32 %v556_v20, %v555_v48  ;;  %v562_v4 = vadd.f32 %v561_v28, %v560_v32  ;;  %v5872_v32 = vld [vmem:[#allocation7_spill] sm:$0xff]  ;;  %v5873_v28 = vld [vmem:[#allocation8_spill] sm:$0xff] }
  0x9f   : > { %v567_v36 = vsel %vm307_vm0, %v3811_v51, 0.0  ;;  %v568_v39 = vsel %vm307_vm0, %v3816_v52, 0.0  ;;  %v570_v43 = vsel %vm307_vm0, %v3822_v56, 0.0  ;;  %v572_v0 = vsel %vm307_vm0, %v3827_v57, 0.0 }
  0xa0   : > { %954 = vst.msk [vmem:[#allocation2 + $0x390] sm:$0xff] %vm307_vm0, %v757_v30  ;;  %v758_v44 = vmul.f32 0.25, %v552_v31  ;;  %v559_v49 = vadd.f32 %v558_v47, %v557_v60  ;;  %v564_v37 = vadd.f32 %v563_v26, %v562_v4  ;;  %v569_v5 = vadd.f32 %v568_v39, %v567_v36  ;;  %v5871_v47 = vld [vmem:[#allocation6_spill] sm:$0xff]  ;;  %v5874_v60 = vld [vmem:[#allocation9_spill] sm:$0xff]  ;;  %v5876_v36 = vld [vmem:[#allocation11_spill] sm:$0xff] }
  0xa1   : > { %v574_v45 = vsel %vm307_vm0, %v3834_v59, 0.0  ;;  %v575_v51 = vsel %vm307_vm0, %v3845_v63, 0.0  ;;  %v577_v52 = vsel %vm307_vm0, %v3853_v6, 0.0  ;;  %v579_v33 = vsel %vm307_vm0, %v3858_v10, 0.0 }
  0xa2   : > { %955 = vst.msk [vmem:[#allocation2 + $0x3a8] sm:$0xff] %vm307_vm0, %v758_v44  ;;  %v759_v56 = vmul.f32 0.25, %v559_v49  ;;  %v566_v23 = vadd.f32 %v565_v46, %v564_v37  ;;  %v571_v1 = vadd.f32 %v570_v43, %v569_v5  ;;  %v576_v38 = vadd.f32 %v575_v51, %v574_v45  ;;  %v5875_v46 = vld [vmem:[#allocation10_spill] sm:$0xff]  ;;  %v5877_v43 = vld [vmem:[#allocation12_spill] sm:$0xff]  ;;  %v5878_v45 = vld [vmem:[#allocation13_spill] sm:$0xff] }
  0xa3   : > { %v581_v57 = vsel %vm307_vm0, %v3865_v14, 0.0  ;;  %v582_v59 = vsel %vm307_vm0, %v3874_v18, 0.0  ;;  %v584_v63 = vsel %vm307_vm0, %v3879_v22, 0.0  ;;  %v586_v7 = vsel %vm307_vm0, %v3887_v27, 0.0 }
  0xa4   : > { %956 = vst.msk [vmem:[#allocation2 + $0x3b0] sm:$0xff] %vm307_vm0, %v759_v56  ;;  %v760_v6 = vmul.f32 0.25, %v566_v23  ;;  %v573_v2 = vadd.f32 %v572_v0, %v571_v1  ;;  %v578_v9 = vadd.f32 %v577_v52, %v576_v38  ;;  %v583_v35 = vadd.f32 %v582_v59, %v581_v57  ;;  %v5879_v52 = vld [vmem:[#allocation14_spill] sm:$0xff]  ;;  %v5880_v23 = vld [vmem:[#allocation15_spill] sm:$0xff]  ;;  %v5881_v38 = vld [vmem:[#allocation16_spill] sm:$0xff] }
  0xa5   : > { %v588_v10 = vsel %vm307_vm0, %v3896_v34, 0.0  ;;  %v589_v14 = vsel %vm307_vm0, %v3903_v40, 0.0  ;;  %v591_v18 = vsel %vm307_vm0, %v3908_v41, 0.0  ;;  %v593_v50 = vsel %vm307_vm0, %v3913_v42, 0.0 }
  0xa6   : > { %957 = vst.msk [vmem:[#allocation2 + $0x3c8] sm:$0xff] %vm307_vm0, %v760_v6  ;;  %v761_v22 = vmul.f32 0.25, %v573_v2  ;;  %v580_v8 = vadd.f32 %v579_v33, %v578_v9  ;;  %v585_v55 = vadd.f32 %v584_v63, %v583_v35  ;;  %v590_v24 = vadd.f32 %v589_v14, %v588_v10  ;;  %v5882_v2 = vld [vmem:[#allocation17_spill] sm:$0xff]  ;;  %v5883_v35 = vld [vmem:[#allocation18_spill] sm:$0xff]  ;;  %v5884_v10 = vld [vmem:[#allocation19_spill] sm:$0xff] }
  0xa7   : > { %v595_v27 = vsel %vm307_vm0, %v3927_v53, 0.0  ;;  %v596_v34 = vsel %vm307_vm0, %v3932_v54, 0.0  ;;  %v598_v40 = vsel %vm307_vm0, %v3937_v61, 0.0  ;;  %v600_v20 = vsel %vm307_vm0, %v3942_v62, 0.0 }
  0xa8   : > { %958 = vst.msk [vmem:[#allocation2 + $0x3d0] sm:$0xff] %vm307_vm0, %v761_v22  ;;  %v762_v41 = vmul.f32 0.25, %v580_v8  ;;  %v587_v11 = vadd.f32 %v586_v7, %v585_v55  ;;  %v592_v12 = vadd.f32 %v591_v18, %v590_v24  ;;  %v597_v19 = vadd.f32 %v596_v34, %v595_v27  ;;  %v5885_v18 = vld [vmem:[#allocation20_spill] sm:$0xff]  ;;  %v5886_v27 = vld [vmem:[#allocation21_spill] sm:$0xff] }
  0xa9   : > { %v602_v42 = vsel %vm307_vm0, %v3949_v3, 0.0  ;;  %v603_v53 = vsel %vm307_vm0, %v3961_v15, 0.0  ;;  %v605_v54 = vsel %vm307_vm0, %v3969_v25, 0.0  ;;  %v607_v48 = vsel %vm307_vm0, %v3974_v29, 0.0 }
  0xaa   : > { %959 = vst.msk [vmem:[#allocation2 + $0x3e8] sm:$0xff] %vm307_vm0, %v762_v41  ;;  %v763_v61 = vmul.f32 0.25, %v587_v11  ;;  %v594_v17 = vadd.f32 %v593_v50, %v592_v12  ;;  %v599_v13 = vadd.f32 %v598_v40, %v597_v19  ;;  %v604_v21 = vadd.f32 %v603_v53, %v602_v42  ;;  %v5887_v40 = vld [vmem:[#allocation22_spill] sm:$0xff]  ;;  %v5888_v11 = vld [vmem:[#allocation23_spill] sm:$0xff]  ;;  %v5889_v19 = vld [vmem:[#allocation24_spill] sm:$0xff] }
  0xab   : > { %v609_v62 = vsel %vm307_vm0, %v5871_v47, 0.0  ;;  %v610_v3 = vsel %vm307_vm0, %v5872_v32, 0.0  ;;  %v612_v15 = vsel %vm307_vm0, %v5873_v28, 0.0  ;;  %v614_v4 = vsel %vm307_vm0, %v5874_v60, 0.0  ;;  %v5892_v47 = vld [vmem:[#allocation27_spill] sm:$0xff]  ;;  %v5893_v32 = vld [vmem:[#allocation28_spill] sm:$0xff] }
  0xac   : > { %960 = vst.msk [vmem:[#allocation2 + $0x3f0] sm:$0xff] %vm307_vm0, %v763_v61  ;;  %v764_v25 = vmul.f32 0.25, %v594_v17  ;;  %v601_v26 = vadd.f32 %v600_v20, %v599_v13  ;;  %v606_v30 = vadd.f32 %v605_v54, %v604_v21  ;;  %v611_v31 = vadd.f32 %v610_v3, %v609_v62  ;;  %v5890_v17 = vld [vmem:[#allocation25_spill] sm:$0xff]  ;;  %v5891_v21 = vld [vmem:[#allocation26_spill] sm:$0xff] }
  0xad   : > { %v616_v29 = vsel %vm307_vm0, %v5875_v46, 0.0  ;;  %v617_v39 = vsel %vm307_vm0, %v5876_v36, 0.0  ;;  %v619_v44 = vsel %vm307_vm0, %v5877_v43, 0.0  ;;  %v621_v51 = vsel %vm307_vm0, %v5878_v45, 0.0  ;;  %v5895_v60 = vld [vmem:[#allocation30_spill] sm:$0xff]  ;;  %v5896_v46 = vld [vmem:[#allocation31_spill] sm:$0xff] }
  0xae   : > { %961 = vst.msk [vmem:[#allocation2 + $0x408] sm:$0xff] %vm307_vm0, %v764_v25  ;;  %v765_v49 = vmul.f32 0.25, %v601_v26  ;;  %v608_v37 = vadd.f32 %v607_v48, %v606_v30  ;;  %v613_v5 = vadd.f32 %v612_v15, %v611_v31  ;;  %v618_v0 = vadd.f32 %v617_v39, %v616_v29  ;;  %v5894_v30 = vld [vmem:[#allocation29_spill] sm:$0xff]  ;;  %v5897_v36 = vld [vmem:[#allocation32_spill] sm:$0xff]  ;;  %v5899_v45 = vld [vmem:[#allocation34_spill] sm:$0xff] }
  0xaf   : > { %v623_v56 = vsel %vm307_vm0, %v5879_v52, 0.0  ;;  %v624_v1 = vsel %vm307_vm0, %v5880_v23, 0.0  ;;  %v626_v33 = vsel %vm307_vm0, %v5881_v38, 0.0  ;;  %v628_v9 = vsel %vm307_vm0, %v5882_v2, 0.0  ;;  %v5900_v52 = vld [vmem:[#allocation35_spill] sm:$0xff]  ;;  %v5901_v23 = vld [vmem:[#allocation36_spill] sm:$0xff] }
  0xb0   : > { %962 = vst.msk [vmem:[#allocation2 + $0x410] sm:$0xff] %vm307_vm0, %v765_v49  ;;  %v766_v57 = vmul.f32 0.25, %v608_v37  ;;  %v615_v59 = vadd.f32 %v614_v4, %v613_v5  ;;  %v620_v63 = vadd.f32 %v619_v44, %v618_v0  ;;  %v625_v6 = vadd.f32 %v624_v1, %v623_v56  ;;  %v5898_v5 = vld [vmem:[#allocation33_spill] sm:$0xff]  ;;  %v5903_v2 = vld [vmem:[#allocation38_spill] sm:$0xff] }
  0xb1   : > { %v630_v7 = vsel %vm307_vm0, %v5883_v35, 0.0  ;;  %v631_v14 = vsel %vm307_vm0, %v5884_v10, 0.0  ;;  %v633_v22 = vsel %vm307_vm0, %v5885_v18, 0.0  ;;  %v635_v34 = vsel %vm307_vm0, %v5886_v27, 0.0  ;;  %v5904_v35 = vld [vmem:[#allocation39_spill] sm:$0xff]  ;;  %v5905_v10 = vld [vmem:[#allocation40_spill] sm:$0xff] }
  0xb2   : > { %963 = vst.msk [vmem:[#allocation2 + $0x428] sm:$0xff] %vm307_vm0, %v766_v57  ;;  %v767_v8 = vmul.f32 0.25, %v615_v59  ;;  %v622_v55 = vadd.f32 %v621_v51, %v620_v63  ;;  %v627_v24 = vadd.f32 %v626_v33, %v625_v6  ;;  %v632_v50 = vadd.f32 %v631_v14, %v630_v7  ;;  %v5902_v63 = vld [vmem:[#allocation37_spill] sm:$0xff]  ;;  %v5907_v27 = vld [vmem:[#allocation42_spill] sm:$0xff] }
  0xb3   : > { %v637_v41 = vsel %vm307_vm0, %v5887_v40, 0.0  ;;  %v638_v12 = vsel %vm307_vm0, %v5888_v11, 0.0  ;;  %v640_v20 = vsel %vm307_vm0, %v5889_v19, 0.0  ;;  %v642_v13 = vsel %vm307_vm0, %v5890_v17, 0.0  ;;  %v5908_v40 = vld [vmem:[#allocation43_spill] sm:$0xff]  ;;  %v5909_v11 = vld [vmem:[#allocation44_spill] sm:$0xff] }
  0xb4   : > { %964 = vst.msk [vmem:[#allocation2 + $0x430] sm:$0xff] %vm307_vm0, %v767_v8  ;;  %v768_v42 = vmul.f32 0.25, %v622_v55  ;;  %v629_v53 = vadd.f32 %v628_v9, %v627_v24  ;;  %v634_v54 = vadd.f32 %v633_v22, %v632_v50  ;;  %v639_v61 = vadd.f32 %v638_v12, %v637_v41  ;;  %v5906_v24 = vld [vmem:[#allocation41_spill] sm:$0xff]  ;;  %v5911_v17 = vld [vmem:[#allocation46_spill] sm:$0xff] }
  0xb5   : > { %v644_v48 = vsel %vm307_vm0, %v5891_v21, 0.0  ;;  %v645_v62 = vsel %vm307_vm0, %v5892_v47, 0.0  ;;  %v647_v3 = vsel %vm307_vm0, %v5893_v32, 0.0  ;;  %v649_v31 = vsel %vm307_vm0, %v5894_v30, 0.0  ;;  %v5912_v21 = vld [vmem:[#allocation47_spill] sm:$0xff]  ;;  %v5913_v47 = vld [vmem:[#allocation48_spill] sm:$0xff] }
  0xb6   : > { %965 = vst.msk [vmem:[#allocation2 + $0x448] sm:$0xff] %vm307_vm0, %v768_v42  ;;  %v769_v28 = vmul.f32 0.25, %v629_v53  ;;  %v636_v15 = vadd.f32 %v635_v34, %v634_v54  ;;  %v641_v25 = vadd.f32 %v640_v20, %v639_v61  ;;  %v646_v26 = vadd.f32 %v645_v62, %v644_v48  ;;  %v5910_v54 = vld [vmem:[#allocation45_spill] sm:$0xff]  ;;  %v5915_v30 = vld [vmem:[#allocation50_spill] sm:$0xff] }
  0xb7   : > { %v651_v4 = vsel %vm307_vm0, %v5895_v60, 0.0  ;;  %v652_v29 = vsel %vm307_vm0, %v5896_v46, 0.0  ;;  %v654_v39 = vsel %vm307_vm0, %v5897_v36, 0.0  ;;  %v656_v0 = vsel %vm307_vm0, %v5898_v5, 0.0  ;;  %v5916_v60 = vld [vmem:[#allocation51_spill] sm:$0xff]  ;;  %v5917_v46 = vld [vmem:[#allocation52_spill] sm:$0xff] }
  0xb8   : > { %966 = vst.msk [vmem:[#allocation2 + $0x450] sm:$0xff] %vm307_vm0, %v769_v28  ;;  %v770_v43 = vmul.f32 0.25, %v636_v15  ;;  %v643_v44 = vadd.f32 %v642_v13, %v641_v25  ;;  %v648_v49 = vadd.f32 %v647_v3, %v646_v26  ;;  %v653_v37 = vadd.f32 %v652_v29, %v651_v4  ;;  %v5914_v25 = vld [vmem:[#allocation49_spill] sm:$0xff]  ;;  %v5919_v5 = vld [vmem:[#allocation54_spill] sm:$0xff] }
  0xb9   : > { %v658_v51 = vsel %vm307_vm0, %v5899_v45, 0.0  ;;  %v659_v56 = vsel %vm307_vm0, %v5900_v52, 0.0  ;;  %v661_v1 = vsel %vm307_vm0, %v5901_v23, 0.0  ;;  %v663_v6 = vsel %vm307_vm0, %v5902_v63, 0.0  ;;  %v5920_v45 = vld [vmem:[#allocation55_spill] sm:$0xff]  ;;  %v5921_v52 = vld [vmem:[#allocation56_spill] sm:$0xff] }
  0xba   : > { %967 = vst.msk [vmem:[#allocation2 + $0x468] sm:$0xff] %vm307_vm0, %v770_v43  ;;  %v771_v38 = vmul.f32 0.25, %v643_v44  ;;  %v650_v33 = vadd.f32 %v649_v31, %v648_v49  ;;  %v655_v57 = vadd.f32 %v654_v39, %v653_v37  ;;  %v660_v59 = vadd.f32 %v659_v56, %v658_v51  ;;  %v5918_v49 = vld [vmem:[#allocation53_spill] sm:$0xff]  ;;  %v5923_v63 = vld [vmem:[#allocation58_spill] sm:$0xff] }
  0xbb   : > { %v665_v9 = vsel %vm307_vm0, %v5903_v2, 0.0  ;;  %v666_v7 = vsel %vm307_vm0, %v5904_v35, 0.0  ;;  %v668_v14 = vsel %vm307_vm0, %v5905_v10, 0.0  ;;  %v670_v50 = vsel %vm307_vm0, %v5906_v24, 0.0  ;;  %v5924_v2 = vld [vmem:[#allocation59_spill] sm:$0xff]  ;;  %v5925_v35 = vld [vmem:[#allocation60_spill] sm:$0xff] }
  0xbc   : > { %968 = vst.msk [vmem:[#allocation2 + $0x470] sm:$0xff] %vm307_vm0, %v771_v38  ;;  %v772_v18 = vmul.f32 0.25, %v650_v33  ;;  %v657_v22 = vadd.f32 %v656_v0, %v655_v57  ;;  %v662_v8 = vadd.f32 %v661_v1, %v660_v59  ;;  %v667_v55 = vadd.f32 %v666_v7, %v665_v9  ;;  %v5922_v57 = vld [vmem:[#allocation57_spill] sm:$0xff]  ;;  %v5927_v24 = vld [vmem:[#allocation62_spill] sm:$0xff] }
  0xbd   : > { %v672_v34 = vsel %vm307_vm0, %v5907_v27, 0.0  ;;  %v673_v41 = vsel %vm307_vm0, %v5908_v40, 0.0  ;;  %v675_v12 = vsel %vm307_vm0, %v5909_v11, 0.0  ;;  %v677_v61 = vsel %vm307_vm0, %v5910_v54, 0.0  ;;  %v5928_v27 = vld [vmem:[#allocation63_spill] sm:$0xff]  ;;  %v5929_v40 = vld [vmem:[#allocation64_spill] sm:$0xff] }
  0xbe   : > { %969 = vst.msk [vmem:[#allocation2 + $0x488] sm:$0xff] %vm307_vm0, %v772_v18  ;;  %v773_v19 = vmul.f32 0.25, %v657_v22  ;;  %v664_v20 = vadd.f32 %v663_v6, %v662_v8  ;;  %v669_v42 = vadd.f32 %v668_v14, %v667_v55  ;;  %v674_v53 = vadd.f32 %v673_v41, %v672_v34  ;;  %v5926_v8 = vld [vmem:[#allocation61_spill] sm:$0xff]  ;;  %v5931_v54 = vld [vmem:[#allocation66_spill] sm:$0xff] }
  0xbf   : > { %v679_v13 = vsel %vm307_vm0, %v5911_v17, 0.0  ;;  %v680_v48 = vsel %vm307_vm0, %v5912_v21, 0.0  ;;  %v682_v62 = vsel %vm307_vm0, %v5913_v47, 0.0  ;;  %v684_v26 = vsel %vm307_vm0, %v5914_v25, 0.0  ;;  %v5932_v17 = vld [vmem:[#allocation67_spill] sm:$0xff]  ;;  %v5933_v21 = vld [vmem:[#allocation68_spill] sm:$0xff] }
  0xc0   : > { %970 = vst.msk [vmem:[#allocation2 + $0x490] sm:$0xff] %vm307_vm0, %v773_v19  ;;  %v774_v32 = vmul.f32 0.25, %v664_v20  ;;  %v671_v3 = vadd.f32 %v670_v50, %v669_v42  ;;  %v676_v28 = vadd.f32 %v675_v12, %v674_v53  ;;  %v681_v15 = vadd.f32 %v680_v48, %v679_v13  ;;  %v5930_v42 = vld [vmem:[#allocation65_spill] sm:$0xff]  ;;  %v5935_v25 = vld [vmem:[#allocation70_spill] sm:$0xff] }
  0xc1   : > { %v686_v31 = vsel %vm307_vm0, %v5915_v30, 0.0  ;;  %v687_v4 = vsel %vm307_vm0, %v5916_v60, 0.0  ;;  %v689_v29 = vsel %vm307_vm0, %v5917_v46, 0.0  ;;  %v691_v37 = vsel %vm307_vm0, %v5918_v49, 0.0  ;;  %v5936_v30 = vld [vmem:[#allocation71_spill] sm:$0xff]  ;;  %v5937_v60 = vld [vmem:[#allocation72_spill] sm:$0xff] }
  0xc2   : > { %971 = vst.msk [vmem:[#allocation2 + $0x4a8] sm:$0xff] %vm307_vm0, %v774_v32  ;;  %v775_v36 = vmul.f32 0.25, %v671_v3  ;;  %v678_v39 = vadd.f32 %v677_v61, %v676_v28  ;;  %v683_v43 = vadd.f32 %v682_v62, %v681_v15  ;;  %v688_v44 = vadd.f32 %v687_v4, %v686_v31  ;;  %v5934_v28 = vld [vmem:[#allocation69_spill] sm:$0xff]  ;;  %v5939_v49 = vld [vmem:[#allocation74_spill] sm:$0xff] }
  0xc3   : > { %v693_v0 = vsel %vm307_vm0, %v5919_v5, 0.0  ;;  %v694_v51 = vsel %vm307_vm0, %v5920_v45, 0.0  ;;  %v696_v56 = vsel %vm307_vm0, %v5921_v52, 0.0  ;;  %v698_v59 = vsel %vm307_vm0, %v5922_v57, 0.0  ;;  %v5940_v5 = vld [vmem:[#allocation75_spill] sm:$0xff]  ;;  %v5941_v45 = vld [vmem:[#allocation76_spill] sm:$0xff] }
  0xc4   : > { %972 = vst.msk [vmem:[#allocation2 + $0x4b0] sm:$0xff] %vm307_vm0, %v775_v36  ;;  %v776_v23 = vmul.f32 0.25, %v678_v39  ;;  %v685_v1 = vadd.f32 %v684_v26, %v683_v43  ;;  %v690_v38 = vadd.f32 %v689_v29, %v688_v44  ;;  %v695_v33 = vadd.f32 %v694_v51, %v693_v0  ;;  %v5938_v43 = vld [vmem:[#allocation73_spill] sm:$0xff]  ;;  %v5943_v57 = vld [vmem:[#allocation78_spill] sm:$0xff] }
  0xc5   : > { %v700_v6 = vsel %vm307_vm0, %v5923_v63, 0.0  ;;  %v701_v9 = vsel %vm307_vm0, %v5924_v2, 0.0  ;;  %v703_v7 = vsel %vm307_vm0, %v5925_v35, 0.0  ;;  %v705_v55 = vsel %vm307_vm0, %v5926_v8, 0.0  ;;  %v5944_v63 = vld [vmem:[#allocation79_spill] sm:$0xff]  ;;  %v5945_v2 = vld [vmem:[#allocation80_spill] sm:$0xff] }
  0xc6   : > { %973 = vst.msk [vmem:[#allocation2 + $0x4c8] sm:$0xff] %vm307_vm0, %v776_v23  ;;  %v777_v10 = vmul.f32 0.25, %v685_v1  ;;  %v692_v14 = vadd.f32 %v691_v37, %v690_v38  ;;  %v697_v18 = vadd.f32 %v696_v56, %v695_v33  ;;  %v702_v22 = vadd.f32 %v701_v9, %v700_v6  ;;  %v5942_v38 = vld [vmem:[#allocation77_spill] sm:$0xff]  ;;  %v5947_v8 = vld [vmem:[#allocation82_spill] sm:$0xff] }
  0xc7   : > { %v707_v50 = vsel %vm307_vm0, %v5927_v24, 0.0  ;;  %v708_v34 = vsel %vm307_vm0, %v5928_v27, 0.0  ;;  %v710_v41 = vsel %vm307_vm0, %v5929_v40, 0.0  ;;  %v712_v53 = vsel %vm307_vm0, %v5930_v42, 0.0  ;;  %v5948_v24 = vld [vmem:[#allocation83_spill] sm:$0xff]  ;;  %v5949_v27 = vld [vmem:[#allocation84_spill] sm:$0xff] }
  0xc8   : > { %974 = vst.msk [vmem:[#allocation2 + $0x4d0] sm:$0xff] %vm307_vm0, %v777_v10  ;;  %v778_v11 = vmul.f32 0.25, %v692_v14  ;;  %v699_v12 = vadd.f32 %v698_v59, %v697_v18  ;;  %v704_v19 = vadd.f32 %v703_v7, %v702_v22  ;;  %v709_v20 = vadd.f32 %v708_v34, %v707_v50  ;;  %v5946_v18 = vld [vmem:[#allocation81_spill] sm:$0xff]  ;;  %v5951_v42 = vld [vmem:[#allocation86_spill] sm:$0xff] }
  0xc9   : > { %v714_v61 = vsel %vm307_vm0, %v5931_v54, 0.0  ;;  %v715_v13 = vsel %vm307_vm0, %v5932_v17, 0.0  ;;  %v717_v48 = vsel %vm307_vm0, %v5933_v21, 0.0  ;;  %v719_v15 = vsel %vm307_vm0, %v5934_v28, 0.0 }
  0xca   : > { %975 = vst.msk [vmem:[#allocation2 + $0x4e8] sm:$0xff] %vm307_vm0, %v778_v11  ;;  %v779_v47 = vmul.f32 0.25, %v699_v12  ;;  %v706_v62 = vadd.f32 %v705_v55, %v704_v19  ;;  %v711_v32 = vadd.f32 %v710_v41, %v709_v20  ;;  %v716_v3 = vadd.f32 %v715_v13, %v714_v61  ;;  %v5950_v19 = vld [vmem:[#allocation85_spill] sm:$0xff]  ;;  %v5952_v61 = vld [vmem:[#allocation87_spill] sm:$0xff] }
  0xcb   : > { %v721_v26 = vsel %vm307_vm0, %v5935_v25, 0.0  ;;  %v722_v31 = vsel %vm307_vm0, %v5936_v30, 0.0  ;;  %v724_v4 = vsel %vm307_vm0, %v5937_v60, 0.0  ;;  %v726_v44 = vsel %vm307_vm0, %v5938_v43, 0.0 }
  0xcc   : > { %976 = vst.msk [vmem:[#allocation2 + $0x4f0] sm:$0xff] %vm307_vm0, %v779_v47  ;;  %v780_v46 = vmul.f32 0.25, %v706_v62  ;;  %v713_v29 = vadd.f32 %v712_v53, %v711_v32  ;;  %v718_v36 = vadd.f32 %v717_v48, %v716_v3  ;;  %v723_v39 = vadd.f32 %v722_v31, %v721_v26 }
  0xcd   : > { %v728_v37 = vsel %vm307_vm0, %v5939_v49, 0.0  ;;  %v729_v0 = vsel %vm307_vm0, %v5940_v5, 0.0  ;;  %v731_v51 = vsel %vm307_vm0, %v5941_v45, 0.0  ;;  %v733_v33 = vsel %vm307_vm0, %v5942_v38, 0.0 }
  0xce   : > { %977 = vst.msk [vmem:[#allocation2 + $0x508] sm:$0xff] %vm307_vm0, %v780_v46  ;;  %v781_v52 = vmul.f32 0.25, %v713_v29  ;;  %v720_v56 = vadd.f32 %v719_v15, %v718_v36  ;;  %v725_v23 = vadd.f32 %v724_v4, %v723_v39  ;;  %v730_v1 = vadd.f32 %v729_v0, %v728_v37 }
  0xcf   : > { %v735_v59 = vsel %vm307_vm0, %v5943_v57, 0.0  ;;  %v736_v6 = vsel %vm307_vm0, %v5944_v63, 0.0  ;;  %v738_v9 = vsel %vm307_vm0, %v5945_v2, 0.0  ;;  %v740_v22 = vsel %vm307_vm0, %v5946_v18, 0.0 }
  0xd0   : > { %978 = vst.msk [vmem:[#allocation2 + $0x510] sm:$0xff] %vm307_vm0, %v781_v52  ;;  %v782_v35 = vmul.f32 0.25, %v720_v56  ;;  %v727_v7 = vadd.f32 %v726_v44, %v725_v23  ;;  %v732_v10 = vadd.f32 %v731_v51, %v730_v1  ;;  %v737_v14 = vadd.f32 %v736_v6, %v735_v59 }
  0xd1   : > { %v742_v55 = vsel %vm307_vm0, %v5947_v8, 0.0  ;;  %v743_v50 = vsel %vm307_vm0, %v5948_v24, 0.0  ;;  %v745_v34 = vsel %vm307_vm0, %v5949_v27, 0.0  ;;  %v747_v20 = vsel %vm307_vm0, %v5950_v19, 0.0 }
  0xd2   : > { %979 = vst.msk [vmem:[#allocation2 + $0x528] sm:$0xff] %vm307_vm0, %v782_v35  ;;  %v783_v40 = vmul.f32 0.25, %v727_v7  ;;  %v734_v41 = vadd.f32 %v733_v33, %v732_v10  ;;  %v739_v11 = vadd.f32 %v738_v9, %v737_v14  ;;  %v744_v12 = vadd.f32 %v743_v50, %v742_v55 }
  0xd3   : > { %v749_v53 = vsel %vm307_vm0, %v5951_v42, 0.0  ;;  %v750_v54 = vsel %vm307_vm0, %v4570_v16, 0.0  ;;  %v752_v17 = vsel %vm307_vm0, %v5952_v61, 0.0  ;;  %v754_v62 = vsel %vm307_vm0, %v4583_v58, 0.0 }
  0xd4   : > { %980 = vst.msk [vmem:[#allocation2 + $0x530] sm:$0xff] %vm307_vm0, %v783_v40  ;;  %v784_v13 = vmul.f32 0.25, %v734_v41  ;;  %v741_v21 = vadd.f32 %v740_v22, %v739_v11  ;;  %v746_v48 = vadd.f32 %v745_v34, %v744_v12  ;;  %v751_v47 = vadd.f32 %v750_v54, %v749_v53 }
  0xd6   : > { %981 = vst.msk [vmem:[#allocation2 + $0x548] sm:$0xff] %vm307_vm0, %v784_v13  ;;  %v785_v32 = vmul.f32 0.25, %v741_v21  ;;  %v748_v3 = vadd.f32 %v747_v20, %v746_v48  ;;  %v753_v28 = vadd.f32 %v752_v17, %v751_v47 }
  0xd8   : > { %982 = vst.msk [vmem:[#allocation2 + $0x550] sm:$0xff] %vm307_vm0, %v785_v32  ;;  %v786_v16 = vmul.f32 0.25, %v748_v3  ;;  %v755_v15 = vadd.f32 %v754_v62, %v753_v28 }
  0xda   : > { %983 = vst.msk [vmem:[#allocation2 + $0x568] sm:$0xff] %vm307_vm0, %v786_v16  ;;  %v787_v25 = vmul.f32 0.25, %v755_v15 }
  0xdc   : > { %984 = vst.msk [vmem:[#allocation2 + $0x570] sm:$0xff] %vm307_vm0, %v787_v25 }
  0xdd LB: >> { %s998_s29 = sld [smem:[#allocation3]]  ;;  %s3061_s30 = sld [smem:[#allocation3 + $0x1]]  ;;  %vm1014_vm1 = vcmask 1046528   ;;  %vm1034_vm2 = vcmask 1045504   ;;  %vm1056_vm3 = vcmask 1044480   ;;  %vm1078_vm4 = vcmask 1043456   ;;  %s3334_s28 = sphi %s4882_s28, %s990_s28  }
  0xde   : >> { %s991_s3 = sadd.s32 %s3334_s28, %s3396_s21  ;;  %s3062_s4 = sld [smem:[#allocation3 + $0x2]]  ;;  %vm1098_vm5 = vcmask 1042432   ;;  %vm1118_vm6 = vcmask 1041408   ;;  %vm2875_vm7 = vcmask 15364   ;;  %vm2878_vm8 = vcmask 13312  }
  0xdf   : >> { %s3060_s5 = sshll.u32 %s991_s3, 5  ;;  %s3063_s6 = sld [smem:[#allocation3 + $0x3]] }
  0xe0   : >> { %s4889_s7 = scalar_lea.vmem [#allocation2], %s3060_s5  ;;  %s4900_s8 = sld [smem:[#allocation3 + $0x4]] }
  0xe1   : >> { %s4906_s9 = sld [smem:[#allocation3 + $0x5]]  ;;  %s4913_s12 = sld [smem:[#allocation3 + $0x6]] }
  0xe2   : >> { %s4918_s14 = sld [smem:[#allocation3 + $0x7]]  ;;  %s4926_s15 = sld [smem:[#allocation3 + $0x8]] }
  0xe3   : >> { %v994_v58 = vld [vmem:[%s4889_s7] sm:$0xff]  ;;  %v4893_v26 = vld [vmem:[%s4889_s7 + $0x8] sm:$0xff]  ;;  %v4896_v30 = vld [vmem:[%s4889_s7 + $0x10] sm:$0xff]  ;;  %v999_v31 = vstv %s998_s29  ;;  %s4932_s16 = sld [smem:[#allocation3 + $0x9]]  ;;  %s4946_s18 = sld [smem:[#allocation3 + $0xa]] }
  0xe4   : >> { %v1000_v60 = vmul.f32 %v999_v31, %v994_v58  ;;  %v1001_v4 = vmul.f32 %v999_v31, %v4893_v26  ;;  %v1002_v46 = vmul.f32 %v999_v31, %v4896_v30  ;;  %v1007_v29 = vstv %s3061_s30  ;;  %v997_v23 = vld [vmem:[%s4889_s7 + $0x18] sm:$0xff]  ;;  %s4948_s19 = sld [smem:[#allocation3 + $0xb]]  ;;  %s4959_s20 = sld [smem:[#allocation3 + $0xc]] }
  0xe5   : >> { %v1008_v36 = vmul.f32 %v1007_v29, %v994_v58  ;;  %v1009_v39 = vmul.f32 %v1007_v29, %v4893_v26  ;;  %v1010_v43 = vmul.f32 %v1007_v29, %v4896_v30  ;;  %v1027_v44 = vstv %s3062_s4  ;;  %v3068_v29 = vld [vmem:[%s4889_s7 + $0x20] sm:$0xff]  ;;  %s4971_s22 = sld [smem:[#allocation3 + $0xd]]  ;;  %s4973_s23 = sld [smem:[#allocation3 + $0xe]] }
  0xe6   : >> { %v1028_v49 = vmul.f32 %v1027_v44, %v994_v58  ;;  %v1029_v37 = vmul.f32 %v1027_v44, %v4893_v26  ;;  %v1030_v5 = vmul.f32 %v1027_v44, %v4896_v30  ;;  %v1047_v0 = vstv %s3063_s6  ;;  %s4987_s24 = sld [smem:[#allocation3 + $0xf]]  ;;  %s4991_s25 = sld [smem:[#allocation3 + $0x10]] }
  0xe7   : >> { %v1015_v45 = vrot.slane %v1008_v36, 1  ;;  %v1016_v51 = vrot.slane %v1009_v39, 1  ;;  %v1018_v52 = vrot.slane %v1010_v43, 1  ;;  %v1048_v56 = vmul.f32 %v1047_v0, %v994_v58  ;;  %v4939_v36 = vld [vmem:[%s4889_s7 + $0x28] sm:$0xff]  ;;  %s5006_s26 = sld [smem:[#allocation3 + $0x11]]  ;;  %s5019_s27 = sld [smem:[#allocation3 + $0x12]] }
  0xe8   : >> { %v1035_v1 = vrot.slane %v1028_v49, 2  ;;  %v1036_v38 = vrot.slane %v1029_v37, 2  ;;  %v1038_v33 = vrot.slane %v1030_v5, 2  ;;  %v1049_v57 = vmul.f32 %v1047_v0, %v4893_v26  ;;  %v4943_v49 = vld [vmem:[%s4889_s7 + $0x30] sm:$0xff]  ;;  %s5021_s29 = sld [smem:[#allocation3 + $0x13]]  ;;  %s5023_s30 = sld [smem:[#allocation3 + $0x14]] }
  0xe9   : >> { %v1017_v59 = vsel %vm1014_vm1, %v1015_v45, %v1016_v51  ;;  %v1019_v63 = vsel %vm1014_vm1, %v1016_v51, %v1018_v52  ;;  %v1025_v6 = vadd.f32 %v1018_v52, %v1002_v46  ;;  %v1050_v2 = vmul.f32 %v1047_v0, %v4896_v30  ;;  %s5025_s3 = sld [smem:[#allocation3 + $0x15]]  ;;  %s5048_s4 = sld [smem:[#allocation3 + $0x16]] }
  0xea   : >> { %v1023_v9 = vadd.f32 %v1017_v59, %v1000_v60  ;;  %v1024_v35 = vadd.f32 %v1019_v63, %v1001_v4  ;;  %v1037_v7 = vsel %vm1034_vm2, %v1035_v1, %v1036_v38  ;;  %v1039_v10 = vsel %vm1034_vm2, %v1036_v38, %v1038_v33  ;;  %s5050_s5 = sld [smem:[#allocation3 + $0x17]]  ;;  %s5064_s6 = sld [smem:[#allocation3 + $0x18]] }
  0xeb   : >> { %v1045_v14 = vadd.f32 %v1038_v33, %v1025_v6  ;;  %v1051_v18 = vmul.f32 %v1047_v0, %v997_v23  ;;  %v1057_v22 = vrot.slane %v1048_v56, 3  ;;  %v1058_v8 = vrot.slane %v1049_v57, 3 }
  0xec   : >> { %v1043_v55 = vadd.f32 %v1037_v7, %v1023_v9  ;;  %v1044_v24 = vadd.f32 %v1039_v10, %v1024_v35  ;;  %v1060_v50 = vrot.slane %v1050_v2, 3  ;;  %v1071_v27 = vstv %s4900_s8  ;;  %s5073_s8 = sld [smem:[#allocation3 + $0x19]] }
  0xed   : >> { %v1059_v34 = vsel %vm1056_vm3, %v1057_v22, %v1058_v8  ;;  %v1062_v40 = vrot.slane %v1051_v18, 3  ;;  %v1072_v41 = vmul.f32 %v1071_v27, %v4893_v26  ;;  %v1073_v11 = vmul.f32 %v1071_v27, %v4896_v30 }
  0xee   : >> { %v1061_v12 = vsel %vm1056_vm3, %v1058_v8, %v1060_v50  ;;  %v1067_v19 = vadd.f32 %v1059_v34, %v1043_v55  ;;  %v1074_v20 = vmul.f32 %v1071_v27, %v997_v23  ;;  %v1091_v42 = vstv %s4906_s9  ;;  %v4964_v27 = vld [vmem:[%s4889_s7 + $0x38] sm:$0xff]  ;;  %s5079_s9 = sld [smem:[#allocation3 + $0x1a]] }
  0xef   : >> { %v1063_v53 = vsel %vm1056_vm3, %v1060_v50, %v1062_v40  ;;  %v1068_v54 = vadd.f32 %v1061_v12, %v1044_v24  ;;  %v1079_v61 = vrot.slane %v1072_v41, 4  ;;  %v1080_v17 = vrot.slane %v1073_v11, 4 }
  0xf0   : >> { %v1069_v13 = vadd.f32 %v1063_v53, %v1045_v14  ;;  %v1082_v21 = vrot.slane %v1074_v20, 4  ;;  %v1092_v48 = vmul.f32 %v1091_v42, %v4893_v26  ;;  %v1093_v47 = vmul.f32 %v1091_v42, %v4896_v30 }
  0xf1   : >> { %v1081_v62 = vsel %vm1078_vm4, %v1079_v61, %v1080_v17  ;;  %v1087_v32 = vadd.f32 %v1079_v61, %v1067_v19  ;;  %v1094_v3 = vmul.f32 %v1091_v42, %v997_v23  ;;  %v1111_v28 = vstv %s4913_s12  ;;  %s5081_s12 = sld [smem:[#allocation3 + $0x1b]] }
  0xf2   : >> { %v1083_v16 = vsel %vm1078_vm4, %v1080_v17, %v1082_v21  ;;  %v1088_v15 = vadd.f32 %v1081_v62, %v1068_v54  ;;  %v1099_v25 = vrot.slane %v1092_v48, 5  ;;  %v1100_v58 = vrot.slane %v1093_v47, 5 }
  0xf3   : >> { %v1089_v31 = vadd.f32 %v1083_v16, %v1069_v13  ;;  %v1102_v60 = vrot.slane %v1094_v3, 5  ;;  %v1112_v4 = vmul.f32 %v1111_v28, %v4893_v26  ;;  %v1113_v46 = vmul.f32 %v1111_v28, %v4896_v30 }
  0xf4   : >> { %v1101_v39 = vsel %vm1098_vm5, %v1099_v25, %v1100_v58  ;;  %v1107_v43 = vadd.f32 %v1099_v25, %v1087_v32  ;;  %v1114_v44 = vmul.f32 %v1111_v28, %v997_v23  ;;  %v1138_v37 = vstv %s4918_s14  ;;  %s5093_s14 = sld [smem:[#allocation3 + $0x1c]] }
  0xf5   : >> { %v1103_v5 = vsel %vm1098_vm5, %v1100_v58, %v1102_v60  ;;  %v1108_v26 = vadd.f32 %v1101_v39, %v1088_v15  ;;  %v1119_v0 = vrot.slane %v1112_v4, 6  ;;  %v1120_v30 = vrot.slane %v1113_v46, 6 }
  0xf6   : >> { %v1109_v45 = vadd.f32 %v1103_v5, %v1089_v31  ;;  %v1122_v51 = vrot.slane %v1114_v44, 6  ;;  %v1139_v52 = vmul.f32 %v3068_v29, %v1138_v37  ;;  %v1140_v56 = vmul.f32 %v4939_v36, %v1138_v37 }
  0xf7   : >> { %v1121_v23 = vsel %vm1118_vm6, %v1119_v0, %v1120_v30  ;;  %v1127_v1 = vadd.f32 %v1119_v0, %v1107_v43  ;;  %v1141_v38 = vmul.f32 %v4943_v49, %v1138_v37  ;;  %v1146_v33 = vstv %s4926_s15  ;;  %s5101_s15 = sld [smem:[#allocation3 + $0x1d]] }
  0xf8   : >> { %v1123_v57 = vsel %vm1118_vm6, %v1120_v30, %v1122_v51  ;;  %v1128_v59 = vadd.f32 %v1121_v23, %v1108_v26  ;;  %v1147_v63 = vmul.f32 %v3068_v29, %v1146_v33  ;;  %v1148_v6 = vmul.f32 %v4939_v36, %v1146_v33 }
  0xf9   : >> { %v1129_v2 = vadd.f32 %v1123_v57, %v1109_v45  ;;  %v1142_v9 = vadd.f32 %v1139_v52, %v1127_v1  ;;  %v1149_v35 = vmul.f32 %v4943_v49, %v1146_v33  ;;  %v1165_v7 = vstv %s4932_s16  ;;  %s5108_s16 = sld [smem:[#allocation3 + $0x1e]] }
  0xfa   : >> { %v1143_v10 = vadd.f32 %v1140_v56, %v1128_v59  ;;  %v1153_v14 = vrot.slane %v1147_v63, 1  ;;  %v1154_v18 = vrot.slane %v1148_v6, 1  ;;  %v1166_v22 = vmul.f32 %v3068_v29, %v1165_v7 }
  0xfb   : >> { %v1144_v8 = vadd.f32 %v1141_v38, %v1129_v2  ;;  %v1156_v55 = vrot.slane %v1149_v35, 1  ;;  %v1167_v24 = vmul.f32 %v4939_v36, %v1165_v7  ;;  %v1168_v50 = vmul.f32 %v4943_v49, %v1165_v7  ;;  %v3080_v38 = vld [vmem:[%s4889_s7 + $0x40] sm:$0xff] }
  0xfc   : >> { %v1155_v34 = vsel %vm1014_vm1, %v1153_v14, %v1154_v18  ;;  %v1172_v40 = vrot.slane %v1166_v22, 2  ;;  %v1184_v41 = vstv %s4946_s18  ;;  %v1207_v11 = vstv %s4948_s19  ;;  %v5004_v14 = vld [vmem:[%s4889_s7 + $0x50] sm:$0xff]  ;;  %s5110_s18 = sld [smem:[#allocation3 + $0x1f]]  ;;  %s5128_s19 = sld [smem:[#allocation3 + $0x20]] }
  0xfd   : >> { %v1157_v12 = vsel %vm1014_vm1, %v1154_v18, %v1156_v55  ;;  %v1161_v19 = vadd.f32 %v1155_v34, %v1142_v9  ;;  %v1163_v20 = vadd.f32 %v1156_v55, %v1144_v8  ;;  %v1173_v42 = vrot.slane %v1167_v24, 2 }
  0xfe   : >> { %v1162_v53 = vadd.f32 %v1157_v12, %v1143_v10  ;;  %v1175_v54 = vrot.slane %v1168_v50, 2  ;;  %v1185_v61 = vmul.f32 %v3068_v29, %v1184_v41  ;;  %v1186_v17 = vmul.f32 %v4939_v36, %v1184_v41  ;;  %v5001_v10 = vld [vmem:[%s4889_s7 + $0x48] sm:$0xff] }
  0xff   : >> { %v1174_v13 = vsel %vm1034_vm2, %v1172_v40, %v1173_v42  ;;  %v1187_v21 = vmul.f32 %v4943_v49, %v1184_v41  ;;  %v1188_v48 = vmul.f32 %v4964_v27, %v1184_v41  ;;  %v1208_v47 = vmul.f32 %v4939_v36, %v1207_v11 }
 0x100   : >> { %v1176_v62 = vsel %vm1034_vm2, %v1173_v42, %v1175_v54  ;;  %v1180_v32 = vadd.f32 %v1174_v13, %v1161_v19  ;;  %v1182_v3 = vadd.f32 %v1175_v54, %v1163_v20  ;;  %v1193_v28 = vrot.slane %v1185_v61, 3 }
 0x101   : >> { %v1181_v16 = vadd.f32 %v1176_v62, %v1162_v53  ;;  %v1194_v15 = vrot.slane %v1186_v17, 3  ;;  %v1196_v25 = vrot.slane %v1187_v21, 3  ;;  %v1198_v58 = vrot.slane %v1188_v48, 3 }
 0x102   : >> { %v1209_v31 = vmul.f32 %v4943_v49, %v1207_v11  ;;  %v1210_v60 = vmul.f32 %v4964_v27, %v1207_v11  ;;  %v1214_v4 = vrot.slane %v1208_v47, 4  ;;  %v1226_v46 = vstv %s4959_s20  ;;  %s5139_s20 = sld [smem:[#allocation3 + $0x21]] }
 0x103   : >> { %v1195_v29 = vsel %vm1056_vm3, %v1193_v28, %v1194_v15  ;;  %v1197_v39 = vsel %vm1056_vm3, %v1194_v15, %v1196_v25  ;;  %v1199_v43 = vsel %vm1056_vm3, %v1196_v25, %v1198_v58  ;;  %v1227_v44 = vmul.f32 %v4939_v36, %v1226_v46  ;;  %v3083_v28 = vld [vmem:[%s4889_s7 + $0x58] sm:$0xff] }
 0x104   : >> { %v1203_v37 = vadd.f32 %v1195_v29, %v1180_v32  ;;  %v1204_v5 = vadd.f32 %v1197_v39, %v1181_v16  ;;  %v1205_v26 = vadd.f32 %v1199_v43, %v1182_v3  ;;  %v1215_v0 = vrot.slane %v1209_v31, 4 }
 0x105   : >> { %v1217_v30 = vrot.slane %v1210_v60, 4  ;;  %v1228_v45 = vmul.f32 %v4943_v49, %v1226_v46  ;;  %v1229_v51 = vmul.f32 %v4964_v27, %v1226_v46  ;;  %v1233_v52 = vrot.slane %v1227_v44, 5 }
 0x106   : >> { %v1216_v56 = vsel %vm1078_vm4, %v1214_v4, %v1215_v0  ;;  %v1222_v23 = vadd.f32 %v1214_v4, %v1203_v37  ;;  %v1245_v1 = vstv %s4971_s22  ;;  %v1271_v33 = vstv %s4973_s23  ;;  %s5145_s22 = sld [smem:[#allocation3 + $0x22]]  ;;  %s5147_s23 = sld [smem:[#allocation3 + $0x23]] }
 0x107   : >> { %v1218_v57 = vsel %vm1078_vm4, %v1215_v0, %v1217_v30  ;;  %v1223_v59 = vadd.f32 %v1216_v56, %v1204_v5  ;;  %v1234_v63 = vrot.slane %v1228_v45, 5  ;;  %v1236_v6 = vrot.slane %v1229_v51, 5 }
 0x108   : >> { %v1224_v2 = vadd.f32 %v1218_v57, %v1205_v26  ;;  %v1241_v9 = vadd.f32 %v1233_v52, %v1222_v23  ;;  %v1246_v35 = vmul.f32 %v4939_v36, %v1245_v1  ;;  %v1247_v7 = vmul.f32 %v4943_v49, %v1245_v1 }
 0x109   : >> { %v1235_v18 = vsel %vm1098_vm5, %v1233_v52, %v1234_v63  ;;  %v1237_v22 = vsel %vm1098_vm5, %v1234_v63, %v1236_v6  ;;  %v1248_v8 = vmul.f32 %v4964_v27, %v1245_v1  ;;  %v1272_v55 = vmul.f32 %v3080_v38, %v1271_v33 }
 0x10a   : >> { %v1242_v24 = vadd.f32 %v1235_v18, %v1223_v59  ;;  %v1243_v50 = vadd.f32 %v1237_v22, %v1224_v2  ;;  %v1252_v36 = vrot.slane %v1246_v35, 6  ;;  %v1253_v34 = vrot.slane %v1247_v7, 6 }
 0x10b   : >> { %v1255_v40 = vrot.slane %v1248_v8, 6  ;;  %v1273_v49 = vmul.f32 %v5001_v10, %v1271_v33  ;;  %v1274_v41 = vmul.f32 %v5004_v14, %v1271_v33  ;;  %v1279_v11 = vstv %s4987_s24  ;;  %s5160_s24 = sld [smem:[#allocation3 + $0x24]] }
 0x10c   : >> { %v1254_v12 = vsel %vm1118_vm6, %v1252_v36, %v1253_v34  ;;  %v1260_v19 = vadd.f32 %v1252_v36, %v1241_v9  ;;  %v1280_v20 = vmul.f32 %v3080_v38, %v1279_v11  ;;  %v1281_v42 = vmul.f32 %v5001_v10, %v1279_v11 }
 0x10d   : >> { %v1256_v27 = vsel %vm1118_vm6, %v1253_v34, %v1255_v40  ;;  %v1261_v53 = vadd.f32 %v1254_v12, %v1242_v24  ;;  %v1282_v54 = vmul.f32 %v5004_v14, %v1279_v11  ;;  %v1298_v61 = vstv %s4991_s25  ;;  %s5162_s25 = sld [smem:[#allocation3 + $0x25]] }
 0x10e   : >> { %v1262_v17 = vadd.f32 %v1256_v27, %v1243_v50  ;;  %v1275_v13 = vadd.f32 %v1272_v55, %v1260_v19  ;;  %v1286_v21 = vrot.slane %v1280_v20, 1  ;;  %v1287_v48 = vrot.slane %v1281_v42, 1 }
 0x10f   : >> { %v1276_v47 = vadd.f32 %v1273_v49, %v1261_v53  ;;  %v1289_v62 = vrot.slane %v1282_v54, 1  ;;  %v1299_v32 = vmul.f32 %v3080_v38, %v1298_v61  ;;  %v1300_v3 = vmul.f32 %v5001_v10, %v1298_v61 }
 0x110   : >> { %v1277_v16 = vadd.f32 %v1274_v41, %v1262_v17  ;;  %v1288_v15 = vsel %vm1014_vm1, %v1286_v21, %v1287_v48  ;;  %v1301_v25 = vmul.f32 %v5004_v14, %v1298_v61  ;;  %v1317_v58 = vstv %s5006_s26  ;;  %v3092_v61 = vld [vmem:[%s4889_s7 + $0x60] sm:$0xff]  ;;  %v5057_v17 = vld [vmem:[%s4889_s7 + $0x68] sm:$0xff]  ;;  %s5182_s26 = sld [smem:[#allocation3 + $0x26]] }
 0x111   : >> { %v1290_v31 = vsel %vm1014_vm1, %v1287_v48, %v1289_v62  ;;  %v1294_v60 = vadd.f32 %v1288_v15, %v1275_v13  ;;  %v1305_v4 = vrot.slane %v1299_v32, 2  ;;  %v1306_v46 = vrot.slane %v1300_v3, 2 }
 0x112   : >> { %v1295_v29 = vadd.f32 %v1290_v31, %v1276_v47  ;;  %v1296_v39 = vadd.f32 %v1289_v62, %v1277_v16  ;;  %v1308_v43 = vrot.slane %v1301_v25, 2  ;;  %v1318_v44 = vmul.f32 %v3080_v38, %v1317_v58  ;;  %v5062_v47 = vld [vmem:[%s4889_s7 + $0x70] sm:$0xff] }
 0x113   : >> { %v1307_v37 = vsel %vm1034_vm2, %v1305_v4, %v1306_v46  ;;  %v1319_v5 = vmul.f32 %v5001_v10, %v1317_v58  ;;  %v1320_v26 = vmul.f32 %v5004_v14, %v1317_v58  ;;  %v1321_v0 = vmul.f32 %v3083_v28, %v1317_v58 }
 0x114   : >> { %v1309_v30 = vsel %vm1034_vm2, %v1306_v46, %v1308_v43  ;;  %v1313_v45 = vadd.f32 %v1307_v37, %v1294_v60  ;;  %v1315_v51 = vadd.f32 %v1308_v43, %v1296_v39  ;;  %v1326_v52 = vrot.slane %v1318_v44, 3 }
 0x115   : >> { %v1314_v56 = vadd.f32 %v1309_v30, %v1295_v29  ;;  %v1327_v23 = vrot.slane %v1319_v5, 3  ;;  %v1329_v1 = vrot.slane %v1320_v26, 3  ;;  %v1331_v33 = vrot.slane %v1321_v0, 3 }
 0x116   : >> { %v1340_v57 = vstv %s5019_s27  ;;  %v1359_v59 = vstv %s5021_s29  ;;  %v1378_v38 = vstv %s5023_s30  ;;  %v1404_v63 = vstv %s5025_s3  ;;  %s5192_s27 = sld [smem:[#allocation3 + $0x27]]  ;;  %s5195_s29 = sld [smem:[#allocation3 + $0x28]] }
 0x117   : >> { %v1328_v6 = vsel %vm1056_vm3, %v1326_v52, %v1327_v23  ;;  %v1330_v2 = vsel %vm1056_vm3, %v1327_v23, %v1329_v1  ;;  %v1332_v9 = vsel %vm1056_vm3, %v1329_v1, %v1331_v33  ;;  %v1341_v35 = vmul.f32 %v5001_v10, %v1340_v57  ;;  %v3095_v33 = vld [vmem:[%s4889_s7 + $0x78] sm:$0xff]  ;;  %s5197_s30 = sld [smem:[#allocation3 + $0x29]]  ;;  %s5212_s3 = sld [smem:[#allocation3 + $0x2a]] }
 0x118   : >> { %v1336_v7 = vadd.f32 %v1328_v6, %v1313_v45  ;;  %v1337_v18 = vadd.f32 %v1330_v2, %v1314_v56  ;;  %v1338_v22 = vadd.f32 %v1332_v9, %v1315_v51  ;;  %v1342_v8 = vmul.f32 %v5004_v14, %v1340_v57 }
 0x119   : >> { %v1343_v55 = vmul.f32 %v3083_v28, %v1340_v57  ;;  %v1347_v24 = vrot.slane %v1341_v35, 4  ;;  %v1360_v50 = vmul.f32 %v5001_v10, %v1359_v59  ;;  %v1361_v36 = vmul.f32 %v5004_v14, %v1359_v59 }
 0x11a   : >> { %v1348_v34 = vrot.slane %v1342_v8, 4  ;;  %v1362_v40 = vmul.f32 %v3083_v28, %v1359_v59  ;;  %v1379_v49 = vmul.f32 %v5001_v10, %v1378_v38  ;;  %v1380_v41 = vmul.f32 %v5004_v14, %v1378_v38 }
 0x11b   : >> { %v1350_v11 = vrot.slane %v1343_v55, 4  ;;  %v1355_v12 = vadd.f32 %v1347_v24, %v1336_v7  ;;  %v1366_v19 = vrot.slane %v1360_v50, 5  ;;  %v1367_v20 = vrot.slane %v1361_v36, 5 }
 0x11c   : >> { %v1349_v42 = vsel %vm1078_vm4, %v1347_v24, %v1348_v34  ;;  %v1369_v27 = vrot.slane %v1362_v40, 5  ;;  %v1381_v53 = vmul.f32 %v3083_v28, %v1378_v38  ;;  %v1385_v54 = vrot.slane %v1379_v49, 6 }
 0x11d   : >> { %v1351_v13 = vsel %vm1078_vm4, %v1348_v34, %v1350_v11  ;;  %v1356_v21 = vadd.f32 %v1349_v42, %v1337_v18  ;;  %v1368_v10 = vsel %vm1098_vm5, %v1366_v19, %v1367_v20  ;;  %v1374_v48 = vadd.f32 %v1366_v19, %v1355_v12 }
 0x11e   : >> { %v1357_v14 = vadd.f32 %v1351_v13, %v1338_v22  ;;  %v1370_v62 = vsel %vm1098_vm5, %v1367_v20, %v1369_v27  ;;  %v1386_v32 = vrot.slane %v1380_v41, 6  ;;  %v1388_v3 = vrot.slane %v1381_v53, 6 }
 0x11f   : >> { %v1375_v28 = vadd.f32 %v1368_v10, %v1356_v21  ;;  %v1393_v16 = vadd.f32 %v1385_v54, %v1374_v48  ;;  %v1405_v15 = vmul.f32 %v3092_v61, %v1404_v63  ;;  %v1406_v25 = vmul.f32 %v5057_v17, %v1404_v63 }
 0x120   : >> { %v1376_v58 = vadd.f32 %v1370_v62, %v1357_v14  ;;  %v1387_v31 = vsel %vm1118_vm6, %v1385_v54, %v1386_v32  ;;  %v1389_v60 = vsel %vm1118_vm6, %v1386_v32, %v1388_v3  ;;  %v1407_v4 = vmul.f32 %v5062_v47, %v1404_v63 }
 0x121   : >> { %v1394_v46 = vadd.f32 %v1387_v31, %v1375_v28  ;;  %v1408_v29 = vadd.f32 %v1405_v15, %v1393_v16  ;;  %v1412_v39 = vstv %s5048_s4  ;;  %v1431_v43 = vstv %s5050_s5  ;;  %s5220_s4 = sld [smem:[#allocation3 + $0x2b]]  ;;  %s5222_s5 = sld [smem:[#allocation3 + $0x2c]] }
 0x122   : >> { %v1395_v44 = vadd.f32 %v1389_v60, %v1376_v58  ;;  %v1413_v37 = vmul.f32 %v3092_v61, %v1412_v39  ;;  %v1414_v5 = vmul.f32 %v5057_v17, %v1412_v39  ;;  %v1415_v26 = vmul.f32 %v5062_v47, %v1412_v39 }
 0x123   : >> { %v1409_v0 = vadd.f32 %v1406_v25, %v1394_v46  ;;  %v1432_v30 = vmul.f32 %v3092_v61, %v1431_v43  ;;  %v1433_v45 = vmul.f32 %v5057_v17, %v1431_v43  ;;  %v1434_v51 = vmul.f32 %v5062_v47, %v1431_v43  ;;  %v3104_v43 = vld [vmem:[%s4889_s7 + $0x80] sm:$0xff] }
 0x124   : >> { %v1410_v52 = vadd.f32 %v1407_v4, %v1395_v44  ;;  %v1419_v56 = vrot.slane %v1413_v37, 1  ;;  %v1420_v23 = vrot.slane %v1414_v5, 1  ;;  %v1422_v1 = vrot.slane %v1415_v26, 1 }
 0x125   : >> { %v1438_v57 = vrot.slane %v1432_v30, 2  ;;  %v1439_v59 = vrot.slane %v1433_v45, 2  ;;  %v1441_v38 = vrot.slane %v1434_v51, 2  ;;  %v1450_v63 = vstv %s5064_s6  ;;  %v5119_v45 = vld [vmem:[%s4889_s7 + $0x90] sm:$0xff]  ;;  %s5236_s6 = sld [smem:[#allocation3 + $0x2d]] }
 0x126   : >> { %v1421_v6 = vsel %vm1014_vm1, %v1419_v56, %v1420_v23  ;;  %v1423_v2 = vsel %vm1014_vm1, %v1420_v23, %v1422_v1  ;;  %v1429_v9 = vadd.f32 %v1422_v1, %v1410_v52  ;;  %v1451_v35 = vmul.f32 %v3092_v61, %v1450_v63 }
 0x127   : >> { %v1427_v7 = vadd.f32 %v1421_v6, %v1408_v29  ;;  %v1428_v18 = vadd.f32 %v1423_v2, %v1409_v0  ;;  %v1440_v22 = vsel %vm1034_vm2, %v1438_v57, %v1439_v59  ;;  %v1442_v8 = vsel %vm1034_vm2, %v1439_v59, %v1441_v38  ;;  %v5115_v0 = vld [vmem:[%s4889_s7 + $0x88] sm:$0xff] }
 0x128   : >> { %v1448_v55 = vadd.f32 %v1441_v38, %v1429_v9  ;;  %v1452_v24 = vmul.f32 %v5057_v17, %v1450_v63  ;;  %v1453_v50 = vmul.f32 %v5062_v47, %v1450_v63  ;;  %v1454_v36 = vmul.f32 %v3095_v33, %v1450_v63 }
 0x129   : >> { %v1446_v34 = vadd.f32 %v1440_v22, %v1427_v7  ;;  %v1447_v40 = vadd.f32 %v1442_v8, %v1428_v18  ;;  %v1459_v49 = vrot.slane %v1451_v35, 3  ;;  %v1473_v41 = vstv %s5073_s8  ;;  %s5241_s8 = sld [smem:[#allocation3 + $0x2e]] }
 0x12a   : >> { %v1460_v11 = vrot.slane %v1452_v24, 3  ;;  %v1462_v12 = vrot.slane %v1453_v50, 3  ;;  %v1464_v19 = vrot.slane %v1454_v36, 3  ;;  %v1474_v20 = vmul.f32 %v5057_v17, %v1473_v41 }
 0x12b   : >> { %v1475_v42 = vmul.f32 %v5062_v47, %v1473_v41  ;;  %v1476_v27 = vmul.f32 %v3095_v33, %v1473_v41  ;;  %v1492_v53 = vstv %s5079_s9  ;;  %v1511_v54 = vstv %s5081_s12  ;;  %v5135_v41 = vld [vmem:[%s4889_s7 + $0x98] sm:$0xff]  ;;  %s5243_s9 = sld [smem:[#allocation3 + $0x2f]]  ;;  %s5263_s12 = sld [smem:[#allocation3 + $0x30]] }
 0x12c   : >> { %v1461_v61 = vsel %vm1056_vm3, %v1459_v49, %v1460_v11  ;;  %v1463_v13 = vsel %vm1056_vm3, %v1460_v11, %v1462_v12  ;;  %v1465_v21 = vsel %vm1056_vm3, %v1462_v12, %v1464_v19  ;;  %v1480_v10 = vrot.slane %v1474_v20, 4 }
 0x12d   : >> { %v1469_v48 = vadd.f32 %v1461_v61, %v1446_v34  ;;  %v1470_v14 = vadd.f32 %v1463_v13, %v1447_v40  ;;  %v1471_v62 = vadd.f32 %v1465_v21, %v1448_v55  ;;  %v1481_v32 = vrot.slane %v1475_v42, 4 }
 0x12e   : >> { %v1483_v3 = vrot.slane %v1476_v27, 4  ;;  %v1493_v28 = vmul.f32 %v5057_v17, %v1492_v53  ;;  %v1494_v16 = vmul.f32 %v5062_v47, %v1492_v53  ;;  %v1495_v15 = vmul.f32 %v3095_v33, %v1492_v53 }
 0x12f   : >> { %v1482_v25 = vsel %vm1078_vm4, %v1480_v10, %v1481_v32  ;;  %v1488_v58 = vadd.f32 %v1480_v10, %v1469_v48  ;;  %v1512_v31 = vmul.f32 %v5057_v17, %v1511_v54  ;;  %v1513_v60 = vmul.f32 %v5062_v47, %v1511_v54 }
 0x130   : >> { %v1484_v4 = vsel %vm1078_vm4, %v1481_v32, %v1483_v3  ;;  %v1489_v46 = vadd.f32 %v1482_v25, %v1470_v14  ;;  %v1499_v29 = vrot.slane %v1493_v28, 5  ;;  %v1500_v39 = vrot.slane %v1494_v16, 5 }
 0x131   : >> { %v1490_v44 = vadd.f32 %v1484_v4, %v1471_v62  ;;  %v1502_v37 = vrot.slane %v1495_v15, 5  ;;  %v1514_v5 = vmul.f32 %v3095_v33, %v1511_v54  ;;  %v1518_v26 = vrot.slane %v1512_v31, 6 }
 0x132   : >> { %v1501_v17 = vsel %vm1098_vm5, %v1499_v29, %v1500_v39  ;;  %v1507_v47 = vadd.f32 %v1499_v29, %v1488_v58  ;;  %v1519_v30 = vrot.slane %v1513_v60, 6  ;;  %v1537_v51 = vstv %s5093_s14  ;;  %s5268_s14 = sld [smem:[#allocation3 + $0x31]] }
 0x133   : >> { %v1503_v52 = vsel %vm1098_vm5, %v1500_v39, %v1502_v37  ;;  %v1508_v56 = vadd.f32 %v1501_v17, %v1489_v46  ;;  %v1521_v23 = vrot.slane %v1514_v5, 6  ;;  %v1538_v1 = vmul.f32 %v3104_v43, %v1537_v51 }
 0x134   : >> { %v1509_v57 = vadd.f32 %v1503_v52, %v1490_v44  ;;  %v1520_v33 = vsel %vm1118_vm6, %v1518_v26, %v1519_v30  ;;  %v1526_v59 = vadd.f32 %v1518_v26, %v1507_v47  ;;  %v1539_v38 = vmul.f32 %v5115_v0, %v1537_v51 }
 0x135   : >> { %v1522_v63 = vsel %vm1118_vm6, %v1519_v30, %v1521_v23  ;;  %v1527_v6 = vadd.f32 %v1520_v33, %v1508_v56  ;;  %v1540_v2 = vmul.f32 %v5119_v45, %v1537_v51  ;;  %v1545_v9 = vstv %s5101_s15  ;;  %s5271_s15 = sld [smem:[#allocation3 + $0x32]] }
 0x136   : >> { %v1528_v35 = vadd.f32 %v1522_v63, %v1509_v57  ;;  %v1541_v7 = vadd.f32 %v1538_v1, %v1526_v59  ;;  %v1546_v18 = vmul.f32 %v3104_v43, %v1545_v9  ;;  %v1547_v22 = vmul.f32 %v5115_v0, %v1545_v9 }
 0x137   : >> { %v1542_v8 = vadd.f32 %v1539_v38, %v1527_v6  ;;  %v1548_v55 = vmul.f32 %v5119_v45, %v1545_v9  ;;  %v1564_v24 = vstv %s5108_s16  ;;  %v1583_v50 = vstv %s5110_s18  ;;  %v3116_v9 = vld [vmem:[%s4889_s7 + $0xa0] sm:$0xff]  ;;  %s5281_s16 = sld [smem:[#allocation3 + $0x33]]  ;;  %s5283_s18 = sld [smem:[#allocation3 + $0x34]] }
 0x138   : >> { %v1543_v36 = vadd.f32 %v1540_v2, %v1528_v35  ;;  %v1552_v34 = vrot.slane %v1546_v18, 1  ;;  %v1553_v40 = vrot.slane %v1547_v22, 1  ;;  %v1565_v49 = vmul.f32 %v3104_v43, %v1564_v24 }
 0x139   : >> { %v1555_v11 = vrot.slane %v1548_v55, 1  ;;  %v1566_v12 = vmul.f32 %v5115_v0, %v1564_v24  ;;  %v1567_v19 = vmul.f32 %v5119_v45, %v1564_v24  ;;  %v1584_v20 = vmul.f32 %v3104_v43, %v1583_v50 }
 0x13a   : >> { %v1554_v42 = vsel %vm1014_vm1, %v1552_v34, %v1553_v40  ;;  %v1571_v27 = vrot.slane %v1565_v49, 2  ;;  %v1585_v53 = vmul.f32 %v5115_v0, %v1583_v50  ;;  %v1586_v54 = vmul.f32 %v5119_v45, %v1583_v50  ;;  %v5180_v34 = vld [vmem:[%s4889_s7 + $0xb0] sm:$0xff] }
 0x13b   : >> { %v1556_v61 = vsel %vm1014_vm1, %v1553_v40, %v1555_v11  ;;  %v1560_v13 = vadd.f32 %v1554_v42, %v1541_v7  ;;  %v1562_v21 = vadd.f32 %v1555_v11, %v1543_v36  ;;  %v1572_v10 = vrot.slane %v1566_v12, 2 }
 0x13c   : >> { %v1561_v48 = vadd.f32 %v1556_v61, %v1542_v8  ;;  %v1574_v14 = vrot.slane %v1567_v19, 2  ;;  %v1587_v62 = vmul.f32 %v5135_v41, %v1583_v50  ;;  %v1592_v32 = vrot.slane %v1584_v20, 3  ;;  %v5174_v8 = vld [vmem:[%s4889_s7 + $0xa8] sm:$0xff] }
 0x13d   : >> { %v1573_v3 = vsel %vm1034_vm2, %v1571_v27, %v1572_v10  ;;  %v1593_v28 = vrot.slane %v1585_v53, 3  ;;  %v1595_v16 = vrot.slane %v1586_v54, 3  ;;  %v1606_v15 = vstv %s5128_s19  ;;  %s5300_s19 = sld [smem:[#allocation3 + $0x35]] }
 0x13e   : >> { %v1575_v25 = vsel %vm1034_vm2, %v1572_v10, %v1574_v14  ;;  %v1579_v58 = vadd.f32 %v1573_v3, %v1560_v13  ;;  %v1581_v31 = vadd.f32 %v1574_v14, %v1562_v21  ;;  %v1597_v60 = vrot.slane %v1587_v62, 3 }
 0x13f   : >> { %v1580_v4 = vadd.f32 %v1575_v25, %v1561_v48  ;;  %v1594_v46 = vsel %vm1056_vm3, %v1592_v32, %v1593_v28  ;;  %v1596_v29 = vsel %vm1056_vm3, %v1593_v28, %v1595_v16  ;;  %v1607_v39 = vmul.f32 %v5115_v0, %v1606_v15 }
 0x140   : >> { %v1598_v43 = vsel %vm1056_vm3, %v1595_v16, %v1597_v60  ;;  %v1602_v44 = vadd.f32 %v1594_v46, %v1579_v58  ;;  %v1608_v37 = vmul.f32 %v5119_v45, %v1606_v15  ;;  %v1609_v5 = vmul.f32 %v5135_v41, %v1606_v15 }
 0x141   : >> { %v1603_v26 = vadd.f32 %v1596_v29, %v1580_v4  ;;  %v1604_v17 = vadd.f32 %v1598_v43, %v1581_v31  ;;  %v1613_v47 = vrot.slane %v1607_v39, 4  ;;  %v1625_v30 = vstv %s5139_s20  ;;  %v3119_v39 = vld [vmem:[%s4889_s7 + $0xb8] sm:$0xff]  ;;  %s5302_s20 = sld [smem:[#allocation3 + $0x36]] }
 0x142   : >> { %v1614_v51 = vrot.slane %v1608_v37, 4  ;;  %v1616_v52 = vrot.slane %v1609_v5, 4  ;;  %v1626_v56 = vmul.f32 %v5115_v0, %v1625_v30  ;;  %v1627_v23 = vmul.f32 %v5119_v45, %v1625_v30 }
 0x143   : >> { %v1621_v1 = vadd.f32 %v1613_v47, %v1602_v44  ;;  %v1628_v57 = vmul.f32 %v5135_v41, %v1625_v30  ;;  %v1644_v33 = vstv %s5145_s22  ;;  %v1670_v59 = vstv %s5147_s23  ;;  %s5319_s22 = sld [smem:[#allocation3 + $0x37]]  ;;  %s5321_s23 = sld [smem:[#allocation3 + $0x38]] }
 0x144   : >> { %v1615_v38 = vsel %vm1078_vm4, %v1613_v47, %v1614_v51  ;;  %v1617_v63 = vsel %vm1078_vm4, %v1614_v51, %v1616_v52  ;;  %v1632_v6 = vrot.slane %v1626_v56, 5  ;;  %v1633_v2 = vrot.slane %v1627_v23, 5 }
 0x145   : >> { %v1622_v35 = vadd.f32 %v1615_v38, %v1603_v26  ;;  %v1623_v7 = vadd.f32 %v1617_v63, %v1604_v17  ;;  %v1635_v18 = vrot.slane %v1628_v57, 5  ;;  %v1645_v22 = vmul.f32 %v5115_v0, %v1644_v33 }
 0x146   : >> { %v1634_v55 = vsel %vm1098_vm5, %v1632_v6, %v1633_v2  ;;  %v1640_v24 = vadd.f32 %v1632_v6, %v1621_v1  ;;  %v1646_v50 = vmul.f32 %v5119_v45, %v1644_v33  ;;  %v1647_v36 = vmul.f32 %v5135_v41, %v1644_v33 }
 0x147   : >> { %v1636_v40 = vsel %vm1098_vm5, %v1633_v2, %v1635_v18  ;;  %v1641_v49 = vadd.f32 %v1634_v55, %v1622_v35  ;;  %v1651_v11 = vrot.slane %v1645_v22, 6  ;;  %v1671_v0 = vmul.f32 %v3116_v9, %v1670_v59 }
 0x148   : >> { %v1642_v12 = vadd.f32 %v1636_v40, %v1623_v7  ;;  %v1652_v19 = vrot.slane %v1646_v50, 6  ;;  %v1654_v20 = vrot.slane %v1647_v36, 6  ;;  %v1672_v42 = vmul.f32 %v5174_v8, %v1670_v59 }
 0x149   : >> { %v1659_v27 = vadd.f32 %v1651_v11, %v1640_v24  ;;  %v1673_v53 = vmul.f32 %v5180_v34, %v1670_v59  ;;  %v1678_v45 = vstv %s5160_s24  ;;  %v1697_v54 = vstv %s5162_s25  ;;  %s5335_s24 = sld [smem:[#allocation3 + $0x39]]  ;;  %s5339_s25 = sld [smem:[#allocation3 + $0x3a]] }
 0x14a   : >> { %v1653_v41 = vsel %vm1118_vm6, %v1651_v11, %v1652_v19  ;;  %v1655_v61 = vsel %vm1118_vm6, %v1652_v19, %v1654_v20  ;;  %v1679_v13 = vmul.f32 %v3116_v9, %v1678_v45  ;;  %v1680_v21 = vmul.f32 %v5174_v8, %v1678_v45 }
 0x14b   : >> { %v1660_v10 = vadd.f32 %v1653_v41, %v1641_v49  ;;  %v1661_v48 = vadd.f32 %v1655_v61, %v1642_v12  ;;  %v1674_v14 = vadd.f32 %v1671_v0, %v1659_v27  ;;  %v1681_v62 = vmul.f32 %v5180_v34, %v1678_v45 }
 0x14c   : >> { %v1685_v32 = vrot.slane %v1679_v13, 1  ;;  %v1686_v3 = vrot.slane %v1680_v21, 1  ;;  %v1698_v28 = vmul.f32 %v3116_v9, %v1697_v54  ;;  %v1699_v16 = vmul.f32 %v5174_v8, %v1697_v54 }
 0x14d   : >> { %v1675_v15 = vadd.f32 %v1672_v42, %v1660_v10  ;;  %v1676_v25 = vadd.f32 %v1673_v53, %v1661_v48  ;;  %v1688_v58 = vrot.slane %v1681_v62, 1  ;;  %v1700_v31 = vmul.f32 %v5180_v34, %v1697_v54  ;;  %v3128_v62 = vld [vmem:[%s4889_s7 + $0xc0] sm:$0xff] }
 0x14e   : >> { %v1687_v60 = vsel %vm1014_vm1, %v1685_v32, %v1686_v3  ;;  %v1704_v4 = vrot.slane %v1698_v28, 2  ;;  %v1705_v46 = vrot.slane %v1699_v16, 2  ;;  %v1716_v29 = vstv %s5182_s26  ;;  %v5231_v32 = vld [vmem:[%s4889_s7 + $0xc8] sm:$0xff]  ;;  %s5354_s26 = sld [smem:[#allocation3 + $0x3b]] }
 0x14f   : >> { %v1689_v43 = vsel %vm1014_vm1, %v1686_v3, %v1688_v58  ;;  %v1693_v44 = vadd.f32 %v1687_v60, %v1674_v14  ;;  %v1695_v37 = vadd.f32 %v1688_v58, %v1676_v25  ;;  %v1707_v5 = vrot.slane %v1700_v31, 2  ;;  %v5234_v3 = vld [vmem:[%s4889_s7 + $0xd0] sm:$0xff] }
 0x150   : >> { %v1694_v26 = vadd.f32 %v1689_v43, %v1675_v15  ;;  %v1706_v17 = vsel %vm1034_vm2, %v1704_v4, %v1705_v46  ;;  %v1717_v47 = vmul.f32 %v3116_v9, %v1716_v29  ;;  %v1718_v30 = vmul.f32 %v5174_v8, %v1716_v29 }
 0x151   : >> { %v1708_v51 = vsel %vm1034_vm2, %v1705_v46, %v1707_v5  ;;  %v1712_v52 = vadd.f32 %v1706_v17, %v1693_v44  ;;  %v1714_v56 = vadd.f32 %v1707_v5, %v1695_v37  ;;  %v1719_v23 = vmul.f32 %v5180_v34, %v1716_v29 }
 0x152   : >> { %v1713_v1 = vadd.f32 %v1708_v51, %v1694_v26  ;;  %v1720_v57 = vmul.f32 %v3119_v39, %v1716_v29  ;;  %v1725_v33 = vrot.slane %v1717_v47, 3  ;;  %v1726_v59 = vrot.slane %v1718_v30, 3 }
 0x153   : >> { %v1728_v38 = vrot.slane %v1719_v23, 3  ;;  %v1739_v63 = vstv %s5192_s27  ;;  %v1758_v6 = vstv %s5195_s29  ;;  %v1777_v2 = vstv %s5197_s30  ;;  %s5367_s27 = sld [smem:[#allocation3 + $0x3c]]  ;;  %s5369_s29 = sld [smem:[#allocation3 + $0x3d]] }
 0x154   : >> { %v1727_v9 = vsel %vm1056_vm3, %v1725_v33, %v1726_v59  ;;  %v1730_v35 = vrot.slane %v1720_v57, 3  ;;  %v1740_v7 = vmul.f32 %v5174_v8, %v1739_v63  ;;  %v1741_v18 = vmul.f32 %v5180_v34, %v1739_v63  ;;  %s5371_s30 = sld [smem:[#allocation3 + $0x3e]] }
 0x155   : >> { %v1729_v22 = vsel %vm1056_vm3, %v1726_v59, %v1728_v38  ;;  %v1735_v55 = vadd.f32 %v1727_v9, %v1712_v52  ;;  %v1742_v24 = vmul.f32 %v3119_v39, %v1739_v63  ;;  %v1759_v50 = vmul.f32 %v5174_v8, %v1758_v6 }
 0x156   : >> { %v1731_v36 = vsel %vm1056_vm3, %v1728_v38, %v1730_v35  ;;  %v1736_v40 = vadd.f32 %v1729_v22, %v1713_v1  ;;  %v1746_v49 = vrot.slane %v1740_v7, 4  ;;  %v1747_v11 = vrot.slane %v1741_v18, 4 }
 0x157   : >> { %v1737_v0 = vadd.f32 %v1731_v36, %v1714_v56  ;;  %v1749_v12 = vrot.slane %v1742_v24, 4  ;;  %v1760_v19 = vmul.f32 %v5180_v34, %v1758_v6  ;;  %v1761_v20 = vmul.f32 %v3119_v39, %v1758_v6 }
 0x158   : >> { %v1748_v42 = vsel %vm1078_vm4, %v1746_v49, %v1747_v11  ;;  %v1754_v27 = vadd.f32 %v1746_v49, %v1735_v55  ;;  %v1765_v53 = vrot.slane %v1759_v50, 5  ;;  %v1778_v45 = vmul.f32 %v5174_v8, %v1777_v2 }
 0x159   : >> { %v1750_v54 = vsel %vm1078_vm4, %v1747_v11, %v1749_v12  ;;  %v1755_v41 = vadd.f32 %v1748_v42, %v1736_v40  ;;  %v1766_v61 = vrot.slane %v1760_v19, 5  ;;  %v1768_v13 = vrot.slane %v1761_v20, 5 }
 0x15a   : >> { %v1756_v21 = vadd.f32 %v1750_v54, %v1737_v0  ;;  %v1773_v10 = vadd.f32 %v1765_v53, %v1754_v27  ;;  %v1779_v48 = vmul.f32 %v5180_v34, %v1777_v2  ;;  %v1780_v14 = vmul.f32 %v3119_v39, %v1777_v2  ;;  %v3131_v2 = vld [vmem:[%s4889_s7 + $0xd8] sm:$0xff] }
 0x15b   : >> { %v1767_v8 = vsel %vm1098_vm5, %v1765_v53, %v1766_v61  ;;  %v1769_v28 = vsel %vm1098_vm5, %v1766_v61, %v1768_v13  ;;  %v1784_v16 = vrot.slane %v1778_v45, 6  ;;  %v1803_v15 = vstv %s5212_s3  ;;  %s5373_s3 = sld [smem:[#allocation3 + $0x3f]] }
 0x15c   : >> { %v1774_v34 = vadd.f32 %v1767_v8, %v1755_v41  ;;  %v1775_v25 = vadd.f32 %v1769_v28, %v1756_v21  ;;  %v1785_v58 = vrot.slane %v1779_v48, 6  ;;  %v1787_v31 = vrot.slane %v1780_v14, 6 }
 0x15d   : >> { %v1792_v60 = vadd.f32 %v1784_v16, %v1773_v10  ;;  %v1804_v4 = vmul.f32 %v3128_v62, %v1803_v15  ;;  %v1805_v46 = vmul.f32 %v5231_v32, %v1803_v15  ;;  %v1806_v29 = vmul.f32 %v5234_v3, %v1803_v15 }
 0x15e   : >> { %v1786_v39 = vsel %vm1118_vm6, %v1784_v16, %v1785_v58  ;;  %v1788_v43 = vsel %vm1118_vm6, %v1785_v58, %v1787_v31  ;;  %v1811_v44 = vstv %s5220_s4  ;;  %v1830_v37 = vstv %s5222_s5  ;;  %s5396_s4 = sld [smem:[#allocation3 + $0x40]]  ;;  %s5398_s5 = sld [smem:[#allocation3 + $0x41]] }
 0x15f   : >> { %v1793_v5 = vadd.f32 %v1786_v39, %v1774_v34  ;;  %v1794_v26 = vadd.f32 %v1788_v43, %v1775_v25  ;;  %v1807_v17 = vadd.f32 %v1804_v4, %v1792_v60  ;;  %v1812_v47 = vmul.f32 %v3128_v62, %v1811_v44 }
 0x160   : >> { %v1813_v30 = vmul.f32 %v5231_v32, %v1811_v44  ;;  %v1814_v51 = vmul.f32 %v5234_v3, %v1811_v44  ;;  %v1831_v52 = vmul.f32 %v3128_v62, %v1830_v37  ;;  %v1832_v56 = vmul.f32 %v5231_v32, %v1830_v37 }
 0x161   : >> { %v1808_v23 = vadd.f32 %v1805_v46, %v1793_v5  ;;  %v1809_v1 = vadd.f32 %v1806_v29, %v1794_v26  ;;  %v1818_v57 = vrot.slane %v1812_v47, 1  ;;  %v1833_v33 = vmul.f32 %v5234_v3, %v1830_v37  ;;  %v3140_v47 = vld [vmem:[%s4889_s7 + $0x300] sm:$0xff] }
 0x162   : >> { %v1819_v59 = vrot.slane %v1813_v30, 1  ;;  %v1821_v38 = vrot.slane %v1814_v51, 1  ;;  %v1837_v63 = vrot.slane %v1831_v52, 2  ;;  %v1838_v6 = vrot.slane %v1832_v56, 2 }
 0x163   : >> { %v1840_v9 = vrot.slane %v1833_v33, 2  ;;  %v1849_v35 = vstv %s5236_s6  ;;  %v1872_v7 = vstv %s5241_s8  ;;  %v1891_v18 = vstv %s5243_s9  ;;  %s5412_s6 = sld [smem:[#allocation3 + $0x42]]  ;;  %s5421_s8 = sld [smem:[#allocation3 + $0x43]] }
 0x164   : >> { %v1820_v22 = vsel %vm1014_vm1, %v1818_v57, %v1819_v59  ;;  %v1822_v55 = vsel %vm1014_vm1, %v1819_v59, %v1821_v38  ;;  %v1828_v24 = vadd.f32 %v1821_v38, %v1809_v1  ;;  %v1839_v50 = vsel %vm1034_vm2, %v1837_v63, %v1838_v6  ;;  %v5293_v1 = vld [vmem:[%s4889_s7 + $0x310] sm:$0xff]  ;;  %s5427_s9 = sld [smem:[#allocation3 + $0x44]] }
 0x165   : >> { %v1826_v36 = vadd.f32 %v1820_v22, %v1807_v17  ;;  %v1827_v40 = vadd.f32 %v1822_v55, %v1808_v23  ;;  %v1841_v49 = vsel %vm1034_vm2, %v1838_v6, %v1840_v9  ;;  %v1850_v11 = vmul.f32 %v3128_v62, %v1849_v35  ;;  %v5290_v23 = vld [vmem:[%s4889_s7 + $0x308] sm:$0xff] }
 0x166   : >> { %v1847_v0 = vadd.f32 %v1840_v9, %v1828_v24  ;;  %v1851_v12 = vmul.f32 %v5231_v32, %v1849_v35  ;;  %v1852_v19 = vmul.f32 %v5234_v3, %v1849_v35  ;;  %v1853_v20 = vmul.f32 %v3131_v2, %v1849_v35 }
 0x167   : >> { %v1845_v42 = vadd.f32 %v1839_v50, %v1826_v36  ;;  %v1846_v27 = vadd.f32 %v1841_v49, %v1827_v40  ;;  %v1858_v53 = vrot.slane %v1850_v11, 3  ;;  %v1873_v45 = vmul.f32 %v5231_v32, %v1872_v7 }
 0x168   : >> { %v1859_v54 = vrot.slane %v1851_v12, 3  ;;  %v1861_v41 = vrot.slane %v1852_v19, 3  ;;  %v1863_v61 = vrot.slane %v1853_v20, 3  ;;  %v1874_v13 = vmul.f32 %v5234_v3, %v1872_v7 }
 0x169   : >> { %v1875_v21 = vmul.f32 %v3131_v2, %v1872_v7  ;;  %v1879_v10 = vrot.slane %v1873_v45, 4  ;;  %v1892_v48 = vmul.f32 %v5231_v32, %v1891_v18  ;;  %v1893_v14 = vmul.f32 %v5234_v3, %v1891_v18  ;;  %v5312_v45 = vld [vmem:[%s4889_s7 + $0x318] sm:$0xff] }
 0x16a   : >> { %v1860_v62 = vsel %vm1056_vm3, %v1858_v53, %v1859_v54  ;;  %v1862_v8 = vsel %vm1056_vm3, %v1859_v54, %v1861_v41  ;;  %v1864_v28 = vsel %vm1056_vm3, %v1861_v41, %v1863_v61  ;;  %v1880_v16 = vrot.slane %v1874_v13, 4 }
 0x16b   : >> { %v1868_v15 = vadd.f32 %v1860_v62, %v1845_v42  ;;  %v1869_v34 = vadd.f32 %v1862_v8, %v1846_v27  ;;  %v1870_v25 = vadd.f32 %v1864_v28, %v1847_v0  ;;  %v1882_v58 = vrot.slane %v1875_v21, 4 }
 0x16c   : >> { %v1881_v31 = vsel %vm1078_vm4, %v1879_v10, %v1880_v16  ;;  %v1894_v60 = vmul.f32 %v3131_v2, %v1891_v18  ;;  %v1898_v4 = vrot.slane %v1892_v48, 5  ;;  %v1899_v46 = vrot.slane %v1893_v14, 5 }
 0x16d   : >> { %v1883_v29 = vsel %vm1078_vm4, %v1880_v16, %v1882_v58  ;;  %v1887_v39 = vadd.f32 %v1879_v10, %v1868_v15  ;;  %v1888_v43 = vadd.f32 %v1881_v31, %v1869_v34  ;;  %v1910_v44 = vstv %s5263_s12  ;;  %s5429_s12 = sld [smem:[#allocation3 + $0x45]] }
 0x16e   : >> { %v1889_v37 = vadd.f32 %v1883_v29, %v1870_v25  ;;  %v1900_v5 = vsel %vm1098_vm5, %v1898_v4, %v1899_v46  ;;  %v1901_v26 = vrot.slane %v1894_v60, 5  ;;  %v1911_v17 = vmul.f32 %v5231_v32, %v1910_v44 }
 0x16f   : >> { %v1906_v30 = vadd.f32 %v1898_v4, %v1887_v39  ;;  %v1907_v51 = vadd.f32 %v1900_v5, %v1888_v43  ;;  %v1912_v52 = vmul.f32 %v5234_v3, %v1910_v44  ;;  %v1913_v56 = vmul.f32 %v3131_v2, %v1910_v44 }
 0x170   : >> { %v1902_v57 = vsel %vm1098_vm5, %v1899_v46, %v1901_v26  ;;  %v1917_v33 = vrot.slane %v1911_v17, 6  ;;  %v1935_v59 = vstv %s5268_s14  ;;  %v1943_v38 = vstv %s5271_s15  ;;  %s5441_s14 = sld [smem:[#allocation3 + $0x46]]  ;;  %s5449_s15 = sld [smem:[#allocation3 + $0x47]] }
 0x171   : >> { %v1908_v63 = vadd.f32 %v1902_v57, %v1889_v37  ;;  %v1918_v6 = vrot.slane %v1912_v52, 6  ;;  %v1920_v9 = vrot.slane %v1913_v56, 6  ;;  %v1936_v35 = vmul.f32 %v3140_v47, %v1935_v59 }
 0x172   : >> { %v1925_v32 = vadd.f32 %v1917_v33, %v1906_v30  ;;  %v1937_v7 = vmul.f32 %v5290_v23, %v1935_v59  ;;  %v1938_v3 = vmul.f32 %v5293_v1, %v1935_v59  ;;  %v1944_v2 = vmul.f32 %v3140_v47, %v1943_v38 }
 0x173   : >> { %v1919_v18 = vsel %vm1118_vm6, %v1917_v33, %v1918_v6  ;;  %v1921_v22 = vsel %vm1118_vm6, %v1918_v6, %v1920_v9  ;;  %v1945_v55 = vmul.f32 %v5290_v23, %v1943_v38  ;;  %v1946_v24 = vmul.f32 %v5293_v1, %v1943_v38 }
 0x174   : >> { %v1926_v50 = vadd.f32 %v1919_v18, %v1907_v51  ;;  %v1927_v36 = vadd.f32 %v1921_v22, %v1908_v63  ;;  %v1939_v40 = vadd.f32 %v1936_v35, %v1925_v32  ;;  %v1950_v49 = vrot.slane %v1944_v2, 1 }
 0x175   : >> { %v1951_v11 = vrot.slane %v1945_v55, 1  ;;  %v1953_v0 = vrot.slane %v1946_v24, 1  ;;  %v1962_v12 = vstv %s5281_s16  ;;  %v1981_v19 = vstv %s5283_s18  ;;  %s5456_s16 = sld [smem:[#allocation3 + $0x48]]  ;;  %s5458_s18 = sld [smem:[#allocation3 + $0x49]] }
 0x176   : >> { %v1940_v20 = vadd.f32 %v1937_v7, %v1926_v50  ;;  %v1941_v42 = vadd.f32 %v1938_v3, %v1927_v36  ;;  %v1963_v27 = vmul.f32 %v3140_v47, %v1962_v12  ;;  %v1964_v53 = vmul.f32 %v5290_v23, %v1962_v12  ;;  %v3152_v3 = vld [vmem:[%s4889_s7 + $0x320] sm:$0xff] }
 0x177   : >> { %v1952_v54 = vsel %vm1014_vm1, %v1950_v49, %v1951_v11  ;;  %v1954_v41 = vsel %vm1014_vm1, %v1951_v11, %v1953_v0  ;;  %v1965_v61 = vmul.f32 %v5293_v1, %v1962_v12  ;;  %v1982_v13 = vmul.f32 %v3140_v47, %v1981_v19  ;;  %v5349_v11 = vld [vmem:[%s4889_s7 + $0x328] sm:$0xff] }
 0x178   : >> { %v1958_v21 = vadd.f32 %v1952_v54, %v1939_v40  ;;  %v1959_v10 = vadd.f32 %v1954_v41, %v1940_v20  ;;  %v1960_v48 = vadd.f32 %v1953_v0, %v1941_v42  ;;  %v1969_v14 = vrot.slane %v1963_v27, 2  ;;  %v5352_v0 = vld [vmem:[%s4889_s7 + $0x330] sm:$0xff] }
 0x179   : >> { %v1970_v62 = vrot.slane %v1964_v53, 2  ;;  %v1972_v8 = vrot.slane %v1965_v61, 2  ;;  %v1983_v28 = vmul.f32 %v5290_v23, %v1981_v19  ;;  %v1984_v16 = vmul.f32 %v5293_v1, %v1981_v19 }
 0x17a   : >> { %v1985_v15 = vmul.f32 %v5312_v45, %v1981_v19  ;;  %v1990_v34 = vrot.slane %v1982_v13, 3  ;;  %v2004_v25 = vstv %s5300_s19  ;;  %v2023_v58 = vstv %s5302_s20  ;;  %s5476_s19 = sld [smem:[#allocation3 + $0x4a]]  ;;  %s5487_s20 = sld [smem:[#allocation3 + $0x4b]] }
 0x17b   : >> { %v1971_v31 = vsel %vm1034_vm2, %v1969_v14, %v1970_v62  ;;  %v1973_v60 = vsel %vm1034_vm2, %v1970_v62, %v1972_v8  ;;  %v1979_v4 = vadd.f32 %v1972_v8, %v1960_v48  ;;  %v1991_v46 = vrot.slane %v1983_v28, 3 }
 0x17c   : >> { %v1977_v29 = vadd.f32 %v1971_v31, %v1958_v21  ;;  %v1978_v39 = vadd.f32 %v1973_v60, %v1959_v10  ;;  %v1993_v43 = vrot.slane %v1984_v16, 3  ;;  %v1995_v44 = vrot.slane %v1985_v15, 3 }
 0x17d   : >> { %v1992_v37 = vsel %vm1056_vm3, %v1990_v34, %v1991_v46  ;;  %v2005_v5 = vmul.f32 %v5290_v23, %v2004_v25  ;;  %v2006_v26 = vmul.f32 %v5293_v1, %v2004_v25  ;;  %v2007_v17 = vmul.f32 %v5312_v45, %v2004_v25 }
 0x17e   : >> { %v1994_v47 = vsel %vm1056_vm3, %v1991_v46, %v1993_v43  ;;  %v1996_v30 = vsel %vm1056_vm3, %v1993_v43, %v1995_v44  ;;  %v2000_v51 = vadd.f32 %v1992_v37, %v1977_v29  ;;  %v2024_v52 = vmul.f32 %v5290_v23, %v2023_v58  ;;  %v3155_v46 = vld [vmem:[%s4889_s7 + $0x338] sm:$0xff] }
 0x17f   : >> { %v2001_v56 = vadd.f32 %v1994_v47, %v1978_v39  ;;  %v2002_v57 = vadd.f32 %v1996_v30, %v1979_v4  ;;  %v2011_v33 = vrot.slane %v2005_v5, 4  ;;  %v2012_v59 = vrot.slane %v2006_v26, 4 }
 0x180   : >> { %v2014_v38 = vrot.slane %v2007_v17, 4  ;;  %v2025_v63 = vmul.f32 %v5293_v1, %v2023_v58  ;;  %v2026_v6 = vmul.f32 %v5312_v45, %v2023_v58  ;;  %v2030_v9 = vrot.slane %v2024_v52, 5 }
 0x181   : >> { %v2013_v35 = vsel %vm1078_vm4, %v2011_v33, %v2012_v59  ;;  %v2019_v32 = vadd.f32 %v2011_v33, %v2000_v51  ;;  %v2042_v7 = vstv %s5319_s22  ;;  %v2067_v2 = vstv %s5321_s23  ;;  %s5493_s22 = sld [smem:[#allocation3 + $0x4c]]  ;;  %s5495_s23 = sld [smem:[#allocation3 + $0x4d]] }
 0x182   : >> { %v2015_v18 = vsel %vm1078_vm4, %v2012_v59, %v2014_v38  ;;  %v2020_v22 = vadd.f32 %v2013_v35, %v2001_v56  ;;  %v2031_v55 = vrot.slane %v2025_v63, 5  ;;  %v2033_v24 = vrot.slane %v2026_v6, 5 }
 0x183   : >> { %v2021_v50 = vadd.f32 %v2015_v18, %v2002_v57  ;;  %v2038_v36 = vadd.f32 %v2030_v9, %v2019_v32  ;;  %v2043_v40 = vmul.f32 %v5290_v23, %v2042_v7  ;;  %v2044_v49 = vmul.f32 %v5293_v1, %v2042_v7 }
 0x184   : >> { %v2032_v12 = vsel %vm1098_vm5, %v2030_v9, %v2031_v55  ;;  %v2034_v19 = vsel %vm1098_vm5, %v2031_v55, %v2033_v24  ;;  %v2045_v20 = vmul.f32 %v5312_v45, %v2042_v7  ;;  %v2068_v42 = vmul.f32 %v3152_v3, %v2067_v2 }
 0x185   : >> { %v2039_v27 = vadd.f32 %v2032_v12, %v2020_v22  ;;  %v2040_v53 = vadd.f32 %v2034_v19, %v2021_v50  ;;  %v2049_v23 = vrot.slane %v2043_v40, 6  ;;  %v2050_v54 = vrot.slane %v2044_v49, 6 }
 0x186   : >> { %v2052_v41 = vrot.slane %v2045_v20, 6  ;;  %v2069_v1 = vmul.f32 %v5349_v11, %v2067_v2  ;;  %v2070_v61 = vmul.f32 %v5352_v0, %v2067_v2  ;;  %v2075_v13 = vstv %s5335_s24  ;;  %s5508_s24 = sld [smem:[#allocation3 + $0x4e]] }
 0x187   : >> { %v2051_v21 = vsel %vm1118_vm6, %v2049_v23, %v2050_v54  ;;  %v2057_v10 = vadd.f32 %v2049_v23, %v2038_v36  ;;  %v2076_v48 = vmul.f32 %v3152_v3, %v2075_v13  ;;  %v2077_v14 = vmul.f32 %v5349_v11, %v2075_v13 }
 0x188   : >> { %v2053_v45 = vsel %vm1118_vm6, %v2050_v54, %v2052_v41  ;;  %v2058_v62 = vadd.f32 %v2051_v21, %v2039_v27  ;;  %v2078_v8 = vmul.f32 %v5352_v0, %v2075_v13  ;;  %v2094_v28 = vstv %s5339_s25  ;;  %s5510_s25 = sld [smem:[#allocation3 + $0x4f]] }
 0x189   : >> { %v2059_v16 = vadd.f32 %v2053_v45, %v2040_v53  ;;  %v2071_v15 = vadd.f32 %v2068_v42, %v2057_v10  ;;  %v2082_v34 = vrot.slane %v2076_v48, 1  ;;  %v2083_v25 = vrot.slane %v2077_v14, 1 }
 0x18a   : >> { %v2072_v58 = vadd.f32 %v2069_v1, %v2058_v62  ;;  %v2085_v31 = vrot.slane %v2078_v8, 1  ;;  %v2095_v60 = vmul.f32 %v3152_v3, %v2094_v28  ;;  %v2096_v4 = vmul.f32 %v5349_v11, %v2094_v28 }
 0x18b   : >> { %v2073_v29 = vadd.f32 %v2070_v61, %v2059_v16  ;;  %v2084_v39 = vsel %vm1014_vm1, %v2082_v34, %v2083_v25  ;;  %v2097_v43 = vmul.f32 %v5352_v0, %v2094_v28  ;;  %v2113_v44 = vstv %s5354_s26  ;;  %v3164_v28 = vld [vmem:[%s4889_s7 + $0x340] sm:$0xff]  ;;  %v5405_v16 = vld [vmem:[%s4889_s7 + $0x348] sm:$0xff]  ;;  %s5530_s26 = sld [smem:[#allocation3 + $0x50]] }
 0x18c   : >> { %v2086_v37 = vsel %vm1014_vm1, %v2083_v25, %v2085_v31  ;;  %v2090_v5 = vadd.f32 %v2084_v39, %v2071_v15  ;;  %v2101_v26 = vrot.slane %v2095_v60, 2  ;;  %v2102_v17 = vrot.slane %v2096_v4, 2 }
 0x18d   : >> { %v2091_v47 = vadd.f32 %v2086_v37, %v2072_v58  ;;  %v2092_v30 = vadd.f32 %v2085_v31, %v2073_v29  ;;  %v2104_v51 = vrot.slane %v2097_v43, 2  ;;  %v2114_v52 = vmul.f32 %v3152_v3, %v2113_v44  ;;  %v5410_v58 = vld [vmem:[%s4889_s7 + $0x350] sm:$0xff] }
 0x18e   : >> { %v2103_v56 = vsel %vm1034_vm2, %v2101_v26, %v2102_v17  ;;  %v2115_v57 = vmul.f32 %v5349_v11, %v2113_v44  ;;  %v2116_v33 = vmul.f32 %v5352_v0, %v2113_v44  ;;  %v2117_v59 = vmul.f32 %v3155_v46, %v2113_v44 }
 0x18f   : >> { %v2105_v38 = vsel %vm1034_vm2, %v2102_v17, %v2104_v51  ;;  %v2109_v63 = vadd.f32 %v2103_v56, %v2090_v5  ;;  %v2111_v6 = vadd.f32 %v2104_v51, %v2092_v30  ;;  %v2122_v9 = vrot.slane %v2114_v52, 3 }
 0x190   : >> { %v2110_v35 = vadd.f32 %v2105_v38, %v2091_v47  ;;  %v2123_v32 = vrot.slane %v2115_v57, 3  ;;  %v2125_v7 = vrot.slane %v2116_v33, 3  ;;  %v2127_v2 = vrot.slane %v2117_v59, 3 }
 0x191   : >> { %v2136_v18 = vstv %s5367_s27  ;;  %v2155_v22 = vstv %s5369_s29  ;;  %v2174_v3 = vstv %s5371_s30  ;;  %v2199_v55 = vstv %s5373_s3  ;;  %s5540_s27 = sld [smem:[#allocation3 + $0x51]]  ;;  %s5543_s29 = sld [smem:[#allocation3 + $0x52]] }
 0x192   : >> { %v2124_v24 = vsel %vm1056_vm3, %v2122_v9, %v2123_v32  ;;  %v2126_v50 = vsel %vm1056_vm3, %v2123_v32, %v2125_v7  ;;  %v2128_v36 = vsel %vm1056_vm3, %v2125_v7, %v2127_v2  ;;  %v2137_v40 = vmul.f32 %v5349_v11, %v2136_v18  ;;  %v3167_v2 = vld [vmem:[%s4889_s7 + $0x358] sm:$0xff]  ;;  %s5545_s30 = sld [smem:[#allocation3 + $0x53]]  ;;  %s5560_s3 = sld [smem:[#allocation3 + $0x54]] }
 0x193   : >> { %v2132_v49 = vadd.f32 %v2124_v24, %v2109_v63  ;;  %v2133_v12 = vadd.f32 %v2126_v50, %v2110_v35  ;;  %v2134_v19 = vadd.f32 %v2128_v36, %v2111_v6  ;;  %v2138_v20 = vmul.f32 %v5352_v0, %v2136_v18 }
 0x194   : >> { %v2139_v42 = vmul.f32 %v3155_v46, %v2136_v18  ;;  %v2143_v27 = vrot.slane %v2137_v40, 4  ;;  %v2156_v53 = vmul.f32 %v5349_v11, %v2155_v22  ;;  %v2157_v23 = vmul.f32 %v5352_v0, %v2155_v22 }
 0x195   : >> { %v2144_v54 = vrot.slane %v2138_v20, 4  ;;  %v2158_v41 = vmul.f32 %v3155_v46, %v2155_v22  ;;  %v2175_v1 = vmul.f32 %v5349_v11, %v2174_v3  ;;  %v2176_v61 = vmul.f32 %v5352_v0, %v2174_v3 }
 0x196   : >> { %v2146_v13 = vrot.slane %v2139_v42, 4  ;;  %v2151_v21 = vadd.f32 %v2143_v27, %v2132_v49  ;;  %v2162_v10 = vrot.slane %v2156_v53, 5  ;;  %v2163_v48 = vrot.slane %v2157_v23, 5 }
 0x197   : >> { %v2145_v14 = vsel %vm1078_vm4, %v2143_v27, %v2144_v54  ;;  %v2165_v45 = vrot.slane %v2158_v41, 5  ;;  %v2177_v62 = vmul.f32 %v3155_v46, %v2174_v3  ;;  %v2181_v8 = vrot.slane %v2175_v1, 6 }
 0x198   : >> { %v2147_v15 = vsel %vm1078_vm4, %v2144_v54, %v2146_v13  ;;  %v2152_v34 = vadd.f32 %v2145_v14, %v2133_v12  ;;  %v2164_v11 = vsel %vm1098_vm5, %v2162_v10, %v2163_v48  ;;  %v2170_v25 = vadd.f32 %v2162_v10, %v2151_v21 }
 0x199   : >> { %v2153_v0 = vadd.f32 %v2147_v15, %v2134_v19  ;;  %v2166_v31 = vsel %vm1098_vm5, %v2163_v48, %v2165_v45  ;;  %v2182_v60 = vrot.slane %v2176_v61, 6  ;;  %v2184_v4 = vrot.slane %v2177_v62, 6 }
 0x19a   : >> { %v2171_v46 = vadd.f32 %v2164_v11, %v2152_v34  ;;  %v2189_v29 = vadd.f32 %v2181_v8, %v2170_v25  ;;  %v2200_v39 = vmul.f32 %v3164_v28, %v2199_v55  ;;  %v2201_v43 = vmul.f32 %v5405_v16, %v2199_v55 }
 0x19b   : >> { %v2172_v44 = vadd.f32 %v2166_v31, %v2153_v0  ;;  %v2183_v37 = vsel %vm1118_vm6, %v2181_v8, %v2182_v60  ;;  %v2185_v5 = vsel %vm1118_vm6, %v2182_v60, %v2184_v4  ;;  %v2202_v26 = vmul.f32 %v5410_v58, %v2199_v55 }
 0x19c   : >> { %v2190_v17 = vadd.f32 %v2183_v37, %v2171_v46  ;;  %v2203_v47 = vadd.f32 %v2200_v39, %v2189_v29  ;;  %v2207_v30 = vstv %s5396_s4  ;;  %v2226_v51 = vstv %s5398_s5  ;;  %s5568_s4 = sld [smem:[#allocation3 + $0x55]]  ;;  %s5570_s5 = sld [smem:[#allocation3 + $0x56]] }
 0x19d   : >> { %v2191_v52 = vadd.f32 %v2185_v5, %v2172_v44  ;;  %v2208_v56 = vmul.f32 %v3164_v28, %v2207_v30  ;;  %v2209_v57 = vmul.f32 %v5405_v16, %v2207_v30  ;;  %v2210_v33 = vmul.f32 %v5410_v58, %v2207_v30 }
 0x19e   : >> { %v2204_v59 = vadd.f32 %v2201_v43, %v2190_v17  ;;  %v2227_v38 = vmul.f32 %v3164_v28, %v2226_v51  ;;  %v2228_v63 = vmul.f32 %v5405_v16, %v2226_v51  ;;  %v2229_v6 = vmul.f32 %v5410_v58, %v2226_v51  ;;  %v3176_v51 = vld [vmem:[%s4889_s7 + $0x360] sm:$0xff] }
 0x19f   : >> { %v2205_v9 = vadd.f32 %v2202_v26, %v2191_v52  ;;  %v2214_v35 = vrot.slane %v2208_v56, 1  ;;  %v2215_v32 = vrot.slane %v2209_v57, 1  ;;  %v2217_v7 = vrot.slane %v2210_v33, 1 }
 0x1a0   : >> { %v2233_v18 = vrot.slane %v2227_v38, 2  ;;  %v2234_v22 = vrot.slane %v2228_v63, 2  ;;  %v2236_v3 = vrot.slane %v2229_v6, 2  ;;  %v2245_v55 = vstv %s5412_s6  ;;  %v5467_v63 = vld [vmem:[%s4889_s7 + $0x370] sm:$0xff]  ;;  %s5584_s6 = sld [smem:[#allocation3 + $0x57]] }
 0x1a1   : >> { %v2216_v24 = vsel %vm1014_vm1, %v2214_v35, %v2215_v32  ;;  %v2218_v50 = vsel %vm1014_vm1, %v2215_v32, %v2217_v7  ;;  %v2224_v36 = vadd.f32 %v2217_v7, %v2205_v9  ;;  %v2246_v40 = vmul.f32 %v3164_v28, %v2245_v55 }
 0x1a2   : >> { %v2222_v49 = vadd.f32 %v2216_v24, %v2203_v47  ;;  %v2223_v12 = vadd.f32 %v2218_v50, %v2204_v59  ;;  %v2235_v19 = vsel %vm1034_vm2, %v2233_v18, %v2234_v22  ;;  %v2237_v20 = vsel %vm1034_vm2, %v2234_v22, %v2236_v3  ;;  %v5463_v59 = vld [vmem:[%s4889_s7 + $0x368] sm:$0xff] }
 0x1a3   : >> { %v2243_v42 = vadd.f32 %v2236_v3, %v2224_v36  ;;  %v2247_v27 = vmul.f32 %v5405_v16, %v2245_v55  ;;  %v2248_v53 = vmul.f32 %v5410_v58, %v2245_v55  ;;  %v2249_v23 = vmul.f32 %v3167_v2, %v2245_v55 }
 0x1a4   : >> { %v2241_v54 = vadd.f32 %v2235_v19, %v2222_v49  ;;  %v2242_v41 = vadd.f32 %v2237_v20, %v2223_v12  ;;  %v2254_v1 = vrot.slane %v2246_v40, 3  ;;  %v2268_v61 = vstv %s5421_s8  ;;  %s5589_s8 = sld [smem:[#allocation3 + $0x58]] }
 0x1a5   : >> { %v2255_v13 = vrot.slane %v2247_v27, 3  ;;  %v2257_v21 = vrot.slane %v2248_v53, 3  ;;  %v2259_v10 = vrot.slane %v2249_v23, 3  ;;  %v2269_v48 = vmul.f32 %v5405_v16, %v2268_v61 }
 0x1a6   : >> { %v2270_v14 = vmul.f32 %v5410_v58, %v2268_v61  ;;  %v2271_v45 = vmul.f32 %v3167_v2, %v2268_v61  ;;  %v2287_v62 = vstv %s5427_s9  ;;  %v2306_v8 = vstv %s5429_s12  ;;  %v5483_v61 = vld [vmem:[%s4889_s7 + $0x378] sm:$0xff]  ;;  %s5591_s9 = sld [smem:[#allocation3 + $0x59]]  ;;  %s5611_s12 = sld [smem:[#allocation3 + $0x5a]] }
 0x1a7   : >> { %v2256_v28 = vsel %vm1056_vm3, %v2254_v1, %v2255_v13  ;;  %v2258_v15 = vsel %vm1056_vm3, %v2255_v13, %v2257_v21  ;;  %v2260_v34 = vsel %vm1056_vm3, %v2257_v21, %v2259_v10  ;;  %v2275_v11 = vrot.slane %v2269_v48, 4 }
 0x1a8   : >> { %v2264_v25 = vadd.f32 %v2256_v28, %v2241_v54  ;;  %v2265_v0 = vadd.f32 %v2258_v15, %v2242_v41  ;;  %v2266_v31 = vadd.f32 %v2260_v34, %v2243_v42  ;;  %v2276_v60 = vrot.slane %v2270_v14, 4 }
 0x1a9   : >> { %v2278_v4 = vrot.slane %v2271_v45, 4  ;;  %v2288_v46 = vmul.f32 %v5405_v16, %v2287_v62  ;;  %v2289_v29 = vmul.f32 %v5410_v58, %v2287_v62  ;;  %v2290_v39 = vmul.f32 %v3167_v2, %v2287_v62 }
 0x1aa   : >> { %v2277_v43 = vsel %vm1078_vm4, %v2275_v11, %v2276_v60  ;;  %v2283_v44 = vadd.f32 %v2275_v11, %v2264_v25  ;;  %v2307_v37 = vmul.f32 %v5405_v16, %v2306_v8  ;;  %v2308_v5 = vmul.f32 %v5410_v58, %v2306_v8 }
 0x1ab   : >> { %v2279_v26 = vsel %vm1078_vm4, %v2276_v60, %v2278_v4  ;;  %v2284_v17 = vadd.f32 %v2277_v43, %v2265_v0  ;;  %v2294_v47 = vrot.slane %v2288_v46, 5  ;;  %v2295_v30 = vrot.slane %v2289_v29, 5 }
 0x1ac   : >> { %v2285_v52 = vadd.f32 %v2279_v26, %v2266_v31  ;;  %v2297_v56 = vrot.slane %v2290_v39, 5  ;;  %v2309_v57 = vmul.f32 %v3167_v2, %v2306_v8  ;;  %v2313_v33 = vrot.slane %v2307_v37, 6 }
 0x1ad   : >> { %v2296_v16 = vsel %vm1098_vm5, %v2294_v47, %v2295_v30  ;;  %v2302_v58 = vadd.f32 %v2294_v47, %v2283_v44  ;;  %v2314_v38 = vrot.slane %v2308_v5, 6  ;;  %v2331_v6 = vstv %s5441_s14  ;;  %s5616_s14 = sld [smem:[#allocation3 + $0x5c]] }
 0x1ae   : >> { %v2298_v9 = vsel %vm1098_vm5, %v2295_v30, %v2297_v56  ;;  %v2303_v35 = vadd.f32 %v2296_v16, %v2284_v17  ;;  %v2316_v32 = vrot.slane %v2309_v57, 6  ;;  %v2332_v7 = vmul.f32 %v3176_v51, %v2331_v6 }
 0x1af   : >> { %v2304_v18 = vadd.f32 %v2298_v9, %v2285_v52  ;;  %v2315_v2 = vsel %vm1118_vm6, %v2313_v33, %v2314_v38  ;;  %v2321_v22 = vadd.f32 %v2313_v33, %v2302_v58  ;;  %v2333_v3 = vmul.f32 %v5463_v59, %v2331_v6 }
 0x1b0   : >> { %v2317_v55 = vsel %vm1118_vm6, %v2314_v38, %v2316_v32  ;;  %v2322_v24 = vadd.f32 %v2315_v2, %v2303_v35  ;;  %v2334_v50 = vmul.f32 %v5467_v63, %v2331_v6  ;;  %v2339_v36 = vstv %s5449_s15  ;;  %s5619_s15 = sld [smem:[#allocation3 + $0x5b]] }
 0x1b1   : >> { %v2323_v40 = vadd.f32 %v2317_v55, %v2304_v18  ;;  %v2335_v49 = vadd.f32 %v2332_v7, %v2321_v22  ;;  %v2340_v12 = vmul.f32 %v3176_v51, %v2339_v36  ;;  %v2341_v19 = vmul.f32 %v5463_v59, %v2339_v36 }
 0x1b2   : >> { %v2336_v20 = vadd.f32 %v2333_v3, %v2322_v24  ;;  %v2342_v42 = vmul.f32 %v5467_v63, %v2339_v36  ;;  %v2358_v27 = vstv %s5456_s16  ;;  %v2377_v53 = vstv %s5458_s18  ;;  %v3188_v36 = vld [vmem:[%s4889_s7 + $0x380] sm:$0xff]  ;;  %s5629_s16 = sld [smem:[#allocation3 + $0x5d]]  ;;  %s5631_s18 = sld [smem:[#allocation3 + $0x5e]] }
 0x1b3   : >> { %v2337_v23 = vadd.f32 %v2334_v50, %v2323_v40  ;;  %v2346_v54 = vrot.slane %v2340_v12, 1  ;;  %v2347_v41 = vrot.slane %v2341_v19, 1  ;;  %v2359_v1 = vmul.f32 %v3176_v51, %v2358_v27 }
 0x1b4   : >> { %v2349_v13 = vrot.slane %v2342_v42, 1  ;;  %v2360_v21 = vmul.f32 %v5463_v59, %v2358_v27  ;;  %v2361_v10 = vmul.f32 %v5467_v63, %v2358_v27  ;;  %v2378_v48 = vmul.f32 %v3176_v51, %v2377_v53 }
 0x1b5   : >> { %v2348_v14 = vsel %vm1014_vm1, %v2346_v54, %v2347_v41  ;;  %v2365_v45 = vrot.slane %v2359_v1, 2  ;;  %v2379_v62 = vmul.f32 %v5463_v59, %v2377_v53  ;;  %v2380_v8 = vmul.f32 %v5467_v63, %v2377_v53  ;;  %v5528_v54 = vld [vmem:[%s4889_s7 + $0x390] sm:$0xff] }
 0x1b6   : >> { %v2350_v28 = vsel %vm1014_vm1, %v2347_v41, %v2349_v13  ;;  %v2354_v15 = vadd.f32 %v2348_v14, %v2335_v49  ;;  %v2356_v34 = vadd.f32 %v2349_v13, %v2337_v23  ;;  %v2366_v11 = vrot.slane %v2360_v21, 2 }
 0x1b7   : >> { %v2355_v25 = vadd.f32 %v2350_v28, %v2336_v20  ;;  %v2368_v0 = vrot.slane %v2361_v10, 2  ;;  %v2381_v31 = vmul.f32 %v5483_v61, %v2377_v53  ;;  %v2386_v60 = vrot.slane %v2378_v48, 3  ;;  %v5522_v20 = vld [vmem:[%s4889_s7 + $0x388] sm:$0xff] }
 0x1b8   : >> { %v2367_v4 = vsel %vm1034_vm2, %v2365_v45, %v2366_v11  ;;  %v2387_v46 = vrot.slane %v2379_v62, 3  ;;  %v2389_v29 = vrot.slane %v2380_v8, 3  ;;  %v2400_v39 = vstv %s5476_s19  ;;  %s5648_s19 = sld [smem:[#allocation3 + $0x5f]] }
 0x1b9   : >> { %v2369_v43 = vsel %vm1034_vm2, %v2366_v11, %v2368_v0  ;;  %v2373_v44 = vadd.f32 %v2367_v4, %v2354_v15  ;;  %v2375_v37 = vadd.f32 %v2368_v0, %v2356_v34  ;;  %v2391_v5 = vrot.slane %v2381_v31, 3 }
 0x1ba   : >> { %v2374_v26 = vadd.f32 %v2369_v43, %v2355_v25  ;;  %v2388_v17 = vsel %vm1056_vm3, %v2386_v60, %v2387_v46  ;;  %v2390_v47 = vsel %vm1056_vm3, %v2387_v46, %v2389_v29  ;;  %v2401_v30 = vmul.f32 %v5463_v59, %v2400_v39 }
 0x1bb   : >> { %v2392_v51 = vsel %vm1056_vm3, %v2389_v29, %v2391_v5  ;;  %v2396_v52 = vadd.f32 %v2388_v17, %v2373_v44  ;;  %v2402_v56 = vmul.f32 %v5467_v63, %v2400_v39  ;;  %v2403_v57 = vmul.f32 %v5483_v61, %v2400_v39 }
 0x1bc   : >> { %v2397_v33 = vadd.f32 %v2390_v47, %v2374_v26  ;;  %v2398_v16 = vadd.f32 %v2392_v51, %v2375_v37  ;;  %v2407_v58 = vrot.slane %v2401_v30, 4  ;;  %v2419_v38 = vstv %s5487_s20  ;;  %v3191_v30 = vld [vmem:[%s4889_s7 + $0x398] sm:$0xff]  ;;  %s5650_s20 = sld [smem:[#allocation3 + $0x60]] }
 0x1bd   : >> { %v2408_v6 = vrot.slane %v2402_v56, 4  ;;  %v2410_v9 = vrot.slane %v2403_v57, 4  ;;  %v2420_v35 = vmul.f32 %v5463_v59, %v2419_v38  ;;  %v2421_v32 = vmul.f32 %v5467_v63, %v2419_v38 }
 0x1be   : >> { %v2415_v7 = vadd.f32 %v2407_v58, %v2396_v52  ;;  %v2422_v18 = vmul.f32 %v5483_v61, %v2419_v38  ;;  %v2438_v2 = vstv %s5493_s22  ;;  %v2463_v22 = vstv %s5495_s23  ;;  %s2873_s22 = smul.u32 24, %s3334_s28  ;;  %s990_s28 = sadd.s32 1, %s3334_s28  }
 0x1bf   : >> { %v2409_v3 = vsel %vm1078_vm4, %v2407_v58, %v2408_v6  ;;  %v2411_v55 = vsel %vm1078_vm4, %v2408_v6, %v2410_v9  ;;  %v2426_v24 = vrot.slane %v2420_v35, 5  ;;  %v2427_v50 = vrot.slane %v2421_v32, 5  ;;  %p987_p2 = scmp.ge.s32.totalorder %s990_s28, 9  }
 0x1c0   : >> { %v2416_v40 = vadd.f32 %v2409_v3, %v2397_v33  ;;  %v2417_v49 = vadd.f32 %v2411_v55, %v2398_v16  ;;  %v2429_v12 = vrot.slane %v2422_v18, 5  ;;  %v2439_v19 = vmul.f32 %v5463_v59, %v2438_v2  ;;  %s2874_s23 = scalar_lea.vmem %s3797_s17, %s2873_s22 }
 0x1c1   : >> { %v2428_v42 = vsel %vm1098_vm5, %v2426_v24, %v2427_v50  ;;  %v2434_v27 = vadd.f32 %v2426_v24, %v2415_v7  ;;  %v2440_v53 = vmul.f32 %v5467_v63, %v2438_v2  ;;  %v2441_v23 = vmul.f32 %v5483_v61, %v2438_v2 }
 0x1c2   : >> { %v2430_v41 = vsel %vm1098_vm5, %v2427_v50, %v2429_v12  ;;  %v2435_v1 = vadd.f32 %v2428_v42, %v2416_v40  ;;  %v2445_v13 = vrot.slane %v2439_v19, 6  ;;  %v2464_v59 = vmul.f32 %v3188_v36, %v2463_v22 }
 0x1c3   : >> { %v2436_v21 = vadd.f32 %v2430_v41, %v2417_v49  ;;  %v2446_v10 = vrot.slane %v2440_v53, 6  ;;  %v2448_v48 = vrot.slane %v2441_v23, 6  ;;  %v2465_v14 = vmul.f32 %v5522_v20, %v2463_v22 }
 0x1c4   : >> { %v2453_v45 = vadd.f32 %v2445_v13, %v2434_v27  ;;  %v2466_v62 = vmul.f32 %v5528_v54, %v2463_v22  ;;  %v2471_v63 = vstv %s5508_s24  ;;  %v2490_v8 = vstv %s5510_s25 }
 0x1c5   : >> { %v2447_v61 = vsel %vm1118_vm6, %v2445_v13, %v2446_v10  ;;  %v2449_v28 = vsel %vm1118_vm6, %v2446_v10, %v2448_v48  ;;  %v2472_v15 = vmul.f32 %v3188_v36, %v2471_v63  ;;  %v2473_v34 = vmul.f32 %v5522_v20, %v2471_v63 }
 0x1c6   : >> { %v2454_v11 = vadd.f32 %v2447_v61, %v2435_v1  ;;  %v2455_v25 = vadd.f32 %v2449_v28, %v2436_v21  ;;  %v2467_v0 = vadd.f32 %v2464_v59, %v2453_v45  ;;  %v2474_v31 = vmul.f32 %v5528_v54, %v2471_v63 }
 0x1c7   : >> { %v2478_v60 = vrot.slane %v2472_v15, 1  ;;  %v2479_v4 = vrot.slane %v2473_v34, 1  ;;  %v2491_v46 = vmul.f32 %v3188_v36, %v2490_v8  ;;  %v2492_v29 = vmul.f32 %v5522_v20, %v2490_v8 }
 0x1c8   : >> { %v2468_v39 = vadd.f32 %v2465_v14, %v2454_v11  ;;  %v2469_v43 = vadd.f32 %v2466_v62, %v2455_v25  ;;  %v2481_v44 = vrot.slane %v2474_v31, 1  ;;  %v2493_v37 = vmul.f32 %v5528_v54, %v2490_v8  ;;  %v3200_v31 = vld [vmem:[%s4889_s7 + $0x3a0] sm:$0xff] }
 0x1c9   : >> { %v2480_v5 = vsel %vm1014_vm1, %v2478_v60, %v2479_v4  ;;  %v2497_v26 = vrot.slane %v2491_v46, 2  ;;  %v2498_v17 = vrot.slane %v2492_v29, 2  ;;  %v2509_v47 = vstv %s5530_s26  ;;  %v5579_v60 = vld [vmem:[%s4889_s7 + $0x3a8] sm:$0xff] }
 0x1ca   : >> { %v2482_v51 = vsel %vm1014_vm1, %v2479_v4, %v2481_v44  ;;  %v2486_v52 = vadd.f32 %v2480_v5, %v2467_v0  ;;  %v2488_v56 = vadd.f32 %v2481_v44, %v2469_v43  ;;  %v2500_v57 = vrot.slane %v2493_v37, 2  ;;  %v5582_v4 = vld [vmem:[%s4889_s7 + $0x3b0] sm:$0xff] }
 0x1cb   : >> { %v2487_v33 = vadd.f32 %v2482_v51, %v2468_v39  ;;  %v2499_v16 = vsel %vm1034_vm2, %v2497_v26, %v2498_v17  ;;  %v2510_v58 = vmul.f32 %v3188_v36, %v2509_v47  ;;  %v2511_v38 = vmul.f32 %v5522_v20, %v2509_v47 }
 0x1cc   : >> { %v2501_v6 = vsel %vm1034_vm2, %v2498_v17, %v2500_v57  ;;  %v2505_v9 = vadd.f32 %v2499_v16, %v2486_v52  ;;  %v2507_v35 = vadd.f32 %v2500_v57, %v2488_v56  ;;  %v2512_v32 = vmul.f32 %v5528_v54, %v2509_v47 }
 0x1cd   : >> { %v2506_v7 = vadd.f32 %v2501_v6, %v2487_v33  ;;  %v2513_v18 = vmul.f32 %v3191_v30, %v2509_v47  ;;  %v2518_v2 = vrot.slane %v2510_v58, 3  ;;  %v2519_v22 = vrot.slane %v2511_v38, 3 }
 0x1ce   : >> { %v2521_v3 = vrot.slane %v2512_v32, 3  ;;  %v2532_v55 = vstv %s5540_s27  ;;  %v2551_v24 = vstv %s5543_s29  ;;  %v2570_v50 = vstv %s5545_s30 }
 0x1cf   : >> { %v2520_v36 = vsel %vm1056_vm3, %v2518_v2, %v2519_v22  ;;  %v2523_v40 = vrot.slane %v2513_v18, 3  ;;  %v2533_v49 = vmul.f32 %v5522_v20, %v2532_v55  ;;  %v2534_v12 = vmul.f32 %v5528_v54, %v2532_v55 }
 0x1d0   : >> { %v2522_v19 = vsel %vm1056_vm3, %v2519_v22, %v2521_v3  ;;  %v2528_v42 = vadd.f32 %v2520_v36, %v2505_v9  ;;  %v2535_v27 = vmul.f32 %v3191_v30, %v2532_v55  ;;  %v2552_v53 = vmul.f32 %v5522_v20, %v2551_v24 }
 0x1d1   : >> { %v2524_v23 = vsel %vm1056_vm3, %v2521_v3, %v2523_v40  ;;  %v2529_v41 = vadd.f32 %v2522_v19, %v2506_v7  ;;  %v2539_v1 = vrot.slane %v2533_v49, 4  ;;  %v2540_v13 = vrot.slane %v2534_v12, 4 }
 0x1d2   : >> { %v2530_v59 = vadd.f32 %v2524_v23, %v2507_v35  ;;  %v2542_v21 = vrot.slane %v2535_v27, 4  ;;  %v2553_v10 = vmul.f32 %v5528_v54, %v2551_v24  ;;  %v2554_v48 = vmul.f32 %v3191_v30, %v2551_v24 }
 0x1d3   : >> { %v2541_v14 = vsel %vm1078_vm4, %v2539_v1, %v2540_v13  ;;  %v2547_v45 = vadd.f32 %v2539_v1, %v2528_v42  ;;  %v2558_v62 = vrot.slane %v2552_v53, 5  ;;  %v2571_v63 = vmul.f32 %v5522_v20, %v2570_v50 }
 0x1d4   : >> { %v2543_v8 = vsel %vm1078_vm4, %v2540_v13, %v2542_v21  ;;  %v2548_v61 = vadd.f32 %v2541_v14, %v2529_v41  ;;  %v2559_v28 = vrot.slane %v2553_v10, 5  ;;  %v2561_v15 = vrot.slane %v2554_v48, 5 }
 0x1d5   : >> { %v2549_v34 = vadd.f32 %v2543_v8, %v2530_v59  ;;  %v2566_v11 = vadd.f32 %v2558_v62, %v2547_v45  ;;  %v2572_v25 = vmul.f32 %v5528_v54, %v2570_v50  ;;  %v2573_v0 = vmul.f32 %v3191_v30, %v2570_v50  ;;  %v3203_v50 = vld [vmem:[%s4889_s7 + $0x3b8] sm:$0xff] }
 0x1d6   : >> { %v2560_v20 = vsel %vm1098_vm5, %v2558_v62, %v2559_v28  ;;  %v2562_v46 = vsel %vm1098_vm5, %v2559_v28, %v2561_v15  ;;  %v2577_v29 = vrot.slane %v2571_v63, 6  ;;  %v2595_v39 = vstv %s5560_s3 }
 0x1d7   : >> { %v2567_v54 = vadd.f32 %v2560_v20, %v2548_v61  ;;  %v2568_v43 = vadd.f32 %v2562_v46, %v2549_v34  ;;  %v2578_v44 = vrot.slane %v2572_v25, 6  ;;  %v2580_v37 = vrot.slane %v2573_v0, 6 }
 0x1d8   : >> { %v2585_v5 = vadd.f32 %v2577_v29, %v2566_v11  ;;  %v2596_v26 = vmul.f32 %v3200_v31, %v2595_v39  ;;  %v2597_v17 = vmul.f32 %v5579_v60, %v2595_v39  ;;  %v2598_v47 = vmul.f32 %v5582_v4, %v2595_v39 }
 0x1d9   : >> { %v2579_v30 = vsel %vm1118_vm6, %v2577_v29, %v2578_v44  ;;  %v2581_v51 = vsel %vm1118_vm6, %v2578_v44, %v2580_v37  ;;  %v2603_v52 = vstv %s5568_s4  ;;  %v2622_v56 = vstv %s5570_s5 }
 0x1da   : >> { %v2586_v57 = vadd.f32 %v2579_v30, %v2567_v54  ;;  %v2587_v33 = vadd.f32 %v2581_v51, %v2568_v43  ;;  %v2599_v16 = vadd.f32 %v2596_v26, %v2585_v5  ;;  %v2604_v58 = vmul.f32 %v3200_v31, %v2603_v52 }
 0x1db   : >> { %v2605_v38 = vmul.f32 %v5579_v60, %v2603_v52  ;;  %v2606_v6 = vmul.f32 %v5582_v4, %v2603_v52  ;;  %v2623_v9 = vmul.f32 %v3200_v31, %v2622_v56  ;;  %v2624_v35 = vmul.f32 %v5579_v60, %v2622_v56 }
 0x1dc   : >> { %v2600_v32 = vadd.f32 %v2597_v17, %v2586_v57  ;;  %v2601_v7 = vadd.f32 %v2598_v47, %v2587_v33  ;;  %v2610_v18 = vrot.slane %v2604_v58, 1  ;;  %v2625_v2 = vmul.f32 %v5582_v4, %v2622_v56  ;;  %v3212_v58 = vld [vmem:[%s4889_s7 + $0x3c0] sm:$0xff] }
 0x1dd   : >> { %v2611_v22 = vrot.slane %v2605_v38, 1  ;;  %v2613_v3 = vrot.slane %v2606_v6, 1  ;;  %v2629_v55 = vrot.slane %v2623_v9, 2  ;;  %v2630_v24 = vrot.slane %v2624_v35, 2 }
 0x1de   : >> { %v2632_v36 = vrot.slane %v2625_v2, 2  ;;  %v2641_v40 = vstv %s5584_s6  ;;  %v2664_v49 = vstv %s5589_s8  ;;  %v2683_v12 = vstv %s5591_s9 }
 0x1df   : >> { %v2612_v19 = vsel %vm1014_vm1, %v2610_v18, %v2611_v22  ;;  %v2614_v42 = vsel %vm1014_vm1, %v2611_v22, %v2613_v3  ;;  %v2620_v27 = vadd.f32 %v2613_v3, %v2601_v7  ;;  %v2631_v53 = vsel %vm1034_vm2, %v2629_v55, %v2630_v24  ;;  %v5641_v7 = vld [vmem:[%s4889_s7 + $0x3d0] sm:$0xff] }
 0x1e0   : >> { %v2618_v23 = vadd.f32 %v2612_v19, %v2599_v16  ;;  %v2619_v41 = vadd.f32 %v2614_v42, %v2600_v32  ;;  %v2633_v1 = vsel %vm1034_vm2, %v2630_v24, %v2632_v36  ;;  %v2642_v13 = vmul.f32 %v3200_v31, %v2641_v40  ;;  %v5638_v32 = vld [vmem:[%s4889_s7 + $0x3c8] sm:$0xff] }
 0x1e1   : >> { %v2639_v59 = vadd.f32 %v2632_v36, %v2620_v27  ;;  %v2643_v21 = vmul.f32 %v5579_v60, %v2641_v40  ;;  %v2644_v10 = vmul.f32 %v5582_v4, %v2641_v40  ;;  %v2645_v48 = vmul.f32 %v3203_v50, %v2641_v40 }
 0x1e2   : >> { %v2637_v14 = vadd.f32 %v2631_v53, %v2618_v23  ;;  %v2638_v45 = vadd.f32 %v2633_v1, %v2619_v41  ;;  %v2650_v62 = vrot.slane %v2642_v13, 3  ;;  %v2665_v63 = vmul.f32 %v5579_v60, %v2664_v49 }
 0x1e3   : >> { %v2651_v8 = vrot.slane %v2643_v21, 3  ;;  %v2653_v61 = vrot.slane %v2644_v10, 3  ;;  %v2655_v28 = vrot.slane %v2645_v48, 3  ;;  %v2666_v15 = vmul.f32 %v5582_v4, %v2664_v49 }
 0x1e4   : >> { %v2667_v34 = vmul.f32 %v3203_v50, %v2664_v49  ;;  %v2671_v11 = vrot.slane %v2665_v63, 4  ;;  %v2684_v25 = vmul.f32 %v5579_v60, %v2683_v12  ;;  %v2685_v0 = vmul.f32 %v5582_v4, %v2683_v12  ;;  %v3215_v63 = vld [vmem:[%s4889_s7 + $0x3d8] sm:$0xff]  ;;  %s5665_s7 = sld [smem:[#allocation3 + $0x61]] }
 0x1e5   : >> { %v2652_v31 = vsel %vm1056_vm3, %v2650_v62, %v2651_v8  ;;  %v2654_v20 = vsel %vm1056_vm3, %v2651_v8, %v2653_v61  ;;  %v2656_v46 = vsel %vm1056_vm3, %v2653_v61, %v2655_v28  ;;  %v2672_v29 = vrot.slane %v2666_v15, 4 }
 0x1e6   : >> { %v2660_v39 = vadd.f32 %v2652_v31, %v2637_v14  ;;  %v2661_v54 = vadd.f32 %v2654_v20, %v2638_v45  ;;  %v2662_v43 = vadd.f32 %v2656_v46, %v2639_v59  ;;  %v2674_v44 = vrot.slane %v2667_v34, 4 }
 0x1e7   : >> { %v2673_v37 = vsel %vm1078_vm4, %v2671_v11, %v2672_v29  ;;  %v2686_v5 = vmul.f32 %v3203_v50, %v2683_v12  ;;  %v2690_v26 = vrot.slane %v2684_v25, 5  ;;  %v2691_v17 = vrot.slane %v2685_v0, 5 }
 0x1e8   : >> { %v2675_v47 = vsel %vm1078_vm4, %v2672_v29, %v2674_v44  ;;  %v2679_v30 = vadd.f32 %v2671_v11, %v2660_v39  ;;  %v2680_v51 = vadd.f32 %v2673_v37, %v2661_v54  ;;  %v2702_v52 = vstv %s5611_s12 }
 0x1e9   : >> { %v2681_v56 = vadd.f32 %v2675_v47, %v2662_v43  ;;  %v2692_v57 = vsel %vm1098_vm5, %v2690_v26, %v2691_v17  ;;  %v2693_v33 = vrot.slane %v2686_v5, 5  ;;  %v2703_v16 = vmul.f32 %v5579_v60, %v2702_v52 }
 0x1ea   : >> { %v2698_v38 = vadd.f32 %v2690_v26, %v2679_v30  ;;  %v2699_v6 = vadd.f32 %v2692_v57, %v2680_v51  ;;  %v2704_v9 = vmul.f32 %v5582_v4, %v2702_v52  ;;  %v2705_v35 = vmul.f32 %v3203_v50, %v2702_v52 }
 0x1eb   : >> { %v2694_v18 = vsel %vm1098_vm5, %v2691_v17, %v2693_v33  ;;  %v2709_v2 = vrot.slane %v2703_v16, 6  ;;  %v2727_v22 = vstv %s5619_s15  ;;  %v2735_v3 = vstv %s5616_s14 }
 0x1ec   : >> { %v2700_v55 = vadd.f32 %v2694_v18, %v2681_v56  ;;  %v2710_v24 = vrot.slane %v2704_v9, 6  ;;  %v2712_v36 = vrot.slane %v2705_v35, 6  ;;  %v2728_v40 = vmul.f32 %v3212_v58, %v2727_v22 }
 0x1ed   : >> { %v2717_v60 = vadd.f32 %v2709_v2, %v2698_v38  ;;  %v2729_v49 = vmul.f32 %v5638_v32, %v2727_v22  ;;  %v2730_v4 = vmul.f32 %v5641_v7, %v2727_v22  ;;  %v2736_v50 = vmul.f32 %v3212_v58, %v2735_v3 }
 0x1ee   : >> { %v2711_v12 = vsel %vm1118_vm6, %v2709_v2, %v2710_v24  ;;  %v2713_v19 = vsel %vm1118_vm6, %v2710_v24, %v2712_v36  ;;  %v2737_v42 = vmul.f32 %v5638_v32, %v2735_v3  ;;  %v2738_v27 = vmul.f32 %v5641_v7, %v2735_v3 }
 0x1ef   : >> { %v2718_v53 = vadd.f32 %v2711_v12, %v2699_v6  ;;  %v2719_v23 = vadd.f32 %v2713_v19, %v2700_v55  ;;  %v2731_v41 = vadd.f32 %v2728_v40, %v2717_v60  ;;  %v2742_v1 = vrot.slane %v2736_v50, 1 }
 0x1f0   : >> { %v2743_v13 = vrot.slane %v2737_v42, 1  ;;  %v2745_v59 = vrot.slane %v2738_v27, 1  ;;  %v2754_v21 = vstv %s5629_s16  ;;  %v2773_v10 = vstv %s5631_s18 }
 0x1f1   : >> { %v2732_v48 = vadd.f32 %v2729_v49, %v2718_v53  ;;  %v2733_v14 = vadd.f32 %v2730_v4, %v2719_v23  ;;  %v2755_v45 = vmul.f32 %v3212_v58, %v2754_v21  ;;  %v2756_v62 = vmul.f32 %v5638_v32, %v2754_v21 }
 0x1f2   : >> { %v2744_v8 = vsel %vm1014_vm1, %v2742_v1, %v2743_v13  ;;  %v2746_v61 = vsel %vm1014_vm1, %v2743_v13, %v2745_v59  ;;  %v2757_v28 = vmul.f32 %v5641_v7, %v2754_v21  ;;  %v2774_v15 = vmul.f32 %v3212_v58, %v2773_v10 }
 0x1f3   : >> { %v2750_v34 = vadd.f32 %v2744_v8, %v2731_v41  ;;  %v2751_v11 = vadd.f32 %v2746_v61, %v2732_v48  ;;  %v2752_v25 = vadd.f32 %v2745_v59, %v2733_v14  ;;  %v2761_v0 = vrot.slane %v2755_v45, 2 }
 0x1f4   : >> { %v2762_v31 = vrot.slane %v2756_v62, 2  ;;  %v2764_v20 = vrot.slane %v2757_v28, 2  ;;  %v2775_v46 = vmul.f32 %v5638_v32, %v2773_v10  ;;  %v2776_v29 = vmul.f32 %v5641_v7, %v2773_v10 }
 0x1f5   : >> { %v2777_v39 = vmul.f32 %v3215_v63, %v2773_v10  ;;  %v2782_v54 = vrot.slane %v2774_v15, 3  ;;  %v2796_v43 = vstv %s5648_s19  ;;  %v2815_v44 = vstv %s5650_s20 }
 0x1f6   : >> { %v2763_v37 = vsel %vm1034_vm2, %v2761_v0, %v2762_v31  ;;  %v2765_v5 = vsel %vm1034_vm2, %v2762_v31, %v2764_v20  ;;  %v2771_v26 = vadd.f32 %v2764_v20, %v2752_v25  ;;  %v2783_v17 = vrot.slane %v2775_v46, 3 }
 0x1f7   : >> { %v2769_v47 = vadd.f32 %v2763_v37, %v2750_v34  ;;  %v2770_v30 = vadd.f32 %v2765_v5, %v2751_v11  ;;  %v2785_v51 = vrot.slane %v2776_v29, 3  ;;  %v2787_v52 = vrot.slane %v2777_v39, 3 }
 0x1f8   : >> { %v2784_v56 = vsel %vm1056_vm3, %v2782_v54, %v2783_v17  ;;  %v2797_v57 = vmul.f32 %v5638_v32, %v2796_v43  ;;  %v2798_v33 = vmul.f32 %v5641_v7, %v2796_v43  ;;  %v2799_v16 = vmul.f32 %v3215_v63, %v2796_v43 }
 0x1f9   : >> { %v2786_v58 = vsel %vm1056_vm3, %v2783_v17, %v2785_v51  ;;  %v2788_v38 = vsel %vm1056_vm3, %v2785_v51, %v2787_v52  ;;  %v2792_v6 = vadd.f32 %v2784_v56, %v2769_v47  ;;  %v2816_v9 = vmul.f32 %v5638_v32, %v2815_v44 }
 0x1fa   : >> { %v2793_v35 = vadd.f32 %v2786_v58, %v2770_v30  ;;  %v2794_v18 = vadd.f32 %v2788_v38, %v2771_v26  ;;  %v2803_v2 = vrot.slane %v2797_v57, 4  ;;  %v2804_v22 = vrot.slane %v2798_v33, 4 }
 0x1fb   : >> { %v2806_v3 = vrot.slane %v2799_v16, 4  ;;  %v2817_v55 = vmul.f32 %v5641_v7, %v2815_v44  ;;  %v2818_v24 = vmul.f32 %v3215_v63, %v2815_v44  ;;  %v2822_v36 = vrot.slane %v2816_v9, 5 }
 0x1fc   : >> { %v2805_v40 = vsel %vm1078_vm4, %v2803_v2, %v2804_v22  ;;  %v2811_v60 = vadd.f32 %v2803_v2, %v2792_v6  ;;  %v2834_v49 = vstv %s5665_s7 }
 0x1fd   : >> { %v2807_v4 = vsel %vm1078_vm4, %v2804_v22, %v2806_v3  ;;  %v2812_v50 = vadd.f32 %v2805_v40, %v2793_v35  ;;  %v2823_v12 = vrot.slane %v2817_v55, 5  ;;  %v2825_v19 = vrot.slane %v2818_v24, 5 }
 0x1fe   : >> { %v2813_v42 = vadd.f32 %v2807_v4, %v2794_v18  ;;  %v2830_v27 = vadd.f32 %v2822_v36, %v2811_v60  ;;  %v2835_v53 = vmul.f32 %v5638_v32, %v2834_v49  ;;  %v2836_v23 = vmul.f32 %v5641_v7, %v2834_v49 }
 0x1ff   : >> { %v2824_v41 = vsel %vm1098_vm5, %v2822_v36, %v2823_v12  ;;  %v2826_v1 = vsel %vm1098_vm5, %v2823_v12, %v2825_v19  ;;  %v2837_v13 = vmul.f32 %v3215_v63, %v2834_v49 }
 0x200   : >> { %v2831_v59 = vadd.f32 %v2824_v41, %v2812_v50  ;;  %v2832_v21 = vadd.f32 %v2826_v1, %v2813_v42  ;;  %v2841_v10 = vrot.slane %v2835_v53, 6  ;;  %v2842_v48 = vrot.slane %v2836_v23, 6 }
 0x201   : >> { %v2844_v14 = vrot.slane %v2837_v13, 6 }
 0x202   : >> { %v2843_v45 = vsel %vm1118_vm6, %v2841_v10, %v2842_v48  ;;  %v2849_v62 = vadd.f32 %v2841_v10, %v2830_v27 }
 0x203   : >> { %v2845_v8 = vsel %vm1118_vm6, %v2842_v48, %v2844_v14  ;;  %v2850_v61 = vadd.f32 %v2843_v45, %v2831_v59 }
 0x204   : >> { %v2851_v28 = vadd.f32 %v2845_v8, %v2832_v21  ;;  %v2852_v32 = vmax.f32 %v2849_v62, 0.0 }
 0x205   : >> { %v2853_v15 = vmax.f32 %v2850_v61, 0.0 }
 0x206   : >> { %v2854_v7 = vmax.f32 %v2851_v28, 0.0  ;;  %v3223_v34 = vmul.f32 -1.442695, %v2852_v32 }
 0x207   : >> { %v3224_v11 = vmul.f32 -1.442695, %v2853_v15 }
 0x208   : >> { %3273 = vpow2.f32 %v3223_v34  ;;  %v3225_v63 = vmul.f32 -1.442695, %v2854_v7 }
 0x209   : >> { %3275 = vpow2.f32 %v3224_v11 }
 0x20a   : >> { %3277 = vpow2.f32 %v3225_v63 }
 0x212   : >> { %v3274_v25 = vpop.eup %3273 }
 0x213   : >> { %v3276_v0 = vpop.eup %3275  ;;  %v2864_v31 = vadd.f32 1.0, %v3274_v25 }
 0x214   : >> { %v3278_v20 = vpop.eup %3277  ;;  %v2865_v46 = vadd.f32 1.0, %v3276_v0 }
 0x215   : >> { %v2866_v29 = vadd.f32 1.0, %v3278_v20  ;;  %3279 = vrcp.f32 %v2864_v31 }
 0x216   : >> { %3281 = vrcp.f32 %v2865_v46 }
 0x217   : >> { %3283 = vrcp.f32 %v2866_v29 }
 0x21c   : > { %989 = sbr.rel (!%p987_p2) target bundleno = 221 (0xdd), region = 90 }
 0x21f   : >> { %v3280_v39 = vpop.eup %3279 }
 0x220   : >> { %v3282_v54 = vpop.eup %3281  ;;  %2876 = vst.msk [vmem:[%s2874_s23 - $0x4] sm:$0xf0] %vm2875_vm7, %v3280_v39 }
 0x221   : >> { %v3284_v43 = vpop.eup %3283  ;;  %2877 = vst.msk [vmem:[%s2874_s23 + $0x4] sm:$0xff] %vm307_vm0, %v3282_v54 }
 0x222   : >> { %2879 = vst.msk [vmem:[%s2874_s23 + $0xc] sm:$0x3f] %vm2878_vm8, %v3284_v43 }
 0x223 PF: > { %s13_s11 = sadd.s32 1, %s3330_s11   ;;  %s5953_s9 = smov %s3326_s10 }
 0x224   : > { %p10_p3 = scmp.ge.s32.totalorder %s13_s11, 4   ;;  %s5954_s10 = smov %s5956_s13 }
 0x226   :  { %12 = sbr.rel (!%p10_p3) target bundleno = 2 (0x2), region = 101 }
 0x22d   :  { %2910 = vsyncpa [#allocation4], 1 }
 0x22e   :  { %2912 = vsyncpa [#allocation4 + $0x1], 1 }

</bundles_post_ra>
